<compile_context>
chip_gen: v7x
topology: tpu7x:2x2x1
jax: 0.10.0
libtpu: 0.0.40
codegen_flags: <defaults>
</compile_context>

<pallas_src>
import functools

import jax
import jax.numpy as jnp
from jax.experimental import pallas as pl
from jax.experimental.pallas import tpu as pltpu


FEATURE_DIM = 32
LSTM_HIDDEN = 64
NUM_CLASSES = 2


# --------------------------- Pallas kernels ---------------------------------

def _conv1_pool_kernel(x_ref, w_ref, b_ref, o_ref):
    """Conv1 (im2col matmul, K padded to 32) + bias + fused 2x2 max-pool + ReLU.

    x_ref block: (4, tg, 32) bf16 -- leading dim = the 4 members of a 2x2 pool
    w_ref:       (32, 128)   bf16
    b_ref:       (1, 128)    f32
    o_ref block: (tg, 128)   bf16 (pooled NHWC rows)
    """
    w = w_ref[...]
    b = b_ref[...]
    acc = None
    for d in range(4):
        y = jnp.dot(x_ref[d], w, preferred_element_type=jnp.float32) + b
        acc = y if acc is None else jnp.maximum(acc, y)
    # max(relu(a), relu(b), ...) == relu(max(a, b, ...))
    o_ref[...] = jnp.maximum(acc, 0.0).astype(o_ref.dtype)


def conv1_relu_pool(patches4, w, b, *, tg=512):
    """patches4: (4, M, K) bf16 pool-grouped im2col patches -> (M, 128) bf16."""
    _, m, kk = patches4.shape
    n = w.shape[1]
    tg = min(tg, m)
    grid = (pl.cdiv(m, tg),)
    return pl.pallas_call(
        _conv1_pool_kernel,
        out_shape=jax.ShapeDtypeStruct((m, n), jnp.bfloat16),
        grid_spec=pltpu.PrefetchScalarGridSpec(
            num_scalar_prefetch=0,
            grid=grid,
            in_specs=[
                pl.BlockSpec((4, tg, kk), lambda i: (0, i, 0)),
                pl.BlockSpec((kk, n), lambda i: (0, 0)),
                pl.BlockSpec((1, n), lambda i: (0, 0)),
            ],
            out_specs=pl.BlockSpec((tg, n), lambda i: (i, 0)),
        ),
        compiler_params=pltpu.CompilerParams(
            dimension_semantics=("parallel",)),
    )(patches4, w, b)


def _matmul_kernel(x_ref, w_ref, b_ref, o_ref, acc_ref, *, relu):
    """Tiled y = x @ w + b (optional ReLU): K-reduction grid, f32 accumulator."""
    k = pl.program_id(2)

    @pl.when(k == 0)
    def _():
        acc_ref[...] = jnp.zeros_like(acc_ref)

    acc_ref[...] += jnp.dot(x_ref[...], w_ref[...],
                            preferred_element_type=jnp.float32)

    @pl.when(k == pl.num_programs(2) - 1)
    def _():
        out = acc_ref[...] + b_ref[...]
        if relu:
            out = jnp.maximum(out, 0.0)
        o_ref[...] = out.astype(o_ref.dtype)


def matmul_bias(x, w, b, *, relu=False, out_dtype=jnp.bfloat16,
                tm=None, tn=128, tk=None):
    m, kdim = x.shape
    _, n = w.shape
    tm = m if tm is None else min(tm, m)
    tn = min(tn, n)
    tk = kdim if tk is None else tk
    assert kdim % tk == 0, "K tiling must divide exactly"
    grid = (pl.cdiv(m, tm), pl.cdiv(n, tn), kdim // tk)
    return pl.pallas_call(
        functools.partial(_matmul_kernel, relu=relu),
        out_shape=jax.ShapeDtypeStruct((m, n), out_dtype),
        grid_spec=pltpu.PrefetchScalarGridSpec(
            num_scalar_prefetch=0,
            grid=grid,
            in_specs=[
                pl.BlockSpec((tm, tk), lambda i, j, k: (i, k)),
                pl.BlockSpec((tk, tn), lambda i, j, k: (k, j)),
                pl.BlockSpec((1, tn), lambda i, j, k: (0, j)),
            ],
            out_specs=pl.BlockSpec((tm, tn), lambda i, j, k: (i, j)),
            scratch_shapes=[pltpu.VMEM((tm, tn), jnp.float32)],
        ),
        compiler_params=pltpu.CompilerParams(
            dimension_semantics=("parallel", "parallel", "arbitrary")),
    )(x, w, b.reshape(1, n))


def _proj_gates_kernel(x_ref, wp_ref, bp_ref, wg_ref, bg_ref, o_ref, acc_ref):
    """Fused cnn_proj + LSTM input projection: ((x@Wp)+bp)@Wih + (b_ih+b_hh)."""
    k = pl.program_id(0)

    @pl.when(k == 0)
    def _():
        acc_ref[...] = jnp.zeros_like(acc_ref)

    acc_ref[...] += jnp.dot(x_ref[...], wp_ref[...],
                            preferred_element_type=jnp.float32)

    @pl.when(k == pl.num_programs(0) - 1)
    def _():
        feats = (acc_ref[...] + bp_ref[...]).astype(jnp.bfloat16)
        o_ref[...] = (jnp.dot(feats, wg_ref[...],
                              preferred_element_type=jnp.float32)
                      + bg_ref[...])


def proj_and_input_gates(flat, wp, bp, wg, bg, *, tk=1280):
    m, kdim = flat.shape
    f = wp.shape[1]
    g4 = wg.shape[1]
    if kdim % tk != 0:
        tk = kdim
    grid = (kdim // tk,)
    return pl.pallas_call(
        _proj_gates_kernel,
        out_shape=jax.ShapeDtypeStruct((m, g4), jnp.float32),
        grid_spec=pltpu.PrefetchScalarGridSpec(
            num_scalar_prefetch=0,
            grid=grid,
            in_specs=[
                pl.BlockSpec((m, tk), lambda k: (0, k)),
                pl.BlockSpec((tk, f), lambda k: (k, 0)),
                pl.BlockSpec((1, f), lambda k: (0, 0)),
                pl.BlockSpec((f, g4), lambda k: (0, 0)),
                pl.BlockSpec((1, g4), lambda k: (0, 0)),
            ],
            out_specs=pl.BlockSpec((m, g4), lambda k: (0, 0)),
            scratch_shapes=[pltpu.VMEM((m, f), jnp.float32)],
        ),
        compiler_params=pltpu.CompilerParams(
            dimension_semantics=("arbitrary",)),
    )(flat, wp, bp.reshape(1, f), wg, bg.reshape(1, g4))


def _lstm_fc_kernel(gx_ref, whh_ref, wfc_ref, bfc_ref, o_ref, *, hidden, seq_len):
    """LSTM recurrence over precomputed input gates + final fc.

    gx_ref: (T, B, 4H) f32 precomputed x@W_ih + bias, gate order [i, f, o, g]
    whh_ref: (H, 4H) bf16 (same gate order); wfc_ref: (H, C) bf16.
    """
    bsz = gx_ref.shape[1]
    h = jnp.zeros((bsz, hidden), jnp.float32)
    c = jnp.zeros((bsz, hidden), jnp.float32)
    whh = whh_ref[...]
    # seq_len is static & tiny: fully unroll the recurrence (equivalent to
    # fori_loop(..., unroll=True)) so the scheduler sees across timesteps.
    for t in range(seq_len):
        gates = gx_ref[t] + jnp.dot(h.astype(jnp.bfloat16), whh,
                                    preferred_element_type=jnp.float32)
        sig = jax.nn.sigmoid(gates[:, :3 * hidden])      # i, f, o in one pass
        i_g = sig[:, 0 * hidden:1 * hidden]
        f_g = sig[:, 1 * hidden:2 * hidden]
        o_g = sig[:, 2 * hidden:3 * hidden]
        g_g = jnp.tanh(gates[:, 3 * hidden:])
        c = f_g * c + i_g * g_g
        h = o_g * jnp.tanh(c)
    out = (jnp.dot(h.astype(jnp.bfloat16), wfc_ref[...],
                   preferred_element_type=jnp.float32) + bfc_ref[...])
    o_ref[...] = out


def lstm_fc(gates_tbg, w_hh_t, w_fc_t, b_fc, hidden):
    t, bsz, _ = gates_tbg.shape
    n_cls = w_fc_t.shape[1]
    return pl.pallas_call(
        functools.partial(_lstm_fc_kernel, hidden=hidden, seq_len=t),
        out_shape=jax.ShapeDtypeStruct((bsz, n_cls), jnp.float32),
    )(gates_tbg, w_hh_t, w_fc_t, b_fc.reshape(1, n_cls))


# --------------------------- JAX glue (layout only) --------------------------

def conv1_pool_patches(x2d, k, stride):
    """Pool-grouped im2col for Conv2d(1,.,k,stride) followed by MaxPool2d(2).

    x2d: (N, H, W).  Returns ((4, N*PH*PW, 32), PH, PW) with
      patches[dh*2+dw, n*PH*PW + i*PW + j, kh*k + kw]
        = x2d[n, 2*stride*i + stride*dh + kh, 2*stride*j + stride*dw + kw]
    and the contraction dim zero-padded from k*k (=25) to 32.
    """
    n, h, w = x2d.shape
    oh = (h - k) // stride + 1
    ow = (w - k) // stride + 1
    ph, pw = oh // 2, ow // 2                 # MaxPool2d(2) floor behaviour
    kpad = 32 if k * k <= 32 else k * k
    zeros = jnp.zeros((n, ph, pw), x2d.dtype)
    groups = []
    for dh in range(2):
        for dw in range(2):
            cols = []
            for kh in range(k):
                for kw in range(k):
                    r0 = stride * dh + kh
                    c0 = stride * dw + kw
                    cols.append(
                        x2d[:, r0:r0 + 2 * stride * (ph - 1) + 1:2 * stride,
                               c0:c0 + 2 * stride * (pw - 1) + 1:2 * stride])
            cols.extend([zeros] * (kpad - k * k))
            groups.append(jnp.stack(cols, axis=-1).reshape(n * ph * pw, kpad))
    return jnp.stack(groups, axis=0), ph, pw


def im2col_c_trailing(x, k, stride):
    """im2col on NHWC with columns ordered (kh, kw, c) so C stays lane-dense."""
    n, h, w, c = x.shape
    oh = (h - k) // stride + 1
    ow = (w - k) // stride + 1
    views = [x[:, i:i + stride * (oh - 1) + 1:stride,
                 j:j + stride * (ow - 1) + 1:stride, :]
             for i in range(k) for j in range(k)]
    p = jnp.stack(views, axis=3)              # (N, OH, OW, k*k, C)
    return p.reshape(n * oh * ow, k * k * c), oh, ow


def adaptive_avg_pool_nhwc(x, out_hw=5):
    n, h, w, c = x.shape
    if (h, w) == (out_hw, out_hw):            # identity: skip all slicing/means
        return x
    rows = []
    for i in range(out_hw):
        h0, h1 = (i * h) // out_hw, -((-(i + 1) * h) // out_hw)
        cols = []
        for j in range(out_hw):
            w0, w1 = (j * w) // out_hw, -((-(j + 1) * w) // out_hw)
            cols.append(jnp.mean(x[:, h0:h1, w0:w1, :], axis=(1, 2)))
        rows.append(jnp.stack(cols, axis=1))
    return jnp.stack(rows, axis=1)


# ------------------------------- Model ---------------------------------------

def init_params(key):
    ks = jax.random.split(key, 12)

    def u(k, shape, fan_in):
        bound = 1.0 / float(fan_in) ** 0.5
        return jax.random.uniform(k, shape, jnp.float32, -bound, bound)

    p = {}
    p["conv1_w"] = u(ks[0], (128, 1, 5, 5), 1 * 25)
    p["conv1_b"] = u(ks[1], (128,), 1 * 25)
    p["conv2_w"] = u(ks[2], (256, 128, 5, 5), 128 * 25)
    p["conv2_b"] = u(ks[3], (256,), 128 * 25)
    p["proj_w"] = u(ks[4], (FEATURE_DIM, 256 * 5 * 5), 256 * 25)
    p["proj_b"] = u(ks[5], (FEATURE_DIM,), 256 * 25)
    p["w_ih"] = u(ks[6], (4 * LSTM_HIDDEN, FEATURE_DIM), LSTM_HIDDEN)
    p["w_hh"] = u(ks[7], (4 * LSTM_HIDDEN, LSTM_HIDDEN), LSTM_HIDDEN)
    p["b_ih"] = u(ks[8], (4 * LSTM_HIDDEN,), LSTM_HIDDEN)
    p["b_hh"] = u(ks[9], (4 * LSTM_HIDDEN,), LSTM_HIDDEN)
    p["fc_w"] = u(ks[10], (NUM_CLASSES, LSTM_HIDDEN), LSTM_HIDDEN)
    p["fc_b"] = u(ks[11], (NUM_CLASSES,), LSTM_HIDDEN)
    return p


def _prepare_inference_params(p):
    """Trace-time weight re-layout: bf16 matmul operands, conv1 K padded to 32,
    conv2/proj weights permuted for C-trailing patches / NHWC flatten,
    LSTM gates re-ordered to [i, f, o, g]."""
    h = LSTM_HIDDEN
    bf16 = jnp.bfloat16

    w1 = p["conv1_w"].reshape(128, 25).T                           # rows (kh,kw)
    w1 = jnp.concatenate([w1, jnp.zeros((32 - 25, 128), w1.dtype)], axis=0)

    w2 = p["conv2_w"].transpose(2, 3, 1, 0).reshape(25 * 128, 256)  # rows (kh,kw,cin)

    wp = (p["proj_w"].reshape(FEATURE_DIM, 256, 5, 5)
          .transpose(0, 2, 3, 1).reshape(FEATURE_DIM, 256 * 5 * 5).T)  # NHWC flatten

    gate_perm = jnp.concatenate([jnp.arange(0, h), jnp.arange(h, 2 * h),
                                 jnp.arange(3 * h, 4 * h), jnp.arange(2 * h, 3 * h)])
    wih = p["w_ih"][gate_perm].T                                    # (F, 4H)
    whh = p["w_hh"][gate_perm].T                                    # (H, 4H)
    bg = (p["b_ih"] + p["b_hh"])[gate_perm]                         # (4H,)
    wfc = p["fc_w"].T                                               # (H, C)

    return dict(
        w1=w1.astype(bf16), b1=p["conv1_b"].reshape(1, 128).astype(jnp.float32),
        w2=w2.astype(bf16), b2=p["conv2_b"].astype(jnp.float32),
        wp=wp.astype(bf16), bp=p["proj_b"].astype(jnp.float32),
        wih=wih.astype(bf16), bg=bg.astype(jnp.float32),
        whh=whh.astype(bf16), wfc=wfc.astype(bf16),
        bfc=p["fc_b"].astype(jnp.float32),
    )


def offline_cnn_lstm_forward(params, x):
    b, t, c, h, w = x.shape
    n = b * t
    q = _prepare_inference_params(params)

    x2d = x.reshape(n, h, w).astype(jnp.bfloat16)          # C == 1 is squeezed

    # Conv2d(1,128,5,2) + ReLU + MaxPool2d(2): pool-grouped im2col + one Pallas
    # matmul kernel with the 2x2 max fused into its epilogue.
    p1, ph, pw = conv1_pool_patches(x2d, 5, 2)
    y1 = conv1_relu_pool(p1, q["w1"], q["b1"]).reshape(n, ph, pw, 128)

    # Conv2d(128,256,5,2) + ReLU: C-trailing im2col + (N-parallel, K-reduction)
    # tiled Pallas matmul with f32 VMEM accumulator.
    p2, oh2, ow2 = im2col_c_trailing(y1, 5, 2)
    y2 = matmul_bias(p2, q["w2"], q["b2"], relu=True,
                     out_dtype=jnp.bfloat16, tn=128, tk=640)
    y2 = y2.reshape(n, oh2, ow2, 256)

    # AdaptiveAvgPool2d((5,5)) — identity when spatial is already 5x5.
    y2 = adaptive_avg_pool_nhwc(y2, 5)

    # NHWC flatten (proj weight pre-permuted) + fused cnn_proj and LSTM input
    # projection: gates_x = ((flat @ Wp) + bp) @ Wih + (b_ih + b_hh).
    flat = y2.reshape(n, 5 * 5 * 256)
    gates_x = proj_and_input_gates(flat, q["wp"], q["bp"], q["wih"], q["bg"])

    # LSTM recurrence (only h @ W_hh per step, fully unrolled) + final fc.
    gates_tbg = gates_x.reshape(b, t, 4 * LSTM_HIDDEN).transpose(1, 0, 2)
    return lstm_fc(gates_tbg, q["whh"], q["wfc"], q["bfc"], LSTM_HIDDEN)


if __name__ == "__main__":
    key = jax.random.PRNGKey(0)
    pkey, xkey = jax.random.split(key)
    params = init_params(pkey)

    # H=W=56 is the smallest "nice" size: conv1 -> 26, pool -> 13, conv2 -> 5,
    # so AdaptiveAvgPool2d((5,5)) is exactly the identity.
    B, T, C, H, W = 2, 4, 1, 56, 56
    x = jax.random.normal(xkey, (B, T, C, H, W), jnp.float32)

    fwd = jax.jit(offline_cnn_lstm_forward)
    out = jax.block_until_ready(fwd(params, x))
    assert out.shape == (B, NUM_CLASSES), out.shape
    assert bool(jnp.all(jnp.isfinite(out)))
    print("KERNEL_OK")
</pallas_src>

<mosaic_0001>
module attributes {stable_mosaic.version = 11 : i64} {
  func.func @_conv1_pool_kernel(%arg0: i32, %arg1: memref<4x512x32xbf16, #tpu.memory_space<vmem>>, %arg2: memref<32x128xbf16, #tpu.memory_space<vmem>>, %arg3: memref<1x128xf32, #tpu.memory_space<vmem>>, %arg4: memref<512x128xbf16, #tpu.memory_space<vmem>>) attributes {dimension_semantics = [#tpu.dimension_semantics<parallel>], iteration_bounds = array<i64: 3>, scalar_prefetch = 0 : i64, scratch_operands = 0 : i64, tpu.core_type = #tpu.core_type<tc>, window_params = [{transform_indices = @transform_0, window_bounds = array<i64: 4, 512, 32>}, {pipeline_mode = #tpu.pipeline_mode<synchronous>, transform_indices = @transform_1, window_bounds = array<i64: 32, 128>}, {pipeline_mode = #tpu.pipeline_mode<synchronous>, transform_indices = @transform_2, window_bounds = array<i64: 1, 128>}, {transform_indices = @transform_3, window_bounds = array<i64: 512, 128>}]} {
    %c0 = arith.constant 0 : index
    %c0_0 = arith.constant 0 : index
    %0 = vector.load %arg2[%c0, %c0_0] : memref<32x128xbf16, #tpu.memory_space<vmem>>, vector<32x128xbf16>
    %c0_1 = arith.constant 0 : index
    %c0_2 = arith.constant 0 : index
    %1 = vector.load %arg3[%c0_1, %c0_2] : memref<1x128xf32, #tpu.memory_space<vmem>>, vector<1x128xf32>
    %c0_3 = arith.constant 0 : index
    %c0_4 = arith.constant 0 : index
    %c0_5 = arith.constant 0 : index
    %2 = vector.load %arg1[%c0_3, %c0_4, %c0_5] : memref<4x512x32xbf16, #tpu.memory_space<vmem>>, vector<1x512x32xbf16>
    %3 = vector.shape_cast %2 : vector<1x512x32xbf16> to vector<512x32xbf16>
    %cst = arith.constant dense<0.000000e+00> : vector<512x128xf32>
    %4 = tpu.matmul %3, %0, %cst {dimension_numbers = #tpu.dot_dimension_numbers<[1], [0], [0], [1], [0, 0, 1, 1], [], []>} : vector<512x32xbf16>, vector<32x128xbf16>, vector<512x128xf32> -> vector<512x128xf32>
    %5 = vector.broadcast %1 : vector<1x128xf32> to vector<512x128xf32>
    %6 = arith.addf %4, %5 : vector<512x128xf32>
    %c1 = arith.constant 1 : index
    %c0_6 = arith.constant 0 : index
    %c0_7 = arith.constant 0 : index
    %7 = vector.load %arg1[%c1, %c0_6, %c0_7] : memref<4x512x32xbf16, #tpu.memory_space<vmem>>, vector<1x512x32xbf16>
    %8 = vector.shape_cast %7 : vector<1x512x32xbf16> to vector<512x32xbf16>
    %cst_8 = arith.constant dense<0.000000e+00> : vector<512x128xf32>
    %9 = tpu.matmul %8, %0, %cst_8 {dimension_numbers = #tpu.dot_dimension_numbers<[1], [0], [0], [1], [0, 0, 1, 1], [], []>} : vector<512x32xbf16>, vector<32x128xbf16>, vector<512x128xf32> -> vector<512x128xf32>
    %10 = vector.broadcast %1 : vector<1x128xf32> to vector<512x128xf32>
    %11 = arith.addf %9, %10 : vector<512x128xf32>
    %12 = arith.maximumf %6, %11 : vector<512x128xf32>
    %c2 = arith.constant 2 : index
    %c0_9 = arith.constant 0 : index
    %c0_10 = arith.constant 0 : index
    %13 = vector.load %arg1[%c2, %c0_9, %c0_10] : memref<4x512x32xbf16, #tpu.memory_space<vmem>>, vector<1x512x32xbf16>
    %14 = vector.shape_cast %13 : vector<1x512x32xbf16> to vector<512x32xbf16>
    %cst_11 = arith.constant dense<0.000000e+00> : vector<512x128xf32>
    %15 = tpu.matmul %14, %0, %cst_11 {dimension_numbers = #tpu.dot_dimension_numbers<[1], [0], [0], [1], [0, 0, 1, 1], [], []>} : vector<512x32xbf16>, vector<32x128xbf16>, vector<512x128xf32> -> vector<512x128xf32>
    %16 = vector.broadcast %1 : vector<1x128xf32> to vector<512x128xf32>
    %17 = arith.addf %15, %16 : vector<512x128xf32>
    %18 = arith.maximumf %12, %17 : vector<512x128xf32>
    %c3 = arith.constant 3 : index
    %c0_12 = arith.constant 0 : index
    %c0_13 = arith.constant 0 : index
    %19 = vector.load %arg1[%c3, %c0_12, %c0_13] : memref<4x512x32xbf16, #tpu.memory_space<vmem>>, vector<1x512x32xbf16>
    %20 = vector.shape_cast %19 : vector<1x512x32xbf16> to vector<512x32xbf16>
    %cst_14 = arith.constant dense<0.000000e+00> : vector<512x128xf32>
    %21 = tpu.matmul %20, %0, %cst_14 {dimension_numbers = #tpu.dot_dimension_numbers<[1], [0], [0], [1], [0, 0, 1, 1], [], []>} : vector<512x32xbf16>, vector<32x128xbf16>, vector<512x128xf32> -> vector<512x128xf32>
    %22 = vector.broadcast %1 : vector<1x128xf32> to vector<512x128xf32>
    %23 = arith.addf %21, %22 : vector<512x128xf32>
    %24 = arith.maximumf %18, %23 : vector<512x128xf32>
    %cst_15 = arith.constant 0.000000e+00 : f32
    %25 = vector.broadcast %cst_15 : f32 to vector<512x128xf32>
    %26 = arith.maximumf %24, %25 : vector<512x128xf32>
    %27 = arith.truncf %26 : vector<512x128xf32> to vector<512x128xbf16>
    %c0_16 = arith.constant 0 : index
    %c0_17 = arith.constant 0 : index
    %28 = vector.load %arg4[%c0_16, %c0_17] : memref<512x128xbf16, #tpu.memory_space<vmem>>, vector<512x128xbf16>
    tpu.vector_store %arg4[%c0_16, %c0_17], %27 {strides = array<i32>} : memref<512x128xbf16, #tpu.memory_space<vmem>>, vector<512x128xbf16>,
    return
  }
  func.func @transform_0(%arg0: i32) -> (i32, i32, i32) {
    %c0_i32 = arith.constant 0 : i32
    %c0_i32_0 = arith.constant 0 : i32
    %c0_i32_1 = arith.constant 0 : i32
    return %c0_i32, %arg0, %c0_i32_0 : i32, i32, i32
  }
  func.func @transform_1(%arg0: i32) -> (i32, i32) {
    %c0_i32 = arith.constant 0 : i32
    %c0_i32_0 = arith.constant 0 : i32
    %c0_i32_1 = arith.constant 0 : i32
    return %c0_i32, %c0_i32_0 : i32, i32
  }
  func.func @transform_2(%arg0: i32) -> (i32, i32) {
    %c0_i32 = arith.constant 0 : i32
    %c0_i32_0 = arith.constant 0 : i32
    %c0_i32_1 = arith.constant 0 : i32
    return %c0_i32, %c0_i32_0 : i32, i32
  }
  func.func @transform_3(%arg0: i32) -> (i32, i32) {
    %c0_i32 = arith.constant 0 : i32
    %c0_i32_0 = arith.constant 0 : i32
    return %arg0, %c0_i32 : i32, i32
  }
}

module attributes {stable_mosaic.version = 11 : i64} {
  func.func @_matmul_kernel(%arg0: i32, %arg1: i32, %arg2: i32, %arg3: memref<200x640xbf16, #tpu.memory_space<vmem>>, %arg4: memref<640x128xbf16, #tpu.memory_space<vmem>>, %arg5: memref<1x128xf32, #tpu.memory_space<vmem>>, %arg6: memref<200x128xbf16, #tpu.memory_space<vmem>>, %arg7: memref<200x128xf32, #tpu.memory_space<vmem>>) attributes {dimension_semantics = [#tpu.dimension_semantics<parallel>, #tpu.dimension_semantics<parallel>, #tpu.dimension_semantics<arbitrary>], iteration_bounds = array<i64: 1, 2, 5>, scalar_prefetch = 0 : i64, scratch_operands = 1 : i64, tpu.core_type = #tpu.core_type<tc>, window_params = [{transform_indices = @transform_0, window_bounds = array<i64: 200, 640>}, {transform_indices = @transform_1, window_bounds = array<i64: 640, 128>}, {transform_indices = @transform_2, window_bounds = array<i64: 1, 128>}, {transform_indices = @transform_3, window_bounds = array<i64: 200, 128>}]} {
    %c0_i32 = arith.constant 0 : i32
    %0 = arith.cmpi eq, %arg2, %c0_i32 : i32
    %1 = arith.extui %0 : i1 to i32
    %c0_i32_0 = arith.constant 0 : i32
    %2 = arith.cmpi ne, %1, %c0_i32_0 : i32
    scf.if %2 {
      %cst_9 = arith.constant 0.000000e+00 : f32
      %12 = vector.broadcast %cst_9 : f32 to vector<200x128xf32>
      %c0_10 = arith.constant 0 : index
      %c0_11 = arith.constant 0 : index
      %13 = vector.load %arg7[%c0_10, %c0_11] : memref<200x128xf32, #tpu.memory_space<vmem>>, vector<200x128xf32>
      tpu.vector_store %arg7[%c0_10, %c0_11], %12 {strides = array<i32>} : memref<200x128xf32, #tpu.memory_space<vmem>>, vector<200x128xf32>,
    } else {
    }
    %c0 = arith.constant 0 : index
    %c0_1 = arith.constant 0 : index
    %3 = vector.load %arg7[%c0, %c0_1] : memref<200x128xf32, #tpu.memory_space<vmem>>, vector<200x128xf32>
    %c0_2 = arith.constant 0 : index
    %c0_3 = arith.constant 0 : index
    %4 = vector.load %arg3[%c0_2, %c0_3] : memref<200x640xbf16, #tpu.memory_space<vmem>>, vector<200x640xbf16>
    %c0_4 = arith.constant 0 : index
    %c0_5 = arith.constant 0 : index
    %5 = vector.load %arg4[%c0_4, %c0_5] : memref<640x128xbf16, #tpu.memory_space<vmem>>, vector<640x128xbf16>
    %cst = arith.constant dense<0.000000e+00> : vector<200x128xf32>
    %6 = tpu.matmul %4, %5, %cst {dimension_numbers = #tpu.dot_dimension_numbers<[1], [0], [0], [1], [0, 0, 1, 1], [], []>} : vector<200x640xbf16>, vector<640x128xbf16>, vector<200x128xf32> -> vector<200x128xf32>
    %7 = arith.addf %3, %6 : vector<200x128xf32>
    %c0_6 = arith.constant 0 : index
    %c0_7 = arith.constant 0 : index
    %8 = vector.load %arg7[%c0_6, %c0_7] : memref<200x128xf32, #tpu.memory_space<vmem>>, vector<200x128xf32>
    tpu.vector_store %arg7[%c0_6, %c0_7], %7 {strides = array<i32>} : memref<200x128xf32, #tpu.memory_space<vmem>>, vector<200x128xf32>,
    %c4_i32 = arith.constant 4 : i32
    %9 = arith.cmpi eq, %arg2, %c4_i32 : i32
    %10 = arith.extui %9 : i1 to i32
    %c0_i32_8 = arith.constant 0 : i32
    %11 = arith.cmpi ne, %10, %c0_i32_8 : i32
    scf.if %11 {
      %c0_9 = arith.constant 0 : index
      %c0_10 = arith.constant 0 : index
      %12 = vector.load %arg7[%c0_9, %c0_10] : memref<200x128xf32, #tpu.memory_space<vmem>>, vector<200x128xf32>
      %c0_11 = arith.constant 0 : index
      %c0_12 = arith.constant 0 : index
      %13 = vector.load %arg5[%c0_11, %c0_12] : memref<1x128xf32, #tpu.memory_space<vmem>>, vector<1x128xf32>
      %14 = vector.broadcast %13 : vector<1x128xf32> to vector<200x128xf32>
      %15 = arith.addf %12, %14 : vector<200x128xf32>
      %cst_13 = arith.constant 0.000000e+00 : f32
      %16 = vector.broadcast %cst_13 : f32 to vector<200x128xf32>
      %17 = arith.maximumf %15, %16 : vector<200x128xf32>
      %18 = arith.truncf %17 : vector<200x128xf32> to vector<200x128xbf16>
      %c0_14 = arith.constant 0 : index
      %c0_15 = arith.constant 0 : index
      %19 = vector.load %arg6[%c0_14, %c0_15] : memref<200x128xbf16, #tpu.memory_space<vmem>>, vector<200x128xbf16>
      tpu.vector_store %arg6[%c0_14, %c0_15], %18 {strides = array<i32>} : memref<200x128xbf16, #tpu.memory_space<vmem>>, vector<200x128xbf16>,
    } else {
    }
    return
  }
  func.func @transform_0(%arg0: i32, %arg1: i32, %arg2: i32) -> (i32, i32) {
    %c0_i32 = arith.constant 0 : i32
    return %arg0, %arg2 : i32, i32
  }
  func.func @transform_1(%arg0: i32, %arg1: i32, %arg2: i32) -> (i32, i32) {
    %c0_i32 = arith.constant 0 : i32
    return %arg2, %arg1 : i32, i32
  }
  func.func @transform_2(%arg0: i32, %arg1: i32, %arg2: i32) -> (i32, i32) {
    %c0_i32 = arith.constant 0 : i32
    %c0_i32_0 = arith.constant 0 : i32
    return %c0_i32, %arg1 : i32, i32
  }
  func.func @transform_3(%arg0: i32, %arg1: i32, %arg2: i32) -> (i32, i32) {
    %c0_i32 = arith.constant 0 : i32
    return %arg0, %arg1 : i32, i32
  }
}

module attributes {stable_mosaic.version = 11 : i64} {
  func.func @_proj_gates_kernel(%arg0: i32, %arg1: memref<8x1280xbf16, #tpu.memory_space<vmem>>, %arg2: memref<1280x32xbf16, #tpu.memory_space<vmem>>, %arg3: memref<1x32xf32, #tpu.memory_space<vmem>>, %arg4: memref<32x256xbf16, #tpu.memory_space<vmem>>, %arg5: memref<1x256xf32, #tpu.memory_space<vmem>>, %arg6: memref<8x256xf32, #tpu.memory_space<vmem>>, %arg7: memref<8x32xf32, #tpu.memory_space<vmem>>) attributes {dimension_semantics = [#tpu.dimension_semantics<arbitrary>], iteration_bounds = array<i64: 5>, scalar_prefetch = 0 : i64, scratch_operands = 1 : i64, tpu.core_type = #tpu.core_type<tc>, window_params = [{transform_indices = @transform_0, window_bounds = array<i64: 8, 1280>}, {transform_indices = @transform_1, window_bounds = array<i64: 1280, 32>}, {pipeline_mode = #tpu.pipeline_mode<synchronous>, transform_indices = @transform_2, window_bounds = array<i64: 1, 32>}, {pipeline_mode = #tpu.pipeline_mode<synchronous>, transform_indices = @transform_3, window_bounds = array<i64: 32, 256>}, {pipeline_mode = #tpu.pipeline_mode<synchronous>, transform_indices = @transform_4, window_bounds = array<i64: 1, 256>}, {pipeline_mode = #tpu.pipeline_mode<synchronous>, transform_indices = @transform_5, window_bounds = array<i64: 8, 256>}]} {
    %c0_i32 = arith.constant 0 : i32
    %0 = arith.cmpi eq, %arg0, %c0_i32 : i32
    %1 = arith.extui %0 : i1 to i32
    %c0_i32_0 = arith.constant 0 : i32
    %2 = arith.cmpi ne, %1, %c0_i32_0 : i32
    scf.if %2 {
      %cst_9 = arith.constant 0.000000e+00 : f32
      %12 = vector.broadcast %cst_9 : f32 to vector<8x32xf32>
      %c0_10 = arith.constant 0 : index
      %c0_11 = arith.constant 0 : index
      %13 = vector.load %arg7[%c0_10, %c0_11] : memref<8x32xf32, #tpu.memory_space<vmem>>, vector<8x32xf32>
      tpu.vector_store %arg7[%c0_10, %c0_11], %12 {strides = array<i32>} : memref<8x32xf32, #tpu.memory_space<vmem>>, vector<8x32xf32>,
    } else {
    }
    %c0 = arith.constant 0 : index
    %c0_1 = arith.constant 0 : index
    %3 = vector.load %arg7[%c0, %c0_1] : memref<8x32xf32, #tpu.memory_space<vmem>>, vector<8x32xf32>
    %c0_2 = arith.constant 0 : index
    %c0_3 = arith.constant 0 : index
    %4 = vector.load %arg1[%c0_2, %c0_3] : memref<8x1280xbf16, #tpu.memory_space<vmem>>, vector<8x1280xbf16>
    %c0_4 = arith.constant 0 : index
    %c0_5 = arith.constant 0 : index
    %5 = vector.load %arg2[%c0_4, %c0_5] : memref<1280x32xbf16, #tpu.memory_space<vmem>>, vector<1280x32xbf16>
    %cst = arith.constant dense<0.000000e+00> : vector<8x32xf32>
    %6 = tpu.matmul %4, %5, %cst {dimension_numbers = #tpu.dot_dimension_numbers<[1], [0], [0], [1], [0, 0, 1, 1], [], []>} : vector<8x1280xbf16>, vector<1280x32xbf16>, vector<8x32xf32> -> vector<8x32xf32>
    %7 = arith.addf %3, %6 : vector<8x32xf32>
    %c0_6 = arith.constant 0 : index
    %c0_7 = arith.constant 0 : index
    %8 = vector.load %arg7[%c0_6, %c0_7] : memref<8x32xf32, #tpu.memory_space<vmem>>, vector<8x32xf32>
    tpu.vector_store %arg7[%c0_6, %c0_7], %7 {strides = array<i32>} : memref<8x32xf32, #tpu.memory_space<vmem>>, vector<8x32xf32>,
    %c4_i32 = arith.constant 4 : i32
    %9 = arith.cmpi eq, %arg0, %c4_i32 : i32
    %10 = arith.extui %9 : i1 to i32
    %c0_i32_8 = arith.constant 0 : i32
    %11 = arith.cmpi ne, %10, %c0_i32_8 : i32
    scf.if %11 {
      %c0_9 = arith.constant 0 : index
      %c0_10 = arith.constant 0 : index
      %12 = vector.load %arg7[%c0_9, %c0_10] : memref<8x32xf32, #tpu.memory_space<vmem>>, vector<8x32xf32>
      %c0_11 = arith.constant 0 : index
      %c0_12 = arith.constant 0 : index
      %13 = vector.load %arg3[%c0_11, %c0_12] : memref<1x32xf32, #tpu.memory_space<vmem>>, vector<1x32xf32>
      %14 = vector.broadcast %13 : vector<1x32xf32> to vector<8x32xf32>
      %15 = arith.addf %12, %14 : vector<8x32xf32>
      %16 = arith.truncf %15 : vector<8x32xf32> to vector<8x32xbf16>
      %c0_13 = arith.constant 0 : index
      %c0_14 = arith.constant 0 : index
      %17 = vector.load %arg4[%c0_13, %c0_14] : memref<32x256xbf16, #tpu.memory_space<vmem>>, vector<32x256xbf16>
      %cst_15 = arith.constant dense<0.000000e+00> : vector<8x256xf32>
      %18 = tpu.matmul %16, %17, %cst_15 {dimension_numbers = #tpu.dot_dimension_numbers<[1], [0], [0], [1], [0, 0, 1, 1], [], []>} : vector<8x32xbf16>, vector<32x256xbf16>, vector<8x256xf32> -> vector<8x256xf32>
      %c0_16 = arith.constant 0 : index
      %c0_17 = arith.constant 0 : index
      %19 = vector.load %arg5[%c0_16, %c0_17] : memref<1x256xf32, #tpu.memory_space<vmem>>, vector<1x256xf32>
      %20 = vector.broadcast %19 : vector<1x256xf32> to vector<8x256xf32>
      %21 = arith.addf %18, %20 : vector<8x256xf32>
      %c0_18 = arith.constant 0 : index
      %c0_19 = arith.constant 0 : index
      %22 = vector.load %arg6[%c0_18, %c0_19] : memref<8x256xf32, #tpu.memory_space<vmem>>, vector<8x256xf32>
      tpu.vector_store %arg6[%c0_18, %c0_19], %21 {strides = array<i32>} : memref<8x256xf32, #tpu.memory_space<vmem>>, vector<8x256xf32>,
    } else {
    }
    return
  }
  func.func @transform_0(%arg0: i32) -> (i32, i32) {
    %c0_i32 = arith.constant 0 : i32
    %c0_i32_0 = arith.constant 0 : i32
    return %c0_i32, %arg0 : i32, i32
  }
  func.func @transform_1(%arg0: i32) -> (i32, i32) {
    %c0_i32 = arith.constant 0 : i32
    %c0_i32_0 = arith.constant 0 : i32
    return %arg0, %c0_i32 : i32, i32
  }
  func.func @transform_2(%arg0: i32) -> (i32, i32) {
    %c0_i32 = arith.constant 0 : i32
    %c0_i32_0 = arith.constant 0 : i32
    %c0_i32_1 = arith.constant 0 : i32
    return %c0_i32, %c0_i32_0 : i32, i32
  }
  func.func @transform_3(%arg0: i32) -> (i32, i32) {
    %c0_i32 = arith.constant 0 : i32
    %c0_i32_0 = arith.constant 0 : i32
    %c0_i32_1 = arith.constant 0 : i32
    return %c0_i32, %c0_i32_0 : i32, i32
  }
  func.func @transform_4(%arg0: i32) -> (i32, i32) {
    %c0_i32 = arith.constant 0 : i32
    %c0_i32_0 = arith.constant 0 : i32
    %c0_i32_1 = arith.constant 0 : i32
    return %c0_i32, %c0_i32_0 : i32, i32
  }
  func.func @transform_5(%arg0: i32) -> (i32, i32) {
    %c0_i32 = arith.constant 0 : i32
    %c0_i32_0 = arith.constant 0 : i32
    %c0_i32_1 = arith.constant 0 : i32
    return %c0_i32, %c0_i32_0 : i32, i32
  }
}

module attributes {stable_mosaic.version = 11 : i64} {
  func.func @_lstm_fc_kernel(%arg0: memref<4x2x256xf32, #tpu.memory_space<vmem>>, %arg1: memref<64x256xbf16, #tpu.memory_space<vmem>>, %arg2: memref<64x2xbf16, #tpu.memory_space<vmem>>, %arg3: memref<1x2xf32, #tpu.memory_space<vmem>>, %arg4: memref<2x2xf32, #tpu.memory_space<vmem>>) attributes {dimension_semantics = [], scalar_prefetch = 0 : i64, scratch_operands = 0 : i64, tpu.core_type = #tpu.core_type<tc>} {
    %cst = arith.constant 0.000000e+00 : f32
    %0 = vector.broadcast %cst : f32 to vector<2x64xf32>
    %cst_0 = arith.constant 0.000000e+00 : f32
    %1 = vector.broadcast %cst_0 : f32 to vector<2x64xf32>
    %c0 = arith.constant 0 : index
    %c0_1 = arith.constant 0 : index
    %2 = vector.load %arg1[%c0, %c0_1] : memref<64x256xbf16, #tpu.memory_space<vmem>>, vector<64x256xbf16>
    %c0_2 = arith.constant 0 : index
    %c0_3 = arith.constant 0 : index
    %c0_4 = arith.constant 0 : index
    %3 = vector.load %arg0[%c0_2, %c0_3, %c0_4] : memref<4x2x256xf32, #tpu.memory_space<vmem>>, vector<1x2x256xf32>
    %4 = vector.shape_cast %3 : vector<1x2x256xf32> to vector<2x256xf32>
    %5 = arith.truncf %0 : vector<2x64xf32> to vector<2x64xbf16>
    %cst_5 = arith.constant dense<0.000000e+00> : vector<2x256xf32>
    %6 = tpu.matmul %5, %2, %cst_5 {dimension_numbers = #tpu.dot_dimension_numbers<[1], [0], [0], [1], [0, 0, 1, 1], [], []>} : vector<2x64xbf16>, vector<64x256xbf16>, vector<2x256xf32> -> vector<2x256xf32>
    %7 = arith.addf %4, %6 : vector<2x256xf32>
    %8 = vector.extract_strided_slice %7 {offsets = [0, 0], sizes = [2, 192], strides = [1, 1]} : vector<2x256xf32> to vector<2x192xf32>
    %9 = arith.negf %8 : vector<2x192xf32>
    %10 = math.exp %9 : vector<2x192xf32>
    %cst_6 = arith.constant 1.000000e+00 : f32
    %11 = vector.broadcast %cst_6 : f32 to vector<2x192xf32>
    %12 = arith.addf %11, %10 : vector<2x192xf32>
    %13 = arith.divf %11, %12 : vector<2x192xf32>
    %14 = vector.extract_strided_slice %13 {offsets = [0, 0], sizes = [2, 64], strides = [1, 1]} : vector<2x192xf32> to vector<2x64xf32>
    %15 = vector.extract_strided_slice %13 {offsets = [0, 64], sizes = [2, 64], strides = [1, 1]} : vector<2x192xf32> to vector<2x64xf32>
    %16 = vector.extract_strided_slice %13 {offsets = [0, 128], sizes = [2, 64], strides = [1, 1]} : vector<2x192xf32> to vector<2x64xf32>
    %17 = vector.extract_strided_slice %7 {offsets = [0, 192], sizes = [2, 64], strides = [1, 1]} : vector<2x256xf32> to vector<2x64xf32>
    %18 = math.tanh %17 : vector<2x64xf32>
    %19 = arith.mulf %15, %1 : vector<2x64xf32>
    %20 = arith.mulf %14, %18 : vector<2x64xf32>
    %21 = arith.addf %19, %20 : vector<2x64xf32>
    %22 = math.tanh %21 : vector<2x64xf32>
    %23 = arith.mulf %16, %22 : vector<2x64xf32>
    %c1 = arith.constant 1 : index
    %c0_7 = arith.constant 0 : index
    %c0_8 = arith.constant 0 : index
    %24 = vector.load %arg0[%c1, %c0_7, %c0_8] : memref<4x2x256xf32, #tpu.memory_space<vmem>>, vector<1x2x256xf32>
    %25 = vector.shape_cast %24 : vector<1x2x256xf32> to vector<2x256xf32>
    %26 = arith.truncf %23 : vector<2x64xf32> to vector<2x64xbf16>
    %cst_9 = arith.constant dense<0.000000e+00> : vector<2x256xf32>
    %27 = tpu.matmul %26, %2, %cst_9 {dimension_numbers = #tpu.dot_dimension_numbers<[1], [0], [0], [1], [0, 0, 1, 1], [], []>} : vector<2x64xbf16>, vector<64x256xbf16>, vector<2x256xf32> -> vector<2x256xf32>
    %28 = arith.addf %25, %27 : vector<2x256xf32>
    %29 = vector.extract_strided_slice %28 {offsets = [0, 0], sizes = [2, 192], strides = [1, 1]} : vector<2x256xf32> to vector<2x192xf32>
    %30 = arith.negf %29 : vector<2x192xf32>
    %31 = math.exp %30 : vector<2x192xf32>
    %cst_10 = arith.constant 1.000000e+00 : f32
    %32 = vector.broadcast %cst_10 : f32 to vector<2x192xf32>
    %33 = arith.addf %32, %31 : vector<2x192xf32>
    %34 = arith.divf %32, %33 : vector<2x192xf32>
    %35 = vector.extract_strided_slice %34 {offsets = [0, 0], sizes = [2, 64], strides = [1, 1]} : vector<2x192xf32> to vector<2x64xf32>
    %36 = vector.extract_strided_slice %34 {offsets = [0, 64], sizes = [2, 64], strides = [1, 1]} : vector<2x192xf32> to vector<2x64xf32>
    %37 = vector.extract_strided_slice %34 {offsets = [0, 128], sizes = [2, 64], strides = [1, 1]} : vector<2x192xf32> to vector<2x64xf32>
    %38 = vector.extract_strided_slice %28 {offsets = [0, 192], sizes = [2, 64], strides = [1, 1]} : vector<2x256xf32> to vector<2x64xf32>
    %39 = math.tanh %38 : vector<2x64xf32>
    %40 = arith.mulf %36, %21 : vector<2x64xf32>
    %41 = arith.mulf %35, %39 : vector<2x64xf32>
    %42 = arith.addf %40, %41 : vector<2x64xf32>
    %43 = math.tanh %42 : vector<2x64xf32>
    %44 = arith.mulf %37, %43 : vector<2x64xf32>
    %c2 = arith.constant 2 : index
    %c0_11 = arith.constant 0 : index
    %c0_12 = arith.constant 0 : index
    %45 = vector.load %arg0[%c2, %c0_11, %c0_12] : memref<4x2x256xf32, #tpu.memory_space<vmem>>, vector<1x2x256xf32>
    %46 = vector.shape_cast %45 : vector<1x2x256xf32> to vector<2x256xf32>
    %47 = arith.truncf %44 : vector<2x64xf32> to vector<2x64xbf16>
    %cst_13 = arith.constant dense<0.000000e+00> : vector<2x256xf32>
    %48 = tpu.matmul %47, %2, %cst_13 {dimension_numbers = #tpu.dot_dimension_numbers<[1], [0], [0], [1], [0, 0, 1, 1], [], []>} : vector<2x64xbf16>, vector<64x256xbf16>, vector<2x256xf32> -> vector<2x256xf32>
    %49 = arith.addf %46, %48 : vector<2x256xf32>
    %50 = vector.extract_strided_slice %49 {offsets = [0, 0], sizes = [2, 192], strides = [1, 1]} : vector<2x256xf32> to vector<2x192xf32>
    %51 = arith.negf %50 : vector<2x192xf32>
    %52 = math.exp %51 : vector<2x192xf32>
    %cst_14 = arith.constant 1.000000e+00 : f32
    %53 = vector.broadcast %cst_14 : f32 to vector<2x192xf32>
    %54 = arith.addf %53, %52 : vector<2x192xf32>
    %55 = arith.divf %53, %54 : vector<2x192xf32>
    %56 = vector.extract_strided_slice %55 {offsets = [0, 0], sizes = [2, 64], strides = [1, 1]} : vector<2x192xf32> to vector<2x64xf32>
    %57 = vector.extract_strided_slice %55 {offsets = [0, 64], sizes = [2, 64], strides = [1, 1]} : vector<2x192xf32> to vector<2x64xf32>
    %58 = vector.extract_strided_slice %55 {offsets = [0, 128], sizes = [2, 64], strides = [1, 1]} : vector<2x192xf32> to vector<2x64xf32>
    %59 = vector.extract_strided_slice %49 {offsets = [0, 192], sizes = [2, 64], strides = [1, 1]} : vector<2x256xf32> to vector<2x64xf32>
    %60 = math.tanh %59 : vector<2x64xf32>
    %61 = arith.mulf %57, %42 : vector<2x64xf32>
    %62 = arith.mulf %56, %60 : vector<2x64xf32>
    %63 = arith.addf %61, %62 : vector<2x64xf32>
    %64 = math.tanh %63 : vector<2x64xf32>
    %65 = arith.mulf %58, %64 : vector<2x64xf32>
    %c3 = arith.constant 3 : index
    %c0_15 = arith.constant 0 : index
    %c0_16 = arith.constant 0 : index
    %66 = vector.load %arg0[%c3, %c0_15, %c0_16] : memref<4x2x256xf32, #tpu.memory_space<vmem>>, vector<1x2x256xf32>
    %67 = vector.shape_cast %66 : vector<1x2x256xf32> to vector<2x256xf32>
    %68 = arith.truncf %65 : vector<2x64xf32> to vector<2x64xbf16>
    %cst_17 = arith.constant dense<0.000000e+00> : vector<2x256xf32>
    %69 = tpu.matmul %68, %2, %cst_17 {dimension_numbers = #tpu.dot_dimension_numbers<[1], [0], [0], [1], [0, 0, 1, 1], [], []>} : vector<2x64xbf16>, vector<64x256xbf16>, vector<2x256xf32> -> vector<2x256xf32>
    %70 = arith.addf %67, %69 : vector<2x256xf32>
    %71 = vector.extract_strided_slice %70 {offsets = [0, 0], sizes = [2, 192], strides = [1, 1]} : vector<2x256xf32> to vector<2x192xf32>
    %72 = arith.negf %71 : vector<2x192xf32>
    %73 = math.exp %72 : vector<2x192xf32>
    %cst_18 = arith.constant 1.000000e+00 : f32
    %74 = vector.broadcast %cst_18 : f32 to vector<2x192xf32>
    %75 = arith.addf %74, %73 : vector<2x192xf32>
    %76 = arith.divf %74, %75 : vector<2x192xf32>
    %77 = vector.extract_strided_slice %76 {offsets = [0, 0], sizes = [2, 64], strides = [1, 1]} : vector<2x192xf32> to vector<2x64xf32>
    %78 = vector.extract_strided_slice %76 {offsets = [0, 64], sizes = [2, 64], strides = [1, 1]} : vector<2x192xf32> to vector<2x64xf32>
    %79 = vector.extract_strided_slice %76 {offsets = [0, 128], sizes = [2, 64], strides = [1, 1]} : vector<2x192xf32> to vector<2x64xf32>
    %80 = vector.extract_strided_slice %70 {offsets = [0, 192], sizes = [2, 64], strides = [1, 1]} : vector<2x256xf32> to vector<2x64xf32>
    %81 = math.tanh %80 : vector<2x64xf32>
    %82 = arith.mulf %78, %63 : vector<2x64xf32>
    %83 = arith.mulf %77, %81 : vector<2x64xf32>
    %84 = arith.addf %82, %83 : vector<2x64xf32>
    %85 = math.tanh %84 : vector<2x64xf32>
    %86 = arith.mulf %79, %85 : vector<2x64xf32>
    %87 = arith.truncf %86 : vector<2x64xf32> to vector<2x64xbf16>
    %c0_19 = arith.constant 0 : index
    %c0_20 = arith.constant 0 : index
    %88 = vector.load %arg2[%c0_19, %c0_20] : memref<64x2xbf16, #tpu.memory_space<vmem>>, vector<64x2xbf16>
    %cst_21 = arith.constant dense<0.000000e+00> : vector<2x2xf32>
    %89 = tpu.matmul %87, %88, %cst_21 {dimension_numbers = #tpu.dot_dimension_numbers<[1], [0], [0], [1], [0, 0, 1, 1], [], []>} : vector<2x64xbf16>, vector<64x2xbf16>, vector<2x2xf32> -> vector<2x2xf32>
    %c0_22 = arith.constant 0 : index
    %c0_23 = arith.constant 0 : index
    %90 = vector.load %arg3[%c0_22, %c0_23] : memref<1x2xf32, #tpu.memory_space<vmem>>, vector<1x2xf32>
    %91 = vector.broadcast %90 : vector<1x2xf32> to vector<2x2xf32>
    %92 = arith.addf %89, %91 : vector<2x2xf32>
    %c0_24 = arith.constant 0 : index
    %c0_25 = arith.constant 0 : index
    %93 = vector.load %arg4[%c0_24, %c0_25] : memref<2x2xf32, #tpu.memory_space<vmem>>, vector<2x2xf32>
    tpu.vector_store %arg4[%c0_24, %c0_25], %92 {strides = array<i32>} : memref<2x2xf32, #tpu.memory_space<vmem>>, vector<2x2xf32>,
    return
  }
}

</mosaic_0001>

<bundles_post_ra>
// kernel: offline_cnn_lstm_forward.4
= control target key start
LH: loop header
LB: loop body
LE: loop exit
PB: predicated region body
PF: predicated region fallthrough
CT: control target
= control target key end

     0   :  { %s5836_s12 = smov 0   ;;  %s5838_s13 = smov 0   ;;  %s7426_s0 = inlined_call_operand.vmem [shape: bf16[4,1352,32], index: 0, kind: input, shape index: {}]   ;;  %s7427_s1 = inlined_call_operand.vmem [shape: bf16[32,128], index: 1, kind: input, shape index: {}]   ;;  %s7428_s2 = inlined_call_operand.vmem [shape: f32[1,128], index: 2, kind: input, shape index: {}]   ;;  %s7429_s3 = inlined_call_operand.vmem [shape: bf16[1352,128], index: 3, kind: output, shape index: {}]  }
   0x1   :  { %s5840_s14 = smov 0  }
   0x2 LB: > { %s5852_s15 = sadd.s32 4294967295, %s5750_s14   ;;  %s5855_s16 = sadd.s32 1, %s5750_s14   ;;  %s5750_s14 = sphi %s5840_s14, %s7757_s14   ;;  %s5746_s13 = sphi %s5838_s13, %s7756_s13   ;;  %s5742_s12 = sphi %s5836_s12, %s7755_s12  }
   0x3   : > { %s17_s17 = ssub.s32 %s5750_s14, %s5855_s16  ;;  %s20_s18 = sadd.s32 1, %s5746_s13 }
   0x4   : > { %p18_p0 = scmp.eq.s32.totalorder %s17_s17, 0  ;;  %p27_p1 = scmp.ne.s32.totalorder %s5746_s13, %s5742_s12 }
   0x5   : > { %p28_p2 = scmp.eq.s32.totalorder %s5750_s14, 0  ;;  %p99_p3 = scmp.eq.s32.totalorder %s5852_s15, 2 }
   0x6   : > { %s5865_s19 = scalar_select %p18_p0, %s5746_s13, %s20_s18  }
   0x7   : > { %p29_p4 = por %p28_p2, %p27_p1  ;;  %p5867_p5 = por %p99_p3, %p27_p1 }
   0x8   : > { %p4161_p6 = scmp.ge.s32.totalorder %s5750_s14, 3 }
   0xa   : > { %127 = sbr.rel (%p4161_p6) target bundleno = 119 (0x77), region = 24 }
  0x11   : > { %130 = sbr.rel (!%p29_p4) target bundleno = 119 (0x77), region = 28  ;;  %s132_s21 = sand.u32 (%p29_p4), 1, %s5746_s13  }
  0x12   : > { %s4163_s22 = sshll.u32 (%p29_p4), %s5750_s14, 6  ;;  %s4162_s23 = sshll.u32 (%p29_p4), %s132_s21, 10 }
  0x13   : > { %s136_s24 = ssub.s32 (%p29_p4), 169, %s4163_s22  ;;  %s4712_s25 = sshll.u32 (%p29_p4), %s5750_s14, 8 }
  0x14   : > { %p137_p7 = scmp.lt.s32.totalorder (%p29_p4), %s136_s24, 64  ;;  %s5880_s28 = scalar_lea.vmem (%p29_p4), %s7426_s0, %s4712_s25  }
  0x15   : > { %s5883_s30 = scalar_lea.vmem (%p29_p4), [#allocation2], %s4162_s23  }
  0x18   : > { %s7759_s24 = smov (!%p137_p7, %s136_s24), 64 }
  0x19   : > { %s4164_s29 = sshll.u32 %s7759_s24, 8 }
  0x1a   : > { %p4167_p8 = scmp.eq.s32.totalorder %s4164_s29, 0 }
  0x1b   : > { %s5886_s4 = sshrl.u32 (!%p4167_p8), %s7759_s24, 4 }
  0x1c   : > { %145 = sbr.rel (%p4167_p8) target bundleno = 119 (0x77), region = 32  ;;  %p4168_p9 = scmp.le.s32.totalorder (!%p4167_p8), %s5886_s4, 0 }
  0x23   : > { %4087 = sbr.rel (%p4168_p9) target bundleno = 94 (0x5e), region = 196  ;;  %s7515_s5 = smov (!%p4168_p9), %s5883_s30 }
  0x24   : > { %s7516_s6 = smov (!%p4168_p9), %s5880_s28  ;;  %s5895_s7 = smov (!%p4168_p9), 0  }
  0x25   : > { %s5897_s8 = smov (!%p4168_p9), 0  }
  0x2a LB: >> { %v161_v0 = vld [vmem:[%s5758_s6] sm:$0xf]  ;;  %v163_v1 = vld [vmem:[%s5758_s6 + $0x4] sm:$0xf]  ;;  %v165_v2 = vld [vmem:[%s5758_s6 + $0x8] sm:$0xf]  ;;  %s5766_s8 = sphi %s5897_s8, %s155_s8   ;;  %s5762_s7 = sphi %s5895_s7, %s7517_s7   ;;  %s5758_s6 = sphi %s7516_s6, %s294_s6   ;;  %s5754_s5 = sphi %s7515_s5, %s295_s5  }
  0x2b   : >> { %162 = vst [vmem:[%s5754_s5] sm:$0xf] %v161_v0  ;;  %164 = vst [vmem:[%s5754_s5 + $0x4] sm:$0xf] %v163_v1  ;;  %v167_v3 = vld [vmem:[%s5758_s6 + $0xc] sm:$0xf]  ;;  %s289_s9 = sadd.s32 1, %s5762_s7 }
  0x2c   : >> { %166 = vst [vmem:[%s5754_s5 + $0x8] sm:$0xf] %v165_v2  ;;  %v169_v4 = vld [vmem:[%s5758_s6 + $0x10] sm:$0xf]  ;;  %v171_v5 = vld [vmem:[%s5758_s6 + $0x14] sm:$0xf]  ;;  %p290_p10 = scmp.ge.s32.totalorder %s289_s9, %s5886_s4 }
  0x2d   : >> { %168 = vst [vmem:[%s5754_s5 + $0xc] sm:$0xf] %v167_v3  ;;  %170 = vst [vmem:[%s5754_s5 + $0x10] sm:$0xf] %v169_v4  ;;  %v173_v6 = vld [vmem:[%s5758_s6 + $0x18] sm:$0xf] }
  0x2e   : >> { %172 = vst [vmem:[%s5754_s5 + $0x14] sm:$0xf] %v171_v5  ;;  %v175_v7 = vld [vmem:[%s5758_s6 + $0x1c] sm:$0xf]  ;;  %v177_v8 = vld [vmem:[%s5758_s6 + $0x20] sm:$0xf] }
  0x2f   : >> { %174 = vst [vmem:[%s5754_s5 + $0x18] sm:$0xf] %v173_v6  ;;  %176 = vst [vmem:[%s5754_s5 + $0x1c] sm:$0xf] %v175_v7  ;;  %v179_v9 = vld [vmem:[%s5758_s6 + $0x24] sm:$0xf] }
  0x30   : >> { %178 = vst [vmem:[%s5754_s5 + $0x20] sm:$0xf] %v177_v8  ;;  %v181_v10 = vld [vmem:[%s5758_s6 + $0x28] sm:$0xf]  ;;  %v183_v11 = vld [vmem:[%s5758_s6 + $0x2c] sm:$0xf] }
  0x31   : >> { %180 = vst [vmem:[%s5754_s5 + $0x24] sm:$0xf] %v179_v9  ;;  %182 = vst [vmem:[%s5754_s5 + $0x28] sm:$0xf] %v181_v10  ;;  %v185_v12 = vld [vmem:[%s5758_s6 + $0x30] sm:$0xf] }
  0x32   : >> { %184 = vst [vmem:[%s5754_s5 + $0x2c] sm:$0xf] %v183_v11  ;;  %v187_v13 = vld [vmem:[%s5758_s6 + $0x34] sm:$0xf]  ;;  %v189_v14 = vld [vmem:[%s5758_s6 + $0x38] sm:$0xf] }
  0x33   : >> { %186 = vst [vmem:[%s5754_s5 + $0x30] sm:$0xf] %v185_v12  ;;  %188 = vst [vmem:[%s5754_s5 + $0x34] sm:$0xf] %v187_v13  ;;  %v191_v15 = vld [vmem:[%s5758_s6 + $0x3c] sm:$0xf] }
  0x34   : >> { %190 = vst [vmem:[%s5754_s5 + $0x38] sm:$0xf] %v189_v14  ;;  %v193_v16 = vld [vmem:[%s5758_s6 + $0x2a4] sm:$0xf]  ;;  %v195_v17 = vld [vmem:[%s5758_s6 + $0x2a8] sm:$0xf] }
  0x35   : >> { %192 = vst [vmem:[%s5754_s5 + $0x3c] sm:$0xf] %v191_v15  ;;  %194 = vst [vmem:[%s5754_s5 + $0x100] sm:$0xf] %v193_v16  ;;  %v197_v18 = vld [vmem:[%s5758_s6 + $0x2ac] sm:$0xf] }
  0x36   : >> { %196 = vst [vmem:[%s5754_s5 + $0x104] sm:$0xf] %v195_v17  ;;  %v199_v19 = vld [vmem:[%s5758_s6 + $0x2b0] sm:$0xf]  ;;  %v201_v20 = vld [vmem:[%s5758_s6 + $0x2b4] sm:$0xf] }
  0x37   : >> { %198 = vst [vmem:[%s5754_s5 + $0x108] sm:$0xf] %v197_v18  ;;  %200 = vst [vmem:[%s5754_s5 + $0x10c] sm:$0xf] %v199_v19  ;;  %v203_v21 = vld [vmem:[%s5758_s6 + $0x2b8] sm:$0xf] }
  0x38   : >> { %202 = vst [vmem:[%s5754_s5 + $0x110] sm:$0xf] %v201_v20  ;;  %v205_v22 = vld [vmem:[%s5758_s6 + $0x2bc] sm:$0xf]  ;;  %v207_v23 = vld [vmem:[%s5758_s6 + $0x2c0] sm:$0xf] }
  0x39   : >> { %204 = vst [vmem:[%s5754_s5 + $0x114] sm:$0xf] %v203_v21  ;;  %206 = vst [vmem:[%s5754_s5 + $0x118] sm:$0xf] %v205_v22  ;;  %v209_v24 = vld [vmem:[%s5758_s6 + $0x2c4] sm:$0xf] }
  0x3a   : >> { %208 = vst [vmem:[%s5754_s5 + $0x11c] sm:$0xf] %v207_v23  ;;  %v211_v25 = vld [vmem:[%s5758_s6 + $0x2c8] sm:$0xf]  ;;  %v213_v26 = vld [vmem:[%s5758_s6 + $0x2cc] sm:$0xf] }
  0x3b   : >> { %210 = vst [vmem:[%s5754_s5 + $0x120] sm:$0xf] %v209_v24  ;;  %212 = vst [vmem:[%s5754_s5 + $0x124] sm:$0xf] %v211_v25  ;;  %v215_v27 = vld [vmem:[%s5758_s6 + $0x2d0] sm:$0xf] }
  0x3c   : >> { %214 = vst [vmem:[%s5754_s5 + $0x128] sm:$0xf] %v213_v26  ;;  %v217_v28 = vld [vmem:[%s5758_s6 + $0x2d4] sm:$0xf]  ;;  %v219_v29 = vld [vmem:[%s5758_s6 + $0x2d8] sm:$0xf] }
  0x3d   : >> { %216 = vst [vmem:[%s5754_s5 + $0x12c] sm:$0xf] %v215_v27  ;;  %218 = vst [vmem:[%s5754_s5 + $0x130] sm:$0xf] %v217_v28  ;;  %v221_v30 = vld [vmem:[%s5758_s6 + $0x2dc] sm:$0xf] }
  0x3e   : >> { %220 = vst [vmem:[%s5754_s5 + $0x134] sm:$0xf] %v219_v29  ;;  %v223_v31 = vld [vmem:[%s5758_s6 + $0x2e0] sm:$0xf]  ;;  %v225_v32 = vld [vmem:[%s5758_s6 + $0x548] sm:$0xf] }
  0x3f   : >> { %222 = vst [vmem:[%s5754_s5 + $0x138] sm:$0xf] %v221_v30  ;;  %224 = vst [vmem:[%s5754_s5 + $0x13c] sm:$0xf] %v223_v31  ;;  %v227_v33 = vld [vmem:[%s5758_s6 + $0x54c] sm:$0xf] }
  0x40   : >> { %226 = vst [vmem:[%s5754_s5 + $0x200] sm:$0xf] %v225_v32  ;;  %v229_v34 = vld [vmem:[%s5758_s6 + $0x550] sm:$0xf]  ;;  %v231_v35 = vld [vmem:[%s5758_s6 + $0x554] sm:$0xf] }
  0x41   : >> { %228 = vst [vmem:[%s5754_s5 + $0x204] sm:$0xf] %v227_v33  ;;  %230 = vst [vmem:[%s5754_s5 + $0x208] sm:$0xf] %v229_v34  ;;  %v233_v36 = vld [vmem:[%s5758_s6 + $0x558] sm:$0xf] }
  0x42   : >> { %232 = vst [vmem:[%s5754_s5 + $0x20c] sm:$0xf] %v231_v35  ;;  %v235_v37 = vld [vmem:[%s5758_s6 + $0x55c] sm:$0xf]  ;;  %v237_v38 = vld [vmem:[%s5758_s6 + $0x560] sm:$0xf] }
  0x43   : >> { %234 = vst [vmem:[%s5754_s5 + $0x210] sm:$0xf] %v233_v36  ;;  %236 = vst [vmem:[%s5754_s5 + $0x214] sm:$0xf] %v235_v37  ;;  %v239_v39 = vld [vmem:[%s5758_s6 + $0x564] sm:$0xf] }
  0x44   : >> { %238 = vst [vmem:[%s5754_s5 + $0x218] sm:$0xf] %v237_v38  ;;  %v241_v40 = vld [vmem:[%s5758_s6 + $0x568] sm:$0xf]  ;;  %v243_v41 = vld [vmem:[%s5758_s6 + $0x56c] sm:$0xf] }
  0x45   : >> { %240 = vst [vmem:[%s5754_s5 + $0x21c] sm:$0xf] %v239_v39  ;;  %242 = vst [vmem:[%s5754_s5 + $0x220] sm:$0xf] %v241_v40  ;;  %v245_v42 = vld [vmem:[%s5758_s6 + $0x570] sm:$0xf] }
  0x46   : >> { %244 = vst [vmem:[%s5754_s5 + $0x224] sm:$0xf] %v243_v41  ;;  %v247_v43 = vld [vmem:[%s5758_s6 + $0x574] sm:$0xf]  ;;  %v249_v44 = vld [vmem:[%s5758_s6 + $0x578] sm:$0xf] }
  0x47   : >> { %246 = vst [vmem:[%s5754_s5 + $0x228] sm:$0xf] %v245_v42  ;;  %248 = vst [vmem:[%s5754_s5 + $0x22c] sm:$0xf] %v247_v43  ;;  %v251_v45 = vld [vmem:[%s5758_s6 + $0x57c] sm:$0xf] }
  0x48   : >> { %250 = vst [vmem:[%s5754_s5 + $0x230] sm:$0xf] %v249_v44  ;;  %v253_v46 = vld [vmem:[%s5758_s6 + $0x580] sm:$0xf]  ;;  %v255_v47 = vld [vmem:[%s5758_s6 + $0x584] sm:$0xf] }
  0x49   : >> { %252 = vst [vmem:[%s5754_s5 + $0x234] sm:$0xf] %v251_v45  ;;  %254 = vst [vmem:[%s5754_s5 + $0x238] sm:$0xf] %v253_v46  ;;  %v257_v48 = vld [vmem:[%s5758_s6 + $0x7ec] sm:$0xf] }
  0x4a   : >> { %256 = vst [vmem:[%s5754_s5 + $0x23c] sm:$0xf] %v255_v47  ;;  %v259_v49 = vld [vmem:[%s5758_s6 + $0x7f0] sm:$0xf]  ;;  %v261_v50 = vld [vmem:[%s5758_s6 + $0x7f4] sm:$0xf] }
  0x4b   : >> { %258 = vst [vmem:[%s5754_s5 + $0x300] sm:$0xf] %v257_v48  ;;  %260 = vst [vmem:[%s5754_s5 + $0x304] sm:$0xf] %v259_v49  ;;  %v263_v51 = vld [vmem:[%s5758_s6 + $0x7f8] sm:$0xf] }
  0x4c   : >> { %262 = vst [vmem:[%s5754_s5 + $0x308] sm:$0xf] %v261_v50  ;;  %v265_v52 = vld [vmem:[%s5758_s6 + $0x7fc] sm:$0xf]  ;;  %v267_v53 = vld [vmem:[%s5758_s6 + $0x800] sm:$0xf] }
  0x4d   : >> { %264 = vst [vmem:[%s5754_s5 + $0x30c] sm:$0xf] %v263_v51  ;;  %266 = vst [vmem:[%s5754_s5 + $0x310] sm:$0xf] %v265_v52  ;;  %v269_v54 = vld [vmem:[%s5758_s6 + $0x804] sm:$0xf] }
  0x4e   : >> { %268 = vst [vmem:[%s5754_s5 + $0x314] sm:$0xf] %v267_v53  ;;  %v271_v55 = vld [vmem:[%s5758_s6 + $0x808] sm:$0xf]  ;;  %v273_v56 = vld [vmem:[%s5758_s6 + $0x80c] sm:$0xf] }
  0x4f   : >> { %270 = vst [vmem:[%s5754_s5 + $0x318] sm:$0xf] %v269_v54  ;;  %272 = vst [vmem:[%s5754_s5 + $0x31c] sm:$0xf] %v271_v55  ;;  %v275_v57 = vld [vmem:[%s5758_s6 + $0x810] sm:$0xf] }
  0x50   : >> { %274 = vst [vmem:[%s5754_s5 + $0x320] sm:$0xf] %v273_v56  ;;  %v277_v58 = vld [vmem:[%s5758_s6 + $0x814] sm:$0xf]  ;;  %v279_v59 = vld [vmem:[%s5758_s6 + $0x818] sm:$0xf] }
  0x51   : >> { %276 = vst [vmem:[%s5754_s5 + $0x324] sm:$0xf] %v275_v57  ;;  %278 = vst [vmem:[%s5754_s5 + $0x328] sm:$0xf] %v277_v58  ;;  %v281_v60 = vld [vmem:[%s5758_s6 + $0x81c] sm:$0xf] }
  0x52   : >> { %280 = vst [vmem:[%s5754_s5 + $0x32c] sm:$0xf] %v279_v59  ;;  %v283_v61 = vld [vmem:[%s5758_s6 + $0x820] sm:$0xf]  ;;  %v285_v62 = vld [vmem:[%s5758_s6 + $0x824] sm:$0xf] }
  0x53   : >> { %282 = vst [vmem:[%s5754_s5 + $0x330] sm:$0xf] %v281_v60  ;;  %284 = vst [vmem:[%s5754_s5 + $0x334] sm:$0xf] %v283_v61  ;;  %v287_v63 = vld [vmem:[%s5758_s6 + $0x828] sm:$0xf] }
  0x54   : >> { %286 = vst [vmem:[%s5754_s5 + $0x338] sm:$0xf] %v285_v62  ;;  %288 = vst [vmem:[%s5754_s5 + $0x33c] sm:$0xf] %v287_v63  ;;  %s7761_s9 = smov (%p290_p10, %s289_s9), 0  ;;  %s155_s8 = sadd.s32 1, %s5766_s8  }
  0x55   : >> { %s4169_s10 = sshll.u32 %s7761_s9, 6  ;;  %p154_p11 = scmp.ge.s32.totalorder %s155_s8, %s5886_s4 }
  0x56   : >> { %s294_s6 = scalar_lea.vmem %s5880_s28, %s4169_s10   ;;  %s295_s5 = scalar_lea.vmem %s5883_s30, %s4169_s10 [#allocation2]  }
  0x57   : >> { %s7517_s7 = smov %s7761_s9  ;;  %157 = sbr.rel (!%p154_p11) target bundleno = 42 (0x2a), region = 202 }
  0x5e PF: > { %s6054_s11 = sand.u32 15, %s7759_s24   ;;  %s4713_s17 = sshll.u32 %s5886_s4, 6 }
  0x5f   : > { %s6058_s18 = scalar_lea.vmem %s5880_s28, %s4713_s17   ;;  %s6061_s21 = scalar_lea.vmem %s5883_s30, %s4713_s17 [#allocation2]  }
  0x60   : > { %p4174_p12 = scmp.le.s32.totalorder %s6054_s11, 0 }
  0x61   : > { %s7518_s22 = smov (!%p4174_p12), %s6061_s21  ;;  %s7519_s23 = smov (!%p4174_p12), %s6058_s18 }
  0x62   : > { %4101 = sbr.rel (%p4174_p12) target bundleno = 119 (0x77), region = 207  ;;  %s5776_s25 = smov (!%p4174_p12), 0  }
  0x63   : > { %s5780_s26 = smov (!%p4174_p12), 0  }
  0x69 LB: >> { %v312_v0 = vld [vmem:[%s5774_s23] sm:$0xf]  ;;  %v314_v1 = vld [vmem:[%s5774_s23 + $0x2a4] sm:$0xf]  ;;  %v316_v2 = vld [vmem:[%s5774_s23 + $0x548] sm:$0xf]  ;;  %s5782_s26 = sphi %s5780_s26, %s306_s26   ;;  %s5778_s25 = sphi %s5776_s25, %s5777_s25   ;;  %s5774_s23 = sphi %s7519_s23, %s325_s23   ;;  %s5770_s22 = sphi %s7518_s22, %s326_s22  }
  0x6a   : >> { %313 = vst [vmem:[%s5770_s22] sm:$0xf] %v312_v0  ;;  %315 = vst [vmem:[%s5770_s22 + $0x100] sm:$0xf] %v314_v1  ;;  %v318_v3 = vld [vmem:[%s5774_s23 + $0x7ec] sm:$0xf]  ;;  %s320_s24 = sadd.s32 1, %s5778_s25 }
  0x6b   : >> { %317 = vst [vmem:[%s5770_s22 + $0x200] sm:$0xf] %v316_v2  ;;  %319 = vst [vmem:[%s5770_s22 + $0x300] sm:$0xf] %v318_v3  ;;  %p321_p13 = scmp.ge.s32.totalorder %s320_s24, %s6054_s11  ;;  %s306_s26 = sadd.s32 1, %s5782_s26  }
  0x6c   : >> { %p305_p0 = scmp.ge.s32.totalorder %s306_s26, %s6054_s11 }
  0x6d   : >> { %s7763_s24 = smov (%p321_p13, %s320_s24), 0 }
  0x6e   : >> { %s4175_s27 = sshll.u32 %s7763_s24, 2  ;;  %s5777_s25 = smov %s7763_s24  }
  0x6f   : >> { %s325_s23 = scalar_lea.vmem %s6058_s18, %s4175_s27   ;;  %s326_s22 = scalar_lea.vmem %s6061_s21, %s4175_s27 [#allocation2]  }
  0x70   : > { %308 = sbr.rel (!%p305_p0) target bundleno = 105 (0x69), region = 213 }
  0x77 PF: > { %p4177_p1 = scmp.ge.s32.totalorder %s5750_s14, 1  ;;  %p548_p2 = scmp.lt.s32.totalorder %s5750_s14, 4 }
  0x79   : > { %p549_p3 = pnand %p4177_p1, %p548_p2 }
  0x7b   : > { %552 = sbr.rel (%p549_p3) target bundleno = 704 (0x2c0), region = 90 }
  0x82   : > { %v5533_v4 = vld [vmem:[%s7427_s1] sm:$0xff]   ;;  %s555_s30 = sand.u32 1, %s5742_s12   ;;  %v5534_v5 = vld [vmem:[%s7427_s1 + $0x8] sm:$0xff]   ;;  %vm835_vm0 = vcmask 261120   ;;  %s4696_s17 = sshll.u32 (%p5867_p5), %s5852_s15, 6 }
  0x83   : > { %s4178_s6 = sshll.u32 %s555_s30, 10  ;;  %5109 = vmatprep.subr.bf16.mxu0 %v5533_v4  ;;  %5177 = vmatprep.subr.bf16.mxu1 %v5533_v4  ;;  %s4179_s9 = sshll.u32 %s555_s30, 8 }
  0x84   : > { %5110 = vmatpush3.bf16.msra.mxu0 %v5533_v4  ;;  %5178 = vmatpush3.bf16.msra.mxu1 %v5533_v4  ;;  %s6091_s14 = scalar_lea.vmem [#allocation2], %s4178_s6  ;;  %s6900_s12 = scalar_lea.vmem [#allocation3], %s4179_s9  }
  0x85   : > { %v5535_v6 = vld [vmem:[%s6091_s14] sm:$0xff]   ;;  %5111 = vmatprep.subr.bf16.mxu0 %v5534_v5  ;;  %5179 = vmatprep.subr.bf16.mxu1 %v5534_v5  ;;  %v5537_v8 = vld [vmem:[%s6091_s14 + $0x8] sm:$0xff]   ;;  %v5539_v10 = vld [vmem:[%s6091_s14 + $0x10] sm:$0xff]   ;;  %s4779_s18 = sshll.u32 (%p5867_p5), %s5852_s15, 8  ;;  %s3635_s21 = ssub.s32 (%p5867_p5), 169, %s4696_s17 }
  0x86   : > { %v5536_v7 = vld [vmem:[%s6091_s14 + $0x100] sm:$0xff]   ;;  %5113 = vmatprep.mubr.msk.bf16.mxu0 %vm835_vm0, %v5535_v6  ;;  %v5538_v9 = vld [vmem:[%s6091_s14 + $0x108] sm:$0xff]   ;;  %v5540_v11 = vld [vmem:[%s6091_s14 + $0x110] sm:$0xff]   ;;  %s7234_s25 = scalar_lea.vmem (%p5867_p5), %s7429_s3, %s4779_s18   ;;  %p3636_p4 = scmp.lt.s32.totalorder (%p5867_p5), %s3635_s21, 64 }
  0x87   : > { %5181 = vmatprep.mubr.msk.bf16.mxu1 %vm835_vm0, %v5536_v7  ;;  %v5541_v12 = vld [vmem:[%s6091_s14 + $0x18] sm:$0xff]   ;;  %v5543_v14 = vld [vmem:[%s6091_s14 + $0x20] sm:$0xff]   ;;  %v5545_v16 = vld [vmem:[%s6091_s14 + $0x28] sm:$0xff]  }
  0x88   : > { %5112 = vmatpush3.bf16.msra.mxu0 %v5534_v5  ;;  %5180 = vmatpush3.bf16.msra.mxu1 %v5534_v5  ;;  %v5542_v13 = vld [vmem:[%s6091_s14 + $0x118] sm:$0xff]   ;;  %v5544_v15 = vld [vmem:[%s6091_s14 + $0x120] sm:$0xff]   ;;  %v5546_v17 = vld [vmem:[%s6091_s14 + $0x128] sm:$0xff]  }
  0x89   : > { %5245 = vmatprep.subr.bf16.mxu0 %v5533_v4  ;;  %5313 = vmatprep.subr.bf16.mxu1 %v5533_v4  ;;  %v5547_v18 = vld [vmem:[%s6091_s14 + $0x30] sm:$0xff]   ;;  %v5549_v20 = vld [vmem:[%s6091_s14 + $0x38] sm:$0xff]   ;;  %v5551_v22 = vld [vmem:[%s6091_s14 + $0x40] sm:$0xff]  }
  0x8a   : > { %v5548_v19 = vld [vmem:[%s6091_s14 + $0x130] sm:$0xff]   ;;  %v5550_v21 = vld [vmem:[%s6091_s14 + $0x138] sm:$0xff]   ;;  %v5552_v23 = vld [vmem:[%s6091_s14 + $0x140] sm:$0xff]  }
  0x8b   : > { %5114 = vmatmul.mubr.msk.bf16.vlgmr.msra.gmra.mrb[0].mxu0 %vm835_vm0, %v5537_v8  ;;  %5182 = vmatmul.mubr.msk.bf16.vlgmr.msra.gmra.mrb[0].mxu1 %vm835_vm0, %v5538_v9  ;;  %v5553_v24 = vld [vmem:[%s6091_s14 + $0x48] sm:$0xff]   ;;  %v5555_v26 = vld [vmem:[%s6091_s14 + $0x50] sm:$0xff]   ;;  %v5557_v28 = vld [vmem:[%s6091_s14 + $0x58] sm:$0xff]  }
  0x8c   : > { %5246 = vmatpush3.bf16.msra.mxu0 %v5533_v4  ;;  %5314 = vmatpush3.bf16.msra.mxu1 %v5533_v4  ;;  %v5554_v25 = vld [vmem:[%s6091_s14 + $0x148] sm:$0xff]   ;;  %v5556_v27 = vld [vmem:[%s6091_s14 + $0x150] sm:$0xff]   ;;  %v5558_v29 = vld [vmem:[%s6091_s14 + $0x158] sm:$0xff]  }
  0x8d   : > { %5117 = vmatprep.mubr.msk.bf16.mxu0 %vm835_vm0, %v5539_v10  ;;  %5185 = vmatprep.mubr.msk.bf16.mxu1 %vm835_vm0, %v5540_v11  ;;  %v5559_v30 = vld [vmem:[%s6091_s14 + $0x60] sm:$0xff]   ;;  %v5561_v32 = vld [vmem:[%s6091_s14 + $0x68] sm:$0xff]   ;;  %v5563_v34 = vld [vmem:[%s6091_s14 + $0x70] sm:$0xff]  }
  0x8e   : > { %5247 = vmatprep.subr.bf16.mxu0 %v5534_v5  ;;  %5315 = vmatprep.subr.bf16.mxu1 %v5534_v5  ;;  %v5560_v31 = vld [vmem:[%s6091_s14 + $0x160] sm:$0xff]   ;;  %v5562_v33 = vld [vmem:[%s6091_s14 + $0x168] sm:$0xff]   ;;  %v5564_v35 = vld [vmem:[%s6091_s14 + $0x170] sm:$0xff]  }
  0x8f   : > { %v5565_v36 = vld [vmem:[%s6091_s14 + $0x78] sm:$0xff]   ;;  %v5567_v38 = vld [vmem:[%s6091_s14 + $0x80] sm:$0xff]   ;;  %v5569_v40 = vld [vmem:[%s6091_s14 + $0x88] sm:$0xff]  }
  0x90   : > { %5248 = vmatpush3.bf16.msra.mxu0 %v5534_v5  ;;  %5316 = vmatpush3.bf16.msra.mxu1 %v5534_v5  ;;  %v5566_v37 = vld [vmem:[%s6091_s14 + $0x178] sm:$0xff]   ;;  %v5568_v39 = vld [vmem:[%s6091_s14 + $0x180] sm:$0xff]   ;;  %v5570_v41 = vld [vmem:[%s6091_s14 + $0x188] sm:$0xff]  }
  0x91   : > { %v5571_v42 = vld [vmem:[%s6091_s14 + $0x90] sm:$0xff]   ;;  %v5573_v44 = vld [vmem:[%s6091_s14 + $0x98] sm:$0xff]   ;;  %v5575_v46 = vld [vmem:[%s6091_s14 + $0xa0] sm:$0xff]  }
  0x92   : > { %v5572_v43 = vld [vmem:[%s6091_s14 + $0x190] sm:$0xff]   ;;  %v5574_v45 = vld [vmem:[%s6091_s14 + $0x198] sm:$0xff]   ;;  %v5576_v47 = vld [vmem:[%s6091_s14 + $0x1a0] sm:$0xff]  }
  0x93   : > { %5118 = vmatmul.mubr.msk.bf16.gmra.mrb[4].mxu0 %vm835_vm0, %v5541_v12  ;;  %5186 = vmatmul.mubr.msk.bf16.gmra.mrb[4].mxu1 %vm835_vm0, %v5542_v13  ;;  %v5577_v48 = vld [vmem:[%s6091_s14 + $0xa8] sm:$0xff]   ;;  %v5579_v50 = vld [vmem:[%s6091_s14 + $0xb0] sm:$0xff]   ;;  %v5581_v52 = vld [vmem:[%s6091_s14 + $0xb8] sm:$0xff]  }
  0x94   : > { %5121 = vmatprep.mubr.msk.bf16.mxu0 %vm835_vm0, %v5543_v14  ;;  %5189 = vmatprep.mubr.msk.bf16.mxu1 %vm835_vm0, %v5544_v15  ;;  %v5578_v49 = vld [vmem:[%s6091_s14 + $0x1a8] sm:$0xff]   ;;  %v5580_v51 = vld [vmem:[%s6091_s14 + $0x1b0] sm:$0xff]   ;;  %v5582_v53 = vld [vmem:[%s6091_s14 + $0x1b8] sm:$0xff]  }
  0x95   : > { %v5583_v54 = vld [vmem:[%s6091_s14 + $0xc0] sm:$0xff]   ;;  %v5585_v56 = vld [vmem:[%s6091_s14 + $0xc8] sm:$0xff]   ;;  %v5587_v58 = vld [vmem:[%s6091_s14 + $0xd0] sm:$0xff]  }
  0x96   : > { %v5584_v55 = vld [vmem:[%s6091_s14 + $0x1c0] sm:$0xff]   ;;  %v5586_v57 = vld [vmem:[%s6091_s14 + $0x1c8] sm:$0xff]   ;;  %v5588_v59 = vld [vmem:[%s6091_s14 + $0x1d0] sm:$0xff]  }
  0x97   : > { %v5589_v60 = vld [vmem:[%s6091_s14 + $0xd8] sm:$0xff]   ;;  %v5591_v62 = vld [vmem:[%s6091_s14 + $0xe0] sm:$0xff]   ;;  %v5593_v0 = vld [vmem:[%s6091_s14 + $0xe8] sm:$0xff]  }
  0x98   : > { %v5590_v61 = vld [vmem:[%s6091_s14 + $0x1d8] sm:$0xff]   ;;  %v5592_v63 = vld [vmem:[%s6091_s14 + $0x1e0] sm:$0xff]   ;;  %v5594_v1 = vld [vmem:[%s6091_s14 + $0x1e8] sm:$0xff]  }
  0x99   : > { %v5595_v2 = vld [vmem:[%s6091_s14 + $0xf0] sm:$0xff]   ;;  %v5597_v4 = vld [vmem:[%s6091_s14 + $0xf8] sm:$0xff]   ;;  %v5599_v6 = vld [vmem:[%s6091_s14 + $0x200] sm:$0xff]  }
  0x9a   : > { %v5596_v3 = vld [vmem:[%s6091_s14 + $0x1f0] sm:$0xff]   ;;  %v5598_v5 = vld [vmem:[%s6091_s14 + $0x1f8] sm:$0xff]   ;;  %v5600_v7 = vld [vmem:[%s6091_s14 + $0x300] sm:$0xff]  }
  0x9b   : > { %5122 = vmatmul.mubr.msk.bf16.gmra.mrb[8].mxu0 %vm835_vm0, %v5545_v16  ;;  %5190 = vmatmul.mubr.msk.bf16.gmra.mrb[8].mxu1 %vm835_vm0, %v5546_v17  ;;  %v5601_v8 = vld [vmem:[%s6091_s14 + $0x208] sm:$0xff]   ;;  %v5603_v10 = vld [vmem:[%s6091_s14 + $0x210] sm:$0xff]   ;;  %v5605_v12 = vld [vmem:[%s6091_s14 + $0x218] sm:$0xff]  }
  0x9c   : > { %5125 = vmatprep.mubr.msk.bf16.mxu0 %vm835_vm0, %v5547_v18  ;;  %5193 = vmatprep.mubr.msk.bf16.mxu1 %vm835_vm0, %v5548_v19  ;;  %v5602_v9 = vld [vmem:[%s6091_s14 + $0x308] sm:$0xff]   ;;  %v5604_v11 = vld [vmem:[%s6091_s14 + $0x310] sm:$0xff]   ;;  %v5606_v13 = vld [vmem:[%s6091_s14 + $0x318] sm:$0xff]  }
  0x9d   : > { %v5607_v14 = vld [vmem:[%s6091_s14 + $0x220] sm:$0xff]   ;;  %v5609_v16 = vld [vmem:[%s6091_s14 + $0x228] sm:$0xff]   ;;  %v5611_v18 = vld [vmem:[%s6091_s14 + $0x230] sm:$0xff]  }
  0x9e   : > { %v5608_v15 = vld [vmem:[%s6091_s14 + $0x320] sm:$0xff]   ;;  %v5610_v17 = vld [vmem:[%s6091_s14 + $0x328] sm:$0xff]   ;;  %v5612_v19 = vld [vmem:[%s6091_s14 + $0x330] sm:$0xff]  }
  0xa3   : > { %5126 = vmatmul.mubr.msk.bf16.gmra.mrb[12].mxu0 %vm835_vm0, %v5549_v20  ;;  %5194 = vmatmul.mubr.msk.bf16.gmra.mrb[12].mxu1 %vm835_vm0, %v5550_v21  ;;  %v5613_v20 = vld [vmem:[%s6091_s14 + $0x238] sm:$0xff]  }
  0xa4   : > { %5129 = vmatprep.mubr.msk.bf16.mxu0 %vm835_vm0, %v5551_v22  ;;  %5197 = vmatprep.mubr.msk.bf16.mxu1 %vm835_vm0, %v5552_v23  ;;  %v5614_v21 = vld [vmem:[%s6091_s14 + $0x338] sm:$0xff]   ;;  %v5615_v22 = vld [vmem:[%s6091_s14 + $0x240] sm:$0xff]  }
  0xa5   : > { %v5616_v23 = vld [vmem:[%s6091_s14 + $0x340] sm:$0xff]  }
  0xab   : > { %5130 = vmatmul.mubr.msk.bf16.gmra.mrb[16].mxu0 %vm835_vm0, %v5553_v24  ;;  %5198 = vmatmul.mubr.msk.bf16.gmra.mrb[16].mxu1 %vm835_vm0, %v5554_v25  ;;  %v5617_v24 = vld [vmem:[%s6091_s14 + $0x248] sm:$0xff]  }
  0xac   : > { %5133 = vmatprep.mubr.msk.bf16.mxu0 %vm835_vm0, %v5555_v26  ;;  %5201 = vmatprep.mubr.msk.bf16.mxu1 %vm835_vm0, %v5556_v27  ;;  %v5618_v25 = vld [vmem:[%s6091_s14 + $0x348] sm:$0xff]   ;;  %v5619_v26 = vld [vmem:[%s6091_s14 + $0x250] sm:$0xff]  }
  0xad   : > { %v5620_v27 = vld [vmem:[%s6091_s14 + $0x350] sm:$0xff]  }
  0xb3   : > { %5134 = vmatmul.mubr.msk.bf16.gmra.mrb[20].mxu0 %vm835_vm0, %v5557_v28  ;;  %5202 = vmatmul.mubr.msk.bf16.gmra.mrb[20].mxu1 %vm835_vm0, %v5558_v29  ;;  %v5621_v28 = vld [vmem:[%s6091_s14 + $0x258] sm:$0xff]  }
  0xb4   : > { %5137 = vmatprep.mubr.msk.bf16.mxu0 %vm835_vm0, %v5559_v30  ;;  %5205 = vmatprep.mubr.msk.bf16.mxu1 %vm835_vm0, %v5560_v31  ;;  %v5622_v29 = vld [vmem:[%s6091_s14 + $0x358] sm:$0xff]   ;;  %v5623_v30 = vld [vmem:[%s6091_s14 + $0x260] sm:$0xff]  }
  0xb5   : > { %v5624_v31 = vld [vmem:[%s6091_s14 + $0x360] sm:$0xff]  }
  0xbb   : > { %5138 = vmatmul.mubr.msk.bf16.gmra.mrb[24].mxu0 %vm835_vm0, %v5561_v32  ;;  %5206 = vmatmul.mubr.msk.bf16.gmra.mrb[24].mxu1 %vm835_vm0, %v5562_v33  ;;  %v5625_v32 = vld [vmem:[%s6091_s14 + $0x268] sm:$0xff]  }
  0xbc   : > { %5141 = vmatprep.mubr.msk.bf16.mxu0 %vm835_vm0, %v5563_v34  ;;  %5209 = vmatprep.mubr.msk.bf16.mxu1 %vm835_vm0, %v5564_v35  ;;  %v5626_v33 = vld [vmem:[%s6091_s14 + $0x368] sm:$0xff]   ;;  %v5627_v34 = vld [vmem:[%s6091_s14 + $0x270] sm:$0xff]  }
  0xbd   : > { %v5628_v35 = vld [vmem:[%s6091_s14 + $0x370] sm:$0xff]  }
  0xc3   : > { %5142 = vmatmul.mubr.msk.bf16.gmra.mrb[28].mxu0 %vm835_vm0, %v5565_v36  ;;  %5210 = vmatmul.mubr.msk.bf16.gmra.mrb[28].mxu1 %vm835_vm0, %v5566_v37  ;;  %v5629_v36 = vld [vmem:[%s6091_s14 + $0x278] sm:$0xff]  }
  0xc4   : > { %5145 = vmatprep.mubr.msk.bf16.mxu0 %vm835_vm0, %v5567_v38  ;;  %5213 = vmatprep.mubr.msk.bf16.mxu1 %vm835_vm0, %v5568_v39  ;;  %v5630_v37 = vld [vmem:[%s6091_s14 + $0x378] sm:$0xff]   ;;  %v5631_v38 = vld [vmem:[%s6091_s14 + $0x280] sm:$0xff]  }
  0xc5   : > { %v5632_v39 = vld [vmem:[%s6091_s14 + $0x380] sm:$0xff]  }
  0xcb   : > { %5146 = vmatmul.mubr.msk.bf16.gmra.mrb[32].mxu0 %vm835_vm0, %v5569_v40  ;;  %5214 = vmatmul.mubr.msk.bf16.gmra.mrb[32].mxu1 %vm835_vm0, %v5570_v41  ;;  %v5633_v40 = vld [vmem:[%s6091_s14 + $0x288] sm:$0xff]  }
  0xcc   : > { %5149 = vmatprep.mubr.msk.bf16.mxu0 %vm835_vm0, %v5571_v42  ;;  %5217 = vmatprep.mubr.msk.bf16.mxu1 %vm835_vm0, %v5572_v43  ;;  %v5634_v41 = vld [vmem:[%s6091_s14 + $0x388] sm:$0xff]   ;;  %v5635_v42 = vld [vmem:[%s6091_s14 + $0x290] sm:$0xff]  }
  0xcd   : > { %v5636_v43 = vld [vmem:[%s6091_s14 + $0x390] sm:$0xff]  }
  0xd3   : > { %5150 = vmatmul.mubr.msk.bf16.gmra.mrb[36].mxu0 %vm835_vm0, %v5573_v44  ;;  %5218 = vmatmul.mubr.msk.bf16.gmra.mrb[36].mxu1 %vm835_vm0, %v5574_v45  ;;  %v5637_v44 = vld [vmem:[%s6091_s14 + $0x298] sm:$0xff]  }
  0xd4   : > { %5153 = vmatprep.mubr.msk.bf16.mxu0 %vm835_vm0, %v5575_v46  ;;  %5221 = vmatprep.mubr.msk.bf16.mxu1 %vm835_vm0, %v5576_v47  ;;  %v5638_v45 = vld [vmem:[%s6091_s14 + $0x398] sm:$0xff]   ;;  %v5639_v46 = vld [vmem:[%s6091_s14 + $0x2a0] sm:$0xff]  }
  0xd5   : > { %v5640_v47 = vld [vmem:[%s6091_s14 + $0x3a0] sm:$0xff]  }
  0xdb   : > { %5154 = vmatmul.mubr.msk.bf16.gmra.mrb[40].mxu0 %vm835_vm0, %v5577_v48  ;;  %5222 = vmatmul.mubr.msk.bf16.gmra.mrb[40].mxu1 %vm835_vm0, %v5578_v49  ;;  %v5641_v48 = vld [vmem:[%s6091_s14 + $0x2a8] sm:$0xff]  }
  0xdc   : > { %5157 = vmatprep.mubr.msk.bf16.mxu0 %vm835_vm0, %v5579_v50  ;;  %5225 = vmatprep.mubr.msk.bf16.mxu1 %vm835_vm0, %v5580_v51  ;;  %v5642_v49 = vld [vmem:[%s6091_s14 + $0x3a8] sm:$0xff]   ;;  %v5643_v50 = vld [vmem:[%s6091_s14 + $0x2b0] sm:$0xff]  }
  0xdd   : > { %v5644_v51 = vld [vmem:[%s6091_s14 + $0x3b0] sm:$0xff]  }
  0xe3   : > { %5158 = vmatmul.mubr.msk.bf16.gmra.mrb[44].mxu0 %vm835_vm0, %v5581_v52  ;;  %5226 = vmatmul.mubr.msk.bf16.gmra.mrb[44].mxu1 %vm835_vm0, %v5582_v53  ;;  %v6314_v52 = vld [vmem:[%s7428_s2] ss:$0 sm:$0xff] }
  0xe4   : > { %5161 = vmatprep.mubr.msk.bf16.mxu0 %vm835_vm0, %v5583_v54  ;;  %5229 = vmatprep.mubr.msk.bf16.mxu1 %vm835_vm0, %v5584_v55 }
  0xeb   : > { %5162 = vmatmul.mubr.msk.bf16.gmra.mrb[48].mxu0 %vm835_vm0, %v5585_v56  ;;  %5230 = vmatmul.mubr.msk.bf16.gmra.mrb[48].mxu1 %vm835_vm0, %v5586_v57 }
  0xec   : > { %5165 = vmatprep.mubr.msk.bf16.mxu0 %vm835_vm0, %v5587_v58  ;;  %5233 = vmatprep.mubr.msk.bf16.mxu1 %vm835_vm0, %v5588_v59  ;;  %v5645_v59 = vld [vmem:[%s6091_s14 + $0x2b8] sm:$0xff]  }
  0xf3   : > { %5166 = vmatmul.mubr.msk.bf16.gmra.mrb[52].mxu0 %vm835_vm0, %v5589_v60  ;;  %5234 = vmatmul.mubr.msk.bf16.gmra.mrb[52].mxu1 %vm835_vm0, %v5590_v61  ;;  %v5646_v60 = vld [vmem:[%s6091_s14 + $0x3b8] sm:$0xff]  }
  0xf4   : > { %5169 = vmatprep.mubr.msk.bf16.mxu0 %vm835_vm0, %v5591_v62  ;;  %5237 = vmatprep.mubr.msk.bf16.mxu1 %vm835_vm0, %v5592_v63 }
  0xfb   : > { %5170 = vmatmul.mubr.msk.bf16.gmra.mrb[56].mxu0 %vm835_vm0, %v5593_v0  ;;  %5238 = vmatmul.mubr.msk.bf16.gmra.mrb[56].mxu1 %vm835_vm0, %v5594_v1  ;;  %v5647_v1 = vld [vmem:[%s6091_s14 + $0x2c0] sm:$0xff]  }
  0xfc   : > { %5173 = vmatprep.mubr.msk.bf16.mxu0 %vm835_vm0, %v5595_v2  ;;  %5241 = vmatprep.mubr.msk.bf16.mxu1 %vm835_vm0, %v5596_v3  ;;  %v5648_v2 = vld [vmem:[%s6091_s14 + $0x3c0] sm:$0xff]  }
 0x103   : > { %5174 = vmatmul.mubr.msk.bf16.gmra.mrb[60].mxu0 %vm835_vm0, %v5597_v4  ;;  %5242 = vmatmul.mubr.msk.bf16.gmra.mrb[60].mxu1 %vm835_vm0, %v5598_v5 }
 0x104   : > { %5249 = vmatprep.mubr.msk.bf16.mxu0 %vm835_vm0, %v5599_v6  ;;  %5317 = vmatprep.mubr.msk.bf16.mxu1 %vm835_vm0, %v5600_v7 }
 0x10b   : > { %5250 = vmatmul.mubr.msk.bf16.vlgmr.msra.gmra.mrb[64].mxu0 %vm835_vm0, %v5601_v8  ;;  %5318 = vmatmul.mubr.msk.bf16.vlgmr.msra.gmra.mrb[64].mxu1 %vm835_vm0, %v5602_v9 }
 0x10c   : > { %5253 = vmatprep.mubr.msk.bf16.mxu0 %vm835_vm0, %v5603_v10  ;;  %5321 = vmatprep.mubr.msk.bf16.mxu1 %vm835_vm0, %v5604_v11 }
 0x113   : > { %5254 = vmatmul.mubr.msk.bf16.gmra.mrb[68].mxu0 %vm835_vm0, %v5605_v12  ;;  %5322 = vmatmul.mubr.msk.bf16.gmra.mrb[68].mxu1 %vm835_vm0, %v5606_v13 }
 0x114   : > { %5257 = vmatprep.mubr.msk.bf16.mxu0 %vm835_vm0, %v5607_v14  ;;  %5325 = vmatprep.mubr.msk.bf16.mxu1 %vm835_vm0, %v5608_v15 }
 0x11b   : > { %5258 = vmatmul.mubr.msk.bf16.gmra.mrb[72].mxu0 %vm835_vm0, %v5609_v16  ;;  %5326 = vmatmul.mubr.msk.bf16.gmra.mrb[72].mxu1 %vm835_vm0, %v5610_v17 }
 0x11c   : > { %5261 = vmatprep.mubr.msk.bf16.mxu0 %vm835_vm0, %v5611_v18  ;;  %5329 = vmatprep.mubr.msk.bf16.mxu1 %vm835_vm0, %v5612_v19  ;;  %v5649_v19 = vld [vmem:[%s6091_s14 + $0x2c8] sm:$0xff]  }
 0x123   : > { %5262 = vmatmul.mubr.msk.bf16.gmra.mrb[76].mxu0 %vm835_vm0, %v5613_v20  ;;  %5330 = vmatmul.mubr.msk.bf16.gmra.mrb[76].mxu1 %vm835_vm0, %v5614_v21  ;;  %v5650_v20 = vld [vmem:[%s6091_s14 + $0x3c8] sm:$0xff]  }
 0x124   : > { %5265 = vmatprep.mubr.msk.bf16.mxu0 %vm835_vm0, %v5615_v22  ;;  %5333 = vmatprep.mubr.msk.bf16.mxu1 %vm835_vm0, %v5616_v23 }
 0x12b   : > { %5266 = vmatmul.mubr.msk.bf16.gmra.mrb[80].mxu0 %vm835_vm0, %v5617_v24  ;;  %5334 = vmatmul.mubr.msk.bf16.gmra.mrb[80].mxu1 %vm835_vm0, %v5618_v25  ;;  %v5651_v25 = vld [vmem:[%s6091_s14 + $0x2d0] sm:$0xff]  }
 0x12c   : > { %5269 = vmatprep.mubr.msk.bf16.mxu0 %vm835_vm0, %v5619_v26  ;;  %5337 = vmatprep.mubr.msk.bf16.mxu1 %vm835_vm0, %v5620_v27  ;;  %v5652_v26 = vld [vmem:[%s6091_s14 + $0x3d0] sm:$0xff]  }
 0x133   : > { %5270 = vmatmul.mubr.msk.bf16.gmra.mrb[84].mxu0 %vm835_vm0, %v5621_v28  ;;  %5338 = vmatmul.mubr.msk.bf16.gmra.mrb[84].mxu1 %vm835_vm0, %v5622_v29 }
 0x134   : > { %5273 = vmatprep.mubr.msk.bf16.mxu0 %vm835_vm0, %v5623_v30  ;;  %5341 = vmatprep.mubr.msk.bf16.mxu1 %vm835_vm0, %v5624_v31 }
 0x13b   : > { %5274 = vmatmul.mubr.msk.bf16.gmra.mrb[88].mxu0 %vm835_vm0, %v5625_v32  ;;  %5342 = vmatmul.mubr.msk.bf16.gmra.mrb[88].mxu1 %vm835_vm0, %v5626_v33 }
 0x13c   : > { %5277 = vmatprep.mubr.msk.bf16.mxu0 %vm835_vm0, %v5627_v34  ;;  %5345 = vmatprep.mubr.msk.bf16.mxu1 %vm835_vm0, %v5628_v35 }
 0x143   : > { %5278 = vmatmul.mubr.msk.bf16.gmra.mrb[92].mxu0 %vm835_vm0, %v5629_v36  ;;  %5346 = vmatmul.mubr.msk.bf16.gmra.mrb[92].mxu1 %vm835_vm0, %v5630_v37 }
 0x144   : > { %5281 = vmatprep.mubr.msk.bf16.mxu0 %vm835_vm0, %v5631_v38  ;;  %5349 = vmatprep.mubr.msk.bf16.mxu1 %vm835_vm0, %v5632_v39 }
 0x14b   : > { %5282 = vmatmul.mubr.msk.bf16.gmra.mrb[96].mxu0 %vm835_vm0, %v5633_v40  ;;  %5350 = vmatmul.mubr.msk.bf16.gmra.mrb[96].mxu1 %vm835_vm0, %v5634_v41 }
 0x14c   : > { %5285 = vmatprep.mubr.msk.bf16.mxu0 %vm835_vm0, %v5635_v42  ;;  %5353 = vmatprep.mubr.msk.bf16.mxu1 %vm835_vm0, %v5636_v43  ;;  %v5653_v43 = vld [vmem:[%s6091_s14 + $0x2d8] sm:$0xff]  }
 0x153   : > { %5286 = vmatmul.mubr.msk.bf16.gmra.mrb[100].mxu0 %vm835_vm0, %v5637_v44  ;;  %5354 = vmatmul.mubr.msk.bf16.gmra.mrb[100].mxu1 %vm835_vm0, %v5638_v45  ;;  %v5654_v44 = vld [vmem:[%s6091_s14 + $0x3d8] sm:$0xff]  }
 0x154   : > { %5289 = vmatprep.mubr.msk.bf16.mxu0 %vm835_vm0, %v5639_v46  ;;  %5357 = vmatprep.mubr.msk.bf16.mxu1 %vm835_vm0, %v5640_v47 }
 0x15b   : > { %5290 = vmatmul.mubr.msk.bf16.gmra.mrb[104].mxu0 %vm835_vm0, %v5641_v48  ;;  %5358 = vmatmul.mubr.msk.bf16.gmra.mrb[104].mxu1 %vm835_vm0, %v5642_v49  ;;  %v5655_v49 = vld [vmem:[%s6091_s14 + $0x2e0] sm:$0xff]  }
 0x15c   : > { %5293 = vmatprep.mubr.msk.bf16.mxu0 %vm835_vm0, %v5643_v50  ;;  %5361 = vmatprep.mubr.msk.bf16.mxu1 %vm835_vm0, %v5644_v51  ;;  %v5656_v50 = vld [vmem:[%s6091_s14 + $0x3e0] sm:$0xff]  }
 0x15e   : > { %v5115_v53 = vpop.f32.mrb[0].mxu0  ;;  %v5183_v54 = vpop.f32.mrb[0].mxu1 }
 0x15f   : > { %v6319_v55 = vadd.f32 %v5115_v53, %v6314_v52  ;;  %v6322_v56 = vadd.f32 %v5183_v54, %v6314_v52  ;;  %v966_v57 = vpop.f32.mrb[1].mxu0  ;;  %v1576_v58 = vpop.f32.mrb[1].mxu1 }
 0x160   : > { %v6327_v61 = vadd.f32 %v6314_v52, %v966_v57  ;;  %v6330_v62 = vadd.f32 %v6314_v52, %v1576_v58  ;;  %v5116_v63 = vpop.f32.mrb[2].mxu0  ;;  %v5184_v0 = vpop.f32.mrb[2].mxu1 }
 0x161   : > { %v6337_v4 = vadd.f32 %v5116_v63, %v6314_v52  ;;  %v6340_v5 = vadd.f32 %v5184_v0, %v6314_v52  ;;  %v969_v6 = vpop.f32.mrb[3].mxu0  ;;  %v1579_v7 = vpop.f32.mrb[3].mxu1 }
 0x162   : > { %v6345_v9 = vadd.f32 %v6314_v52, %v969_v6  ;;  %v6348_v10 = vadd.f32 %v6314_v52, %v1579_v7 }
 0x163   : > { %5294 = vmatmul.mubr.msk.bf16.gmra.mrb[108].mxu0 %vm835_vm0, %v5645_v59  ;;  %5362 = vmatmul.mubr.msk.bf16.gmra.mrb[108].mxu1 %vm835_vm0, %v5646_v60 }
 0x164   : > { %5297 = vmatprep.mubr.msk.bf16.mxu0 %vm835_vm0, %v5647_v1  ;;  %5365 = vmatprep.mubr.msk.bf16.mxu1 %vm835_vm0, %v5648_v2 }
 0x166   : > { %v5119_v13 = vpop.f32.mrb[4].mxu0  ;;  %v5187_v14 = vpop.f32.mrb[4].mxu1 }
 0x167   : > { %v6359_v15 = vadd.f32 %v5119_v13, %v6314_v52  ;;  %v6362_v16 = vadd.f32 %v5187_v14, %v6314_v52  ;;  %v982_v17 = vpop.f32.mrb[5].mxu0  ;;  %v1592_v18 = vpop.f32.mrb[5].mxu1 }
 0x168   : > { %v6367_v21 = vadd.f32 %v6314_v52, %v982_v17  ;;  %v6370_v22 = vadd.f32 %v6314_v52, %v1592_v18  ;;  %v5120_v23 = vpop.f32.mrb[6].mxu0  ;;  %v5188_v24 = vpop.f32.mrb[6].mxu1  ;;  %v5657_v18 = vld [vmem:[%s6091_s14 + $0x2e8] sm:$0xff]  }
 0x169   : > { %v6377_v28 = vadd.f32 %v5120_v23, %v6314_v52  ;;  %v6380_v29 = vadd.f32 %v5188_v24, %v6314_v52  ;;  %v985_v30 = vpop.f32.mrb[7].mxu0  ;;  %v1595_v31 = vpop.f32.mrb[7].mxu1 }
 0x16a   : > { %v6385_v33 = vadd.f32 %v6314_v52, %v985_v30  ;;  %v6388_v34 = vadd.f32 %v6314_v52, %v1595_v31  ;;  %v5660_v30 = vld [vmem:[%s6091_s14 + $0x3f0] sm:$0xff]  }
 0x16b   : > { %5298 = vmatmul.mubr.msk.bf16.gmra.mrb[112].mxu0 %vm835_vm0, %v5649_v19  ;;  %5366 = vmatmul.mubr.msk.bf16.gmra.mrb[112].mxu1 %vm835_vm0, %v5650_v20  ;;  %v5658_v19 = vld [vmem:[%s6091_s14 + $0x3e8] sm:$0xff]  }
 0x16c   : > { %5301 = vmatprep.mubr.msk.bf16.mxu0 %vm835_vm0, %v5651_v25  ;;  %5369 = vmatprep.mubr.msk.bf16.mxu1 %vm835_vm0, %v5652_v26  ;;  %v5659_v26 = vld [vmem:[%s6091_s14 + $0x2f0] sm:$0xff]  }
 0x16e   : > { %v5123_v37 = vpop.f32.mrb[8].mxu0  ;;  %v5191_v38 = vpop.f32.mrb[8].mxu1 }
 0x16f   : > { %v6399_v39 = vadd.f32 %v5123_v37, %v6314_v52  ;;  %v6402_v40 = vadd.f32 %v5191_v38, %v6314_v52  ;;  %v998_v41 = vpop.f32.mrb[9].mxu0  ;;  %v1608_v42 = vpop.f32.mrb[9].mxu1 }
 0x170   : > { %v6407_v45 = vadd.f32 %v6314_v52, %v998_v41  ;;  %v6410_v46 = vadd.f32 %v6314_v52, %v1608_v42  ;;  %v5124_v47 = vpop.f32.mrb[10].mxu0  ;;  %v5192_v48 = vpop.f32.mrb[10].mxu1 }
 0x171   : > { %v6417_v53 = vadd.f32 %v5124_v47, %v6314_v52  ;;  %v6420_v54 = vadd.f32 %v5192_v48, %v6314_v52  ;;  %v1001_v57 = vpop.f32.mrb[11].mxu0  ;;  %v1611_v58 = vpop.f32.mrb[11].mxu1 }
 0x172   : > { %v6425_v60 = vadd.f32 %v6314_v52, %v1001_v57  ;;  %v6428_v63 = vadd.f32 %v6314_v52, %v1611_v58 }
 0x173   : > { %5302 = vmatmul.mubr.msk.bf16.gmra.mrb[116].mxu0 %vm835_vm0, %v5653_v43  ;;  %5370 = vmatmul.mubr.msk.bf16.gmra.mrb[116].mxu1 %vm835_vm0, %v5654_v44 }
 0x174   : > { %5305 = vmatprep.mubr.msk.bf16.mxu0 %vm835_vm0, %v5655_v49  ;;  %5373 = vmatprep.mubr.msk.bf16.mxu1 %vm835_vm0, %v5656_v50 }
 0x176   : > { %v5127_v2 = vpop.f32.mrb[12].mxu0  ;;  %v5195_v6 = vpop.f32.mrb[12].mxu1 }
 0x177   : > { %v6439_v7 = vadd.f32 %v5127_v2, %v6314_v52  ;;  %v6442_v13 = vadd.f32 %v5195_v6, %v6314_v52  ;;  %v1014_v14 = vpop.f32.mrb[13].mxu0  ;;  %v1624_v17 = vpop.f32.mrb[13].mxu1 }
 0x178   : > { %v6447_v20 = vadd.f32 %v6314_v52, %v1014_v14  ;;  %v6450_v23 = vadd.f32 %v6314_v52, %v1624_v17  ;;  %v5128_v24 = vpop.f32.mrb[14].mxu0  ;;  %v5196_v25 = vpop.f32.mrb[14].mxu1  ;;  %v5661_v17 = vld [vmem:[%s6091_s14 + $0x2f8] sm:$0xff]  }
 0x179   : > { %v6457_v37 = vadd.f32 %v5128_v24, %v6314_v52  ;;  %v6460_v38 = vadd.f32 %v5196_v25, %v6314_v52  ;;  %v1017_v41 = vpop.f32.mrb[15].mxu0  ;;  %v1627_v42 = vpop.f32.mrb[15].mxu1 }
 0x17a   : > { %v6465_v44 = vadd.f32 %v6314_v52, %v1017_v41  ;;  %v6468_v47 = vadd.f32 %v6314_v52, %v1627_v42 }
 0x17b   : > { %5306 = vmatmul.mubr.msk.bf16.gmra.mrb[120].mxu0 %vm835_vm0, %v5657_v18  ;;  %5374 = vmatmul.mubr.msk.bf16.gmra.mrb[120].mxu1 %vm835_vm0, %v5658_v19  ;;  %v5662_v18 = vld [vmem:[%s6091_s14 + $0x3f8] sm:$0xff]  }
 0x17c   : > { %5309 = vmatprep.mubr.msk.bf16.mxu0 %vm835_vm0, %v5659_v26  ;;  %5377 = vmatprep.mubr.msk.bf16.mxu1 %vm835_vm0, %v5660_v30 }
 0x17e   : > { %v5131_v50 = vpop.f32.mrb[16].mxu0  ;;  %v5199_v57 = vpop.f32.mrb[16].mxu1 }
 0x17f   : > { %v6479_v58 = vadd.f32 %v5131_v50, %v6314_v52  ;;  %v6482_v2 = vadd.f32 %v5199_v57, %v6314_v52  ;;  %v1030_v6 = vpop.f32.mrb[17].mxu0  ;;  %v1640_v14 = vpop.f32.mrb[17].mxu1 }
 0x180   : > { %v6487_v19 = vadd.f32 %v6314_v52, %v1030_v6  ;;  %v6490_v24 = vadd.f32 %v6314_v52, %v1640_v14  ;;  %v5132_v25 = vpop.f32.mrb[18].mxu0  ;;  %v5200_v26 = vpop.f32.mrb[18].mxu1 }
 0x181   : > { %v6495_v41 = vadd.f32 %v5132_v25, %v6314_v52  ;;  %v6498_v42 = vadd.f32 %v5200_v26, %v6314_v52  ;;  %v1033_v50 = vpop.f32.mrb[19].mxu0  ;;  %v1643_v57 = vpop.f32.mrb[19].mxu1 }
 0x182   : > { %v6503_v49 = vadd.f32 %v6314_v52, %v1033_v50  ;;  %v6506_v14 = vadd.f32 %v6314_v52, %v1643_v57 }
 0x183   : > { %5310 = vmatmul.mubr.msk.bf16.gmra.mrb[124].mxu0 %vm835_vm0, %v5661_v17  ;;  %5378 = vmatmul.mubr.msk.bf16.gmra.mrb[124].mxu1 %vm835_vm0, %v5662_v18 }
 0x186   : > { %v5135_v26 = vpop.f32.mrb[20].mxu0  ;;  %v5203_v48 = vpop.f32.mrb[20].mxu1 }
 0x187   : > { %v6515_v6 = vadd.f32 %v5135_v26, %v6314_v52  ;;  %v6518_v50 = vadd.f32 %v5203_v48, %v6314_v52  ;;  %v1046_v57 = vpop.f32.mrb[21].mxu0  ;;  %v1656_v43 = vpop.f32.mrb[21].mxu1 }
 0x188   : > { %v6521_v31 = vadd.f32 %v6314_v52, %v1046_v57  ;;  %v6524_v17 = vadd.f32 %v6314_v52, %v1656_v43  ;;  %v5136_v18 = vpop.f32.mrb[22].mxu0  ;;  %v5204_v30 = vpop.f32.mrb[22].mxu1 }
 0x189   : > { %v6529_v1 = vadd.f32 %v5136_v18, %v6314_v52  ;;  %v6532_v26 = vadd.f32 %v5204_v30, %v6314_v52  ;;  %v1049_v48 = vpop.f32.mrb[23].mxu0  ;;  %v1659_v0 = vpop.f32.mrb[23].mxu1 }
 0x18a   : > { %v6537_v59 = vadd.f32 %v6314_v52, %v1049_v48  ;;  %v6540_v43 = vadd.f32 %v6314_v52, %v1659_v0 }
 0x18b   : > { %7520 = vst [vmem:[#allocation4_spill] sm:$0xff] %v6529_v1  ;;  %7521 = vst [vmem:[#allocation5_spill] sm:$0xff] %v6532_v26 }
 0x18c   : > { %7522 = vst [vmem:[#allocation6_spill] sm:$0xff] %v6537_v59  ;;  %7523 = vst [vmem:[#allocation7_spill] sm:$0xff] %v6540_v43 }
 0x18e   : > { %v5139_v51 = vpop.f32.mrb[24].mxu0  ;;  %v5207_v30 = vpop.f32.mrb[24].mxu1 }
 0x18f   : > { %v6547_v36 = vadd.f32 %v5139_v51, %v6314_v52  ;;  %v6550_v35 = vadd.f32 %v5207_v30, %v6314_v52  ;;  %v1062_v57 = vpop.f32.mrb[25].mxu0  ;;  %v1672_v48 = vpop.f32.mrb[25].mxu1 }
 0x190   : > { %v6553_v32 = vadd.f32 %v6314_v52, %v1062_v57  ;;  %v6556_v0 = vadd.f32 %v6314_v52, %v1672_v48  ;;  %v5140_v25 = vpop.f32.mrb[26].mxu0  ;;  %v5208_v27 = vpop.f32.mrb[26].mxu1 }
 0x191   : > { %7524 = vst [vmem:[#allocation8_spill] sm:$0xff] %v6547_v36  ;;  %7525 = vst [vmem:[#allocation9_spill] sm:$0xff] %v6550_v35  ;;  %v6561_v12 = vadd.f32 %v5140_v25, %v6314_v52  ;;  %v6564_v51 = vadd.f32 %v5208_v27, %v6314_v52  ;;  %v1065_v30 = vpop.f32.mrb[27].mxu0  ;;  %v1675_v11 = vpop.f32.mrb[27].mxu1 }
 0x192   : > { %7526 = vst [vmem:[#allocation10_spill] sm:$0xff] %v6553_v32  ;;  %7527 = vst [vmem:[#allocation11_spill] sm:$0xff] %v6556_v0  ;;  %v6569_v8 = vadd.f32 %v6314_v52, %v1065_v30  ;;  %v6572_v48 = vadd.f32 %v6314_v52, %v1675_v11 }
 0x193   : > { %7528 = vst [vmem:[#allocation12_spill] sm:$0xff] %v6561_v12  ;;  %7529 = vst [vmem:[#allocation13_spill] sm:$0xff] %v6564_v51 }
 0x194   : > { %7530 = vst [vmem:[#allocation14_spill] sm:$0xff] %v6569_v8  ;;  %7531 = vst [vmem:[#allocation15_spill] sm:$0xff] %v6572_v48 }
 0x196   : > { %v5143_v3 = vpop.f32.mrb[28].mxu0  ;;  %v5211_v27 = vpop.f32.mrb[28].mxu1 }
 0x197   : > { %v6579_v35 = vadd.f32 %v5143_v3, %v6314_v52  ;;  %v6582_v36 = vadd.f32 %v5211_v27, %v6314_v52  ;;  %v1078_v57 = vpop.f32.mrb[29].mxu0  ;;  %v1688_v30 = vpop.f32.mrb[29].mxu1 }
 0x198   : > { %v6585_v0 = vadd.f32 %v6314_v52, %v1078_v57  ;;  %v6588_v11 = vadd.f32 %v6314_v52, %v1688_v30  ;;  %v5144_v18 = vpop.f32.mrb[30].mxu0  ;;  %v5212_v51 = vpop.f32.mrb[30].mxu1 }
 0x199   : > { %7532 = vst [vmem:[#allocation16_spill] sm:$0xff] %v6579_v35  ;;  %7533 = vst [vmem:[#allocation17_spill] sm:$0xff] %v6582_v36  ;;  %v6593_v48 = vadd.f32 %v5144_v18, %v6314_v52  ;;  %v6596_v3 = vadd.f32 %v5212_v51, %v6314_v52  ;;  %v1081_v27 = vpop.f32.mrb[31].mxu0  ;;  %v1691_v8 = vpop.f32.mrb[31].mxu1 }
 0x19a   : > { %7534 = vst [vmem:[#allocation18_spill] sm:$0xff] %v6585_v0  ;;  %7535 = vst [vmem:[#allocation19_spill] sm:$0xff] %v6588_v11  ;;  %v6601_v12 = vadd.f32 %v6314_v52, %v1081_v27  ;;  %v6604_v30 = vadd.f32 %v6314_v52, %v1691_v8 }
 0x19b   : > { %7536 = vst [vmem:[#allocation20_spill] sm:$0xff] %v6593_v48  ;;  %7537 = vst [vmem:[#allocation21_spill] sm:$0xff] %v6596_v3 }
 0x19c   : > { %7538 = vst [vmem:[#allocation22_spill] sm:$0xff] %v6601_v12  ;;  %7539 = vst [vmem:[#allocation23_spill] sm:$0xff] %v6604_v30 }
 0x19e   : > { %v5147_v36 = vpop.f32.mrb[32].mxu0  ;;  %v5215_v51 = vpop.f32.mrb[32].mxu1 }
 0x19f   : > { %v6611_v35 = vadd.f32 %v5147_v36, %v6314_v52  ;;  %v6614_v32 = vadd.f32 %v5215_v51, %v6314_v52  ;;  %v1094_v57 = vpop.f32.mrb[33].mxu0  ;;  %v1704_v27 = vpop.f32.mrb[33].mxu1 }
 0x1a0   : > { %v6617_v11 = vadd.f32 %v6314_v52, %v1094_v57  ;;  %v6620_v8 = vadd.f32 %v6314_v52, %v1704_v27  ;;  %v5148_v25 = vpop.f32.mrb[34].mxu0  ;;  %v5216_v3 = vpop.f32.mrb[34].mxu1 }
 0x1a1   : > { %7540 = vst [vmem:[#allocation24_spill] sm:$0xff] %v6611_v35  ;;  %7541 = vst [vmem:[#allocation25_spill] sm:$0xff] %v6614_v32  ;;  %v6625_v30 = vadd.f32 %v5148_v25, %v6314_v52  ;;  %v6628_v36 = vadd.f32 %v5216_v3, %v6314_v52  ;;  %v1097_v51 = vpop.f32.mrb[35].mxu0  ;;  %v1707_v12 = vpop.f32.mrb[35].mxu1 }
 0x1a2   : > { %7542 = vst [vmem:[#allocation26_spill] sm:$0xff] %v6617_v11  ;;  %7543 = vst [vmem:[#allocation27_spill] sm:$0xff] %v6620_v8  ;;  %v6633_v48 = vadd.f32 %v6314_v52, %v1097_v51  ;;  %v6636_v27 = vadd.f32 %v6314_v52, %v1707_v12 }
 0x1a3   : > { %7544 = vst [vmem:[#allocation28_spill] sm:$0xff] %v6625_v30  ;;  %7545 = vst [vmem:[#allocation29_spill] sm:$0xff] %v6628_v36 }
 0x1a4   : > { %7546 = vst [vmem:[#allocation30_spill] sm:$0xff] %v6633_v48  ;;  %7547 = vst [vmem:[#allocation31_spill] sm:$0xff] %v6636_v27 }
 0x1a6   : > { %v5151_v32 = vpop.f32.mrb[36].mxu0  ;;  %v5219_v3 = vpop.f32.mrb[36].mxu1 }
 0x1a7   : > { %v6643_v35 = vadd.f32 %v5151_v32, %v6314_v52  ;;  %v6646_v0 = vadd.f32 %v5219_v3, %v6314_v52  ;;  %v1110_v57 = vpop.f32.mrb[37].mxu0  ;;  %v1720_v51 = vpop.f32.mrb[37].mxu1 }
 0x1a8   : > { %v6649_v8 = vadd.f32 %v6314_v52, %v1110_v57  ;;  %v6652_v12 = vadd.f32 %v6314_v52, %v1720_v51  ;;  %v5152_v18 = vpop.f32.mrb[38].mxu0  ;;  %v5220_v36 = vpop.f32.mrb[38].mxu1 }
 0x1a9   : > { %7548 = vst [vmem:[#allocation32_spill] sm:$0xff] %v6643_v35  ;;  %7549 = vst [vmem:[#allocation33_spill] sm:$0xff] %v6646_v0  ;;  %v6657_v27 = vadd.f32 %v5152_v18, %v6314_v52  ;;  %v6660_v32 = vadd.f32 %v5220_v36, %v6314_v52  ;;  %v1113_v3 = vpop.f32.mrb[39].mxu0  ;;  %v1723_v48 = vpop.f32.mrb[39].mxu1 }
 0x1aa   : > { %7550 = vst [vmem:[#allocation34_spill] sm:$0xff] %v6649_v8  ;;  %7551 = vst [vmem:[#allocation35_spill] sm:$0xff] %v6652_v12  ;;  %v6665_v30 = vadd.f32 %v6314_v52, %v1113_v3  ;;  %v6668_v51 = vadd.f32 %v6314_v52, %v1723_v48 }
 0x1ab   : > { %7552 = vst [vmem:[#allocation36_spill] sm:$0xff] %v6657_v27  ;;  %7553 = vst [vmem:[#allocation37_spill] sm:$0xff] %v6660_v32 }
 0x1ac   : > { %7554 = vst [vmem:[#allocation38_spill] sm:$0xff] %v6665_v30  ;;  %7555 = vst [vmem:[#allocation39_spill] sm:$0xff] %v6668_v51 }
 0x1ae   : > { %v5155_v0 = vpop.f32.mrb[40].mxu0  ;;  %v5223_v36 = vpop.f32.mrb[40].mxu1 }
 0x1af   : > { %v6675_v35 = vadd.f32 %v5155_v0, %v6314_v52  ;;  %v6678_v11 = vadd.f32 %v5223_v36, %v6314_v52  ;;  %v1126_v57 = vpop.f32.mrb[41].mxu0  ;;  %v1736_v3 = vpop.f32.mrb[41].mxu1 }
 0x1b0   : > { %v6681_v12 = vadd.f32 %v6314_v52, %v1126_v57  ;;  %v6684_v48 = vadd.f32 %v6314_v52, %v1736_v3  ;;  %v5156_v25 = vpop.f32.mrb[42].mxu0  ;;  %v5224_v32 = vpop.f32.mrb[42].mxu1 }
 0x1b1   : > { %7556 = vst [vmem:[#allocation40_spill] sm:$0xff] %v6675_v35  ;;  %7557 = vst [vmem:[#allocation41_spill] sm:$0xff] %v6678_v11  ;;  %v6689_v51 = vadd.f32 %v5156_v25, %v6314_v52  ;;  %v6692_v0 = vadd.f32 %v5224_v32, %v6314_v52  ;;  %v1129_v36 = vpop.f32.mrb[43].mxu0  ;;  %v1739_v30 = vpop.f32.mrb[43].mxu1 }
 0x1b2   : > { %7558 = vst [vmem:[#allocation42_spill] sm:$0xff] %v6681_v12  ;;  %7559 = vst [vmem:[#allocation43_spill] sm:$0xff] %v6684_v48  ;;  %v6697_v27 = vadd.f32 %v6314_v52, %v1129_v36  ;;  %v6700_v3 = vadd.f32 %v6314_v52, %v1739_v30 }
 0x1b3   : > { %7560 = vst [vmem:[#allocation44_spill] sm:$0xff] %v6689_v51  ;;  %7561 = vst [vmem:[#allocation45_spill] sm:$0xff] %v6692_v0 }
 0x1b4   : > { %7562 = vst [vmem:[#allocation46_spill] sm:$0xff] %v6697_v27  ;;  %7563 = vst [vmem:[#allocation47_spill] sm:$0xff] %v6700_v3 }
 0x1b6   : > { %v5159_v11 = vpop.f32.mrb[44].mxu0  ;;  %v5227_v32 = vpop.f32.mrb[44].mxu1 }
 0x1b7   : > { %v6707_v35 = vadd.f32 %v5159_v11, %v6314_v52  ;;  %v6710_v8 = vadd.f32 %v5227_v32, %v6314_v52  ;;  %v1142_v57 = vpop.f32.mrb[45].mxu0  ;;  %v1752_v36 = vpop.f32.mrb[45].mxu1 }
 0x1b8   : > { %v6713_v48 = vadd.f32 %v6314_v52, %v1142_v57  ;;  %v6716_v30 = vadd.f32 %v6314_v52, %v1752_v36  ;;  %v5160_v18 = vpop.f32.mrb[46].mxu0  ;;  %v5228_v0 = vpop.f32.mrb[46].mxu1 }
 0x1b9   : > { %7564 = vst [vmem:[#allocation48_spill] sm:$0xff] %v6707_v35  ;;  %7565 = vst [vmem:[#allocation49_spill] sm:$0xff] %v6710_v8  ;;  %v6721_v3 = vadd.f32 %v5160_v18, %v6314_v52  ;;  %v6724_v11 = vadd.f32 %v5228_v0, %v6314_v52  ;;  %v1145_v32 = vpop.f32.mrb[47].mxu0  ;;  %v1755_v27 = vpop.f32.mrb[47].mxu1 }
 0x1ba   : > { %7566 = vst [vmem:[#allocation50_spill] sm:$0xff] %v6713_v48  ;;  %7567 = vst [vmem:[#allocation51_spill] sm:$0xff] %v6716_v30  ;;  %v6729_v51 = vadd.f32 %v6314_v52, %v1145_v32  ;;  %v6732_v36 = vadd.f32 %v6314_v52, %v1755_v27 }
 0x1bb   : > { %7568 = vst [vmem:[#allocation52_spill] sm:$0xff] %v6721_v3  ;;  %7569 = vst [vmem:[#allocation53_spill] sm:$0xff] %v6724_v11 }
 0x1bc   : > { %7570 = vst [vmem:[#allocation54_spill] sm:$0xff] %v6729_v51  ;;  %7571 = vst [vmem:[#allocation55_spill] sm:$0xff] %v6732_v36 }
 0x1be   : > { %v5163_v8 = vpop.f32.mrb[48].mxu0  ;;  %v5231_v0 = vpop.f32.mrb[48].mxu1 }
 0x1bf   : > { %v6739_v35 = vadd.f32 %v5163_v8, %v6314_v52  ;;  %v6742_v12 = vadd.f32 %v5231_v0, %v6314_v52  ;;  %v1158_v57 = vpop.f32.mrb[49].mxu0  ;;  %v1768_v32 = vpop.f32.mrb[49].mxu1 }
 0x1c0   : > { %v6745_v30 = vadd.f32 %v6314_v52, %v1158_v57  ;;  %v6748_v27 = vadd.f32 %v6314_v52, %v1768_v32  ;;  %v5164_v25 = vpop.f32.mrb[50].mxu0  ;;  %v5232_v11 = vpop.f32.mrb[50].mxu1 }
 0x1c1   : > { %7572 = vst [vmem:[#allocation56_spill] sm:$0xff] %v6739_v35  ;;  %7573 = vst [vmem:[#allocation57_spill] sm:$0xff] %v6742_v12  ;;  %v6753_v36 = vadd.f32 %v5164_v25, %v6314_v52  ;;  %v6756_v8 = vadd.f32 %v5232_v11, %v6314_v52  ;;  %v1161_v0 = vpop.f32.mrb[51].mxu0  ;;  %v1771_v51 = vpop.f32.mrb[51].mxu1 }
 0x1c2   : > { %7574 = vst [vmem:[#allocation58_spill] sm:$0xff] %v6745_v30  ;;  %7575 = vst [vmem:[#allocation59_spill] sm:$0xff] %v6748_v27  ;;  %v6761_v3 = vadd.f32 %v6314_v52, %v1161_v0  ;;  %v6764_v32 = vadd.f32 %v6314_v52, %v1771_v51 }
 0x1c3   : > { %7576 = vst [vmem:[#allocation60_spill] sm:$0xff] %v6753_v36  ;;  %7577 = vst [vmem:[#allocation61_spill] sm:$0xff] %v6756_v8 }
 0x1c4   : > { %7578 = vst [vmem:[#allocation62_spill] sm:$0xff] %v6761_v3  ;;  %7579 = vst [vmem:[#allocation63_spill] sm:$0xff] %v6764_v32 }
 0x1c6   : > { %v5167_v12 = vpop.f32.mrb[52].mxu0  ;;  %v5235_v11 = vpop.f32.mrb[52].mxu1 }
 0x1c7   : > { %v6771_v35 = vadd.f32 %v5167_v12, %v6314_v52  ;;  %v6774_v48 = vadd.f32 %v5235_v11, %v6314_v52  ;;  %v1174_v57 = vpop.f32.mrb[53].mxu0  ;;  %v1784_v0 = vpop.f32.mrb[53].mxu1 }
 0x1c8   : > { %v6777_v27 = vadd.f32 %v6314_v52, %v1174_v57  ;;  %v6780_v51 = vadd.f32 %v6314_v52, %v1784_v0  ;;  %v5168_v18 = vpop.f32.mrb[54].mxu0  ;;  %v5236_v8 = vpop.f32.mrb[54].mxu1 }
 0x1c9   : > { %7580 = vst [vmem:[#allocation64_spill] sm:$0xff] %v6771_v35  ;;  %7581 = vst [vmem:[#allocation65_spill] sm:$0xff] %v6774_v48  ;;  %v6785_v32 = vadd.f32 %v5168_v18, %v6314_v52  ;;  %v6788_v12 = vadd.f32 %v5236_v8, %v6314_v52  ;;  %v1177_v11 = vpop.f32.mrb[55].mxu0  ;;  %v1787_v3 = vpop.f32.mrb[55].mxu1 }
 0x1ca   : > { %7582 = vst [vmem:[#allocation66_spill] sm:$0xff] %v6777_v27  ;;  %7583 = vst [vmem:[#allocation67_spill] sm:$0xff] %v6780_v51  ;;  %v6793_v36 = vadd.f32 %v6314_v52, %v1177_v11  ;;  %v6796_v0 = vadd.f32 %v6314_v52, %v1787_v3 }
 0x1cb   : > { %7584 = vst [vmem:[#allocation68_spill] sm:$0xff] %v6785_v32  ;;  %7585 = vst [vmem:[#allocation69_spill] sm:$0xff] %v6788_v12 }
 0x1cc   : > { %7586 = vst [vmem:[#allocation70_spill] sm:$0xff] %v6793_v36  ;;  %7587 = vst [vmem:[#allocation71_spill] sm:$0xff] %v6796_v0 }
 0x1ce   : > { %v5171_v48 = vpop.f32.mrb[56].mxu0  ;;  %v5239_v8 = vpop.f32.mrb[56].mxu1 }
 0x1cf   : > { %v6803_v35 = vadd.f32 %v5171_v48, %v6314_v52  ;;  %v6806_v30 = vadd.f32 %v5239_v8, %v6314_v52  ;;  %v1190_v57 = vpop.f32.mrb[57].mxu0  ;;  %v1800_v11 = vpop.f32.mrb[57].mxu1 }
 0x1d0   : > { %v6809_v51 = vadd.f32 %v6314_v52, %v1190_v57  ;;  %v6812_v3 = vadd.f32 %v6314_v52, %v1800_v11  ;;  %v5172_v25 = vpop.f32.mrb[58].mxu0  ;;  %v5240_v12 = vpop.f32.mrb[58].mxu1 }
 0x1d1   : > { %7588 = vst [vmem:[#allocation72_spill] sm:$0xff] %v6803_v35  ;;  %7589 = vst [vmem:[#allocation73_spill] sm:$0xff] %v6806_v30  ;;  %v6817_v0 = vadd.f32 %v5172_v25, %v6314_v52  ;;  %v6820_v48 = vadd.f32 %v5240_v12, %v6314_v52  ;;  %v1193_v8 = vpop.f32.mrb[59].mxu0  ;;  %v1803_v36 = vpop.f32.mrb[59].mxu1  ;;  %v7604_v25 = vmax.f32 %v6319_v55, %v6322_v56 }
 0x1d2   : > { %7590 = vst [vmem:[#allocation74_spill] sm:$0xff] %v6809_v51  ;;  %7591 = vst [vmem:[#allocation75_spill] sm:$0xff] %v6812_v3  ;;  %v6825_v32 = vadd.f32 %v6314_v52, %v1193_v8  ;;  %v6828_v11 = vadd.f32 %v6314_v52, %v1803_v36  ;;  %v7607_v55 = vmax.f32 %v6345_v9, %v6348_v10 }
 0x1d3   : > { %7592 = vst [vmem:[#allocation76_spill] sm:$0xff] %v6817_v0  ;;  %7593 = vst [vmem:[#allocation77_spill] sm:$0xff] %v6820_v48 }
 0x1d4   : > { %7594 = vst [vmem:[#allocation78_spill] sm:$0xff] %v6825_v32  ;;  %7595 = vst [vmem:[#allocation79_spill] sm:$0xff] %v6828_v11 }
 0x1d6   : > { %v5175_v30 = vpop.f32.mrb[60].mxu0  ;;  %v5243_v12 = vpop.f32.mrb[60].mxu1 }
 0x1d7   : > { %v6835_v35 = vadd.f32 %v5175_v30, %v6314_v52  ;;  %v6838_v27 = vadd.f32 %v5243_v12, %v6314_v52  ;;  %v1206_v57 = vpop.f32.mrb[61].mxu0  ;;  %v1816_v8 = vpop.f32.mrb[61].mxu1 }
 0x1d8   : > { %v6841_v3 = vadd.f32 %v6314_v52, %v1206_v57  ;;  %v6844_v36 = vadd.f32 %v6314_v52, %v1816_v8  ;;  %v5176_v18 = vpop.f32.mrb[62].mxu0  ;;  %v5244_v48 = vpop.f32.mrb[62].mxu1 }
 0x1d9   : > { %7596 = vst [vmem:[#allocation80_spill] sm:$0xff] %v6835_v35  ;;  %7597 = vst [vmem:[#allocation81_spill] sm:$0xff] %v6838_v27  ;;  %v6849_v11 = vadd.f32 %v5176_v18, %v6314_v52  ;;  %v6852_v30 = vadd.f32 %v5244_v48, %v6314_v52  ;;  %v1209_v12 = vpop.f32.mrb[63].mxu0  ;;  %v1819_v32 = vpop.f32.mrb[63].mxu1 }
 0x1da   : > { %7598 = vst [vmem:[#allocation82_spill] sm:$0xff] %v6841_v3  ;;  %7599 = vst [vmem:[#allocation83_spill] sm:$0xff] %v6844_v36  ;;  %v6857_v0 = vadd.f32 %v6314_v52, %v1209_v12  ;;  %v6860_v8 = vadd.f32 %v6314_v52, %v1819_v32 }
 0x1db   : > { %7600 = vst [vmem:[#allocation84_spill] sm:$0xff] %v6849_v11  ;;  %7601 = vst [vmem:[#allocation85_spill] sm:$0xff] %v6852_v30 }
 0x1dc   : > { %7602 = vst [vmem:[#allocation86_spill] sm:$0xff] %v6857_v0  ;;  %7603 = vst [vmem:[#allocation87_spill] sm:$0xff] %v6860_v8 }
 0x1de   : > { %v5251_v27 = vpop.f32.mrb[64].mxu0  ;;  %v5319_v48 = vpop.f32.mrb[64].mxu1 }
 0x1df   : > { %v2259_v35 = vadd.f32 %v5251_v27, %v6314_v52  ;;  %v2933_v51 = vadd.f32 %v5319_v48, %v6314_v52  ;;  %v2250_v43 = vpop.f32.mrb[65].mxu0  ;;  %v2924_v57 = vpop.f32.mrb[65].mxu1  ;;  %v7605_v27 = vmax.f32 %v6327_v61, %v6330_v62 }
 0x1e0   : > { %v2251_v12 = vadd.f32 %v6314_v52, %v2250_v43  ;;  %v2925_v32 = vadd.f32 %v6314_v52, %v2924_v57  ;;  %v5252_v36 = vpop.f32.mrb[66].mxu0  ;;  %v5320_v3 = vpop.f32.mrb[66].mxu1  ;;  %v7606_v57 = vmax.f32 %v6337_v4, %v6340_v5 }
 0x1e1   : > { %v2507_v30 = vmax.f32 %v7604_v25, %v2259_v35  ;;  %v2262_v18 = vadd.f32 %v5252_v36, %v6314_v52  ;;  %v2253_v8 = vpop.f32.mrb[67].mxu0  ;;  %v2927_v0 = vpop.f32.mrb[67].mxu1  ;;  %v2936_v26 = vadd.f32 %v5320_v3, %v6314_v52 }
 0x1e2   : > { %v2505_v48 = vmax.f32 %v7605_v27, %v2251_v12  ;;  %v2254_v11 = vadd.f32 %v6314_v52, %v2253_v8  ;;  %v2928_v35 = vadd.f32 %v6314_v52, %v2927_v0 }
 0x1e3   : > { %v3181_v43 = vmax.f32 %v2507_v30, %v2933_v51  ;;  %v2508_v59 = vmax.f32 %v7606_v57, %v2262_v18 }
 0x1e4   : > { %v3179_v1 = vmax.f32 %v2505_v48, %v2925_v32  ;;  %v2506_v56 = vmax.f32 %v7607_v55, %v2254_v11 }
 0x1e5   : > { %v3182_v61 = vmax.f32 %v2508_v59, %v2936_v26  ;;  %v3245_v51 = vmax.f32 %v3181_v43, 0.0  ;;  %v7608_v26 = vmax.f32 %v6359_v15, %v6362_v16  ;;  %v7610_v15 = vmax.f32 %v6377_v28, %v6380_v29 }
 0x1e6   : > { %v3180_v62 = vmax.f32 %v2506_v56, %v2928_v35  ;;  %v5255_v25 = vpop.f32.mrb[68].mxu0  ;;  %v5323_v36 = vpop.f32.mrb[68].mxu1  ;;  %v3243_v18 = vmax.f32 %v3179_v1, 0.0  ;;  %v7609_v1 = vmax.f32 %v6367_v21, %v6370_v22  ;;  %v7611_v21 = vmax.f32 %v6385_v33, %v6388_v34 }
 0x1e7   : > { %v3246_v30 = vmax.f32 %v3182_v61, 0.0  ;;  %v2275_v4 = vadd.f32 %v5255_v25, %v6314_v52  ;;  %v2949_v5 = vadd.f32 %v5323_v36, %v6314_v52  ;;  %v2266_v3 = vpop.f32.mrb[69].mxu0  ;;  %v2940_v8 = vpop.f32.mrb[69].mxu1 }
 0x1e8   : > { %v3244_v12 = vmax.f32 %v3180_v62, 0.0  ;;  %v2267_v9 = vadd.f32 %v6314_v52, %v2266_v3  ;;  %v2941_v10 = vadd.f32 %v6314_v52, %v2940_v8  ;;  %v5256_v0 = vpop.f32.mrb[70].mxu0  ;;  %v5324_v11 = vpop.f32.mrb[70].mxu1 }
 0x1e9   : > { %v4790_v59 = vpack.c.bf16 %v3246_v30, %v3245_v51  ;;  %v2511_v32 = vmax.f32 %v7608_v26, %v2275_v4  ;;  %v2278_v27 = vadd.f32 %v5256_v0, %v6314_v52  ;;  %v2269_v48 = vpop.f32.mrb[71].mxu0  ;;  %v2943_v43 = vpop.f32.mrb[71].mxu1  ;;  %v2952_v61 = vadd.f32 %v5324_v11, %v6314_v52 }
 0x1ea   : > { %v4785_v57 = vpack.c.bf16 %v3244_v12, %v3243_v18  ;;  %v2509_v55 = vmax.f32 %v7609_v1, %v2267_v9  ;;  %v2270_v56 = vadd.f32 %v6314_v52, %v2269_v48  ;;  %v2944_v25 = vadd.f32 %v6314_v52, %v2943_v43 }
 0x1eb   : > { %4942 = vst [vmem:[%s6900_s12 + $0x8] sm:$0xff] %v4790_v59   ;;  %v3185_v35 = vmax.f32 %v2511_v32, %v2949_v5  ;;  %v2512_v16 = vmax.f32 %v7610_v15, %v2278_v27  ;;  %v7612_v59 = vmax.f32 %v6399_v39, %v6402_v40 }
 0x1ec   : > { %4786 = vst [vmem:[%s6900_s12] sm:$0xff] %v4785_v57   ;;  %v3183_v62 = vmax.f32 %v2509_v55, %v2941_v10  ;;  %v2510_v22 = vmax.f32 %v7611_v21, %v2270_v56  ;;  %v7613_v57 = vmax.f32 %v6407_v45, %v6410_v46 }
 0x1ed   : > { %v3186_v36 = vmax.f32 %v2512_v16, %v2952_v61  ;;  %v3249_v3 = vmax.f32 %v3185_v35, 0.0  ;;  %v7614_v35 = vmax.f32 %v6417_v53, %v6420_v54  ;;  %v7615_v16 = vmax.f32 %v6425_v60, %v6428_v63 }
 0x1ee   : > { %v3184_v51 = vmax.f32 %v2510_v22, %v2944_v25  ;;  %v5259_v30 = vpop.f32.mrb[72].mxu0  ;;  %v5327_v4 = vpop.f32.mrb[72].mxu1  ;;  %v3247_v12 = vmax.f32 %v3183_v62, 0.0 }
 0x1ef   : > { %v3250_v5 = vmax.f32 %v3186_v36, 0.0  ;;  %v2291_v8 = vadd.f32 %v5259_v30, %v6314_v52  ;;  %v2965_v28 = vadd.f32 %v5327_v4, %v6314_v52  ;;  %v2282_v29 = vpop.f32.mrb[73].mxu0  ;;  %v2956_v18 = vpop.f32.mrb[73].mxu1 }
 0x1f0   : > { %v3248_v9 = vmax.f32 %v3184_v51, 0.0  ;;  %v2283_v33 = vadd.f32 %v6314_v52, %v2282_v29  ;;  %v2957_v34 = vadd.f32 %v6314_v52, %v2956_v18  ;;  %v5260_v10 = vpop.f32.mrb[74].mxu0  ;;  %v5328_v0 = vpop.f32.mrb[74].mxu1  ;;  %v7616_v29 = vmax.f32 %v6439_v7, %v6442_v13 }
 0x1f1   : > { %v4800_v11 = vpack.c.bf16 %v3250_v5, %v3249_v3  ;;  %v2515_v26 = vmax.f32 %v7612_v59, %v2291_v8  ;;  %v2294_v32 = vadd.f32 %v5260_v10, %v6314_v52  ;;  %v2285_v27 = vpop.f32.mrb[75].mxu0  ;;  %v2959_v48 = vpop.f32.mrb[75].mxu1  ;;  %v2968_v39 = vadd.f32 %v5328_v0, %v6314_v52 }
 0x1f2   : > { %v4795_v43 = vpack.c.bf16 %v3248_v9, %v3247_v12  ;;  %v2513_v1 = vmax.f32 %v7613_v57, %v2283_v33  ;;  %v2286_v55 = vadd.f32 %v6314_v52, %v2285_v27  ;;  %v2960_v62 = vadd.f32 %v6314_v52, %v2959_v48 }
 0x1f3   : > { %4944 = vst [vmem:[%s6900_s12 + $0x18] sm:$0xff] %v4800_v11   ;;  %v3189_v56 = vmax.f32 %v2515_v26, %v2965_v28  ;;  %v2516_v15 = vmax.f32 %v7614_v35, %v2294_v32  ;;  %v7617_v10 = vmax.f32 %v6447_v20, %v6450_v23  ;;  %v7618_v26 = vmax.f32 %v6457_v37, %v6460_v38 }
 0x1f4   : > { %4943 = vst [vmem:[%s6900_s12 + $0x10] sm:$0xff] %v4795_v43   ;;  %v3187_v40 = vmax.f32 %v2513_v1, %v2957_v34  ;;  %v2514_v61 = vmax.f32 %v7615_v16, %v2286_v55  ;;  %v7619_v27 = vmax.f32 %v6465_v44, %v6468_v47 }
 0x1f5   : > { %v3190_v45 = vmax.f32 %v2516_v15, %v2968_v39  ;;  %v3253_v25 = vmax.f32 %v3189_v56, 0.0 }
 0x1f6   : > { %v3188_v46 = vmax.f32 %v2514_v61, %v2960_v62  ;;  %v5263_v21 = vpop.f32.mrb[76].mxu0  ;;  %v5331_v22 = vpop.f32.mrb[76].mxu1  ;;  %v3251_v4 = vmax.f32 %v3187_v40, 0.0 }
 0x1f7   : > { %v3254_v36 = vmax.f32 %v3190_v45, 0.0  ;;  %v2307_v51 = vadd.f32 %v5263_v21, %v6314_v52  ;;  %v2981_v53 = vadd.f32 %v5331_v22, %v6314_v52  ;;  %v2298_v54 = vpop.f32.mrb[77].mxu0  ;;  %v2972_v30 = vpop.f32.mrb[77].mxu1  ;;  %v7620_v45 = vmax.f32 %v6479_v58, %v6482_v2 }
 0x1f8   : > { %v3252_v3 = vmax.f32 %v3188_v46, 0.0  ;;  %v2299_v60 = vadd.f32 %v6314_v52, %v2298_v54  ;;  %v2973_v63 = vadd.f32 %v6314_v52, %v2972_v30  ;;  %v5264_v5 = vpop.f32.mrb[78].mxu0  ;;  %v5332_v8 = vpop.f32.mrb[78].mxu1 }
 0x1f9   : > { %v4810_v28 = vpack.c.bf16 %v3254_v36, %v3253_v25  ;;  %v2519_v18 = vmax.f32 %v7616_v29, %v2307_v51  ;;  %v2310_v12 = vadd.f32 %v5264_v5, %v6314_v52  ;;  %v2301_v9 = vpop.f32.mrb[79].mxu0  ;;  %v2975_v33 = vpop.f32.mrb[79].mxu1  ;;  %v2984_v7 = vadd.f32 %v5332_v8, %v6314_v52 }
 0x1fa   : > { %v4805_v34 = vpack.c.bf16 %v3252_v3, %v3251_v4  ;;  %v2517_v0 = vmax.f32 %v7617_v10, %v2299_v60  ;;  %v2302_v11 = vadd.f32 %v6314_v52, %v2301_v9  ;;  %v2976_v43 = vadd.f32 %v6314_v52, %v2975_v33 }
 0x1fb   : > { %4946 = vst [vmem:[%s6900_s12 + $0x28] sm:$0xff] %v4810_v28   ;;  %v3193_v59 = vmax.f32 %v2519_v18, %v2981_v53  ;;  %v2520_v32 = vmax.f32 %v7618_v26, %v2310_v12  ;;  %v7621_v51 = vmax.f32 %v6487_v19, %v6490_v24  ;;  %v7622_v4 = vmax.f32 %v6495_v41, %v6498_v42  ;;  %v6981_v41 = vld [vmem:[%s7428_s2] ss:$0 sm:$0xff] }
 0x1fc   : > { %4945 = vst [vmem:[%s6900_s12 + $0x20] sm:$0xff] %v4805_v34   ;;  %v3191_v13 = vmax.f32 %v2517_v0, %v2973_v63  ;;  %v2518_v48 = vmax.f32 %v7619_v27, %v2302_v11  ;;  %v7623_v60 = vmax.f32 %v6503_v49, %v6506_v14 }
 0x1fd   : > { %v3194_v20 = vmax.f32 %v2520_v32, %v2984_v7  ;;  %v3257_v55 = vmax.f32 %v3193_v59, 0.0  ;;  %v7624_v59 = vmax.f32 %v6515_v6, %v6518_v50 }
 0x1fe   : > { %v3192_v23 = vmax.f32 %v2518_v48, %v2976_v43  ;;  %v5267_v57 = vpop.f32.mrb[80].mxu0  ;;  %v5335_v1 = vpop.f32.mrb[80].mxu1  ;;  %v3255_v39 = vmax.f32 %v3191_v13, 0.0  ;;  %v7625_v48 = vmax.f32 %v6521_v31, %v6524_v17 }
 0x1ff   : > { %v3258_v56 = vmax.f32 %v3194_v20, 0.0  ;;  %v2323_v35 = vadd.f32 %v5267_v57, %v6314_v52  ;;  %v2997_v37 = vadd.f32 %v5335_v1, %v6314_v52  ;;  %v2314_v38 = vpop.f32.mrb[81].mxu0  ;;  %v2988_v15 = vpop.f32.mrb[81].mxu1  ;;  %v7626_v57 = vld [vmem:[#allocation4_spill] sm:$0xff]  ;;  %v7627_v1 = vld [vmem:[#allocation5_spill] sm:$0xff] }
 0x200   : > { %v3256_v40 = vmax.f32 %v3192_v23, 0.0  ;;  %v2315_v44 = vadd.f32 %v6314_v52, %v2314_v38  ;;  %v2989_v47 = vadd.f32 %v6314_v52, %v2988_v15  ;;  %v5268_v16 = vpop.f32.mrb[82].mxu0  ;;  %v5336_v61 = vpop.f32.mrb[82].mxu1 }
 0x201   : > { %v4820_v62 = vpack.c.bf16 %v3258_v56, %v3257_v55  ;;  %v2523_v46 = vmax.f32 %v7620_v45, %v2323_v35  ;;  %v2326_v21 = vadd.f32 %v5268_v16, %v6314_v52  ;;  %v2317_v22 = vpop.f32.mrb[83].mxu0  ;;  %v2991_v25 = vpop.f32.mrb[83].mxu1  ;;  %v3000_v58 = vadd.f32 %v5336_v61, %v6314_v52  ;;  %v7629_v35 = vld [vmem:[#allocation6_spill] sm:$0xff] }
 0x202   : > { %v4815_v36 = vpack.c.bf16 %v3256_v40, %v3255_v39  ;;  %v2521_v53 = vmax.f32 %v7621_v51, %v2315_v44  ;;  %v2318_v54 = vadd.f32 %v6314_v52, %v2317_v22  ;;  %v2992_v5 = vadd.f32 %v6314_v52, %v2991_v25 }
 0x203   : > { %4948 = vst [vmem:[%s6900_s12 + $0x38] sm:$0xff] %v4820_v62   ;;  %v3197_v30 = vmax.f32 %v2523_v46, %v2997_v37  ;;  %v2524_v3 = vmax.f32 %v7622_v4, %v2326_v21  ;;  %v7628_v55 = vmax.f32 %v7626_v57, %v7627_v1  ;;  %v7630_v37 = vld [vmem:[#allocation7_spill] sm:$0xff]  ;;  %v7633_v4 = vld [vmem:[#allocation9_spill] sm:$0xff] }
 0x204   : > { %4947 = vst [vmem:[%s6900_s12 + $0x30] sm:$0xff] %v4815_v36   ;;  %v3195_v2 = vmax.f32 %v2521_v53, %v2989_v47  ;;  %v2522_v63 = vmax.f32 %v7623_v60, %v2318_v54  ;;  %v7631_v38 = vmax.f32 %v7629_v35, %v7630_v37  ;;  %v7644_v37 = vld [vmem:[#allocation16_spill] sm:$0xff] }
 0x205   : > { %v3198_v19 = vmax.f32 %v2524_v3, %v3000_v58  ;;  %v3261_v29 = vmax.f32 %v3197_v30, 0.0  ;;  %v7632_v30 = vld [vmem:[#allocation8_spill] sm:$0xff] }
 0x206   : > { %v3196_v24 = vmax.f32 %v2522_v63, %v2992_v5  ;;  %v5271_v8 = vpop.f32.mrb[84].mxu0  ;;  %v5339_v28 = vpop.f32.mrb[84].mxu1  ;;  %v3259_v14 = vmax.f32 %v3195_v2, 0.0  ;;  %v7634_v3 = vmax.f32 %v7632_v30, %v7633_v4  ;;  %v7654_v30 = vld [vmem:[#allocation23_spill] sm:$0xff] }
 0x207   : > { %v3262_v18 = vmax.f32 %v3198_v19, 0.0  ;;  %v2339_v42 = vadd.f32 %v6981_v41, %v5271_v8  ;;  %v3013_v12 = vadd.f32 %v6981_v41, %v5339_v28  ;;  %v2330_v9 = vpop.f32.mrb[85].mxu0  ;;  %v3004_v49 = vpop.f32.mrb[85].mxu1  ;;  %v7635_v19 = vld [vmem:[#allocation10_spill] sm:$0xff] }
 0x208   : > { %v3260_v52 = vmax.f32 %v3196_v24, 0.0  ;;  %v2331_v33 = vadd.f32 %v6981_v41, %v2330_v9  ;;  %v3005_v34 = vadd.f32 %v6981_v41, %v3004_v49  ;;  %v5272_v10 = vpop.f32.mrb[86].mxu0  ;;  %v5340_v0 = vpop.f32.mrb[86].mxu1  ;;  %v7636_v24 = vld [vmem:[#allocation11_spill] sm:$0xff] }
 0x209   : > { %v4830_v11 = vpack.c.bf16 %v3262_v18, %v3261_v29  ;;  %v2527_v26 = vmax.f32 %v7624_v59, %v2339_v42  ;;  %v2342_v32 = vadd.f32 %v6981_v41, %v5272_v10  ;;  %v2333_v7 = vpop.f32.mrb[87].mxu0  ;;  %v3007_v13 = vpop.f32.mrb[87].mxu1  ;;  %v3016_v6 = vadd.f32 %v6981_v41, %v5340_v0  ;;  %v7638_v42 = vld [vmem:[#allocation12_spill] sm:$0xff] }
 0x20a   : > { %v4825_v27 = vpack.c.bf16 %v3260_v52, %v3259_v14  ;;  %v2525_v43 = vmax.f32 %v7625_v48, %v2331_v33  ;;  %v2334_v20 = vadd.f32 %v6981_v41, %v2333_v7  ;;  %v3008_v39 = vadd.f32 %v6981_v41, %v3007_v13  ;;  %v7641_v33 = vld [vmem:[#allocation14_spill] sm:$0xff] }
 0x20b   : > { %4950 = vst [vmem:[%s6900_s12 + $0x48] sm:$0xff] %v4830_v11   ;;  %v3201_v23 = vmax.f32 %v2527_v26, %v3013_v12  ;;  %v2528_v56 = vmax.f32 %v7628_v55, %v2342_v32  ;;  %v7637_v8 = vmax.f32 %v7635_v19, %v7636_v24  ;;  %v7639_v12 = vld [vmem:[#allocation13_spill] sm:$0xff] }
 0x20c   : > { %4949 = vst [vmem:[%s6900_s12 + $0x40] sm:$0xff] %v4825_v27   ;;  %v3199_v50 = vmax.f32 %v2525_v43, %v3005_v34  ;;  %v2526_v15 = vmax.f32 %v7631_v38, %v2334_v20  ;;  %v7640_v9 = vmax.f32 %v7638_v42, %v7639_v12  ;;  %v7642_v34 = vld [vmem:[#allocation15_spill] sm:$0xff]  ;;  %v7645_v38 = vld [vmem:[#allocation17_spill] sm:$0xff] }
 0x20d   : > { %v3202_v31 = vmax.f32 %v2528_v56, %v3016_v6  ;;  %v3265_v47 = vmax.f32 %v3201_v23, 0.0  ;;  %v7643_v10 = vmax.f32 %v7641_v33, %v7642_v34  ;;  %v7656_v34 = vld [vmem:[#allocation24_spill] sm:$0xff] }
 0x20e   : > { %v3200_v17 = vmax.f32 %v2526_v15, %v3008_v39  ;;  %v5275_v40 = vpop.f32.mrb[88].mxu0  ;;  %v5343_v44 = vpop.f32.mrb[88].mxu1  ;;  %v3263_v21 = vmax.f32 %v3199_v50, 0.0  ;;  %v7646_v15 = vmax.f32 %v7644_v37, %v7645_v38  ;;  %v7666_v37 = vld [vmem:[#allocation31_spill] sm:$0xff] }
 0x20f   : > { %v3266_v16 = vmax.f32 %v3202_v31, 0.0  ;;  %v2355_v61 = vadd.f32 %v6981_v41, %v5275_v40  ;;  %v3029_v62 = vadd.f32 %v6981_v41, %v5343_v44  ;;  %v2346_v45 = vpop.f32.mrb[89].mxu0  ;;  %v3020_v46 = vpop.f32.mrb[89].mxu1 }
 0x210   : > { %v3264_v22 = vmax.f32 %v3200_v17, 0.0  ;;  %v2347_v25 = vadd.f32 %v6981_v41, %v2346_v45  ;;  %v3021_v36 = vadd.f32 %v6981_v41, %v3020_v46  ;;  %v5276_v51 = vpop.f32.mrb[90].mxu0  ;;  %v5344_v53 = vpop.f32.mrb[90].mxu1 }
 0x211   : > { %v4840_v54 = vpack.c.bf16 %v3266_v16, %v3265_v47  ;;  %v2531_v58 = vmax.f32 %v7634_v3, %v2355_v61  ;;  %v2358_v2 = vadd.f32 %v6981_v41, %v5276_v51  ;;  %v2349_v60 = vpop.f32.mrb[91].mxu0  ;;  %v3023_v63 = vpop.f32.mrb[91].mxu1  ;;  %v3032_v14 = vadd.f32 %v6981_v41, %v5344_v53  ;;  %v7647_v47 = vld [vmem:[#allocation18_spill] sm:$0xff]  ;;  %v7648_v16 = vld [vmem:[#allocation19_spill] sm:$0xff] }
 0x212   : > { %v4835_v5 = vpack.c.bf16 %v3264_v22, %v3263_v21  ;;  %v2529_v28 = vmax.f32 %v7637_v8, %v2347_v25  ;;  %v2350_v29 = vadd.f32 %v6981_v41, %v2349_v60  ;;  %v3024_v11 = vadd.f32 %v6981_v41, %v3023_v63  ;;  %v7650_v21 = vld [vmem:[#allocation20_spill] sm:$0xff]  ;;  %v7651_v22 = vld [vmem:[#allocation21_spill] sm:$0xff] }
 0x213   : > { %4952 = vst [vmem:[%s6900_s12 + $0x58] sm:$0xff] %v4840_v54   ;;  %v3205_v18 = vmax.f32 %v2531_v58, %v3029_v62  ;;  %v2532_v49 = vmax.f32 %v7640_v9, %v2358_v2  ;;  %v7649_v61 = vmax.f32 %v7647_v47, %v7648_v16  ;;  %v7652_v25 = vmax.f32 %v7650_v21, %v7651_v22  ;;  %v7653_v54 = vld [vmem:[#allocation22_spill] sm:$0xff] }
 0x214   : > { %4951 = vst [vmem:[%s6900_s12 + $0x50] sm:$0xff] %v4835_v5   ;;  %v3203_v52 = vmax.f32 %v2529_v28, %v3021_v36  ;;  %v2530_v0 = vmax.f32 %v7643_v10, %v2350_v29  ;;  %v7655_v4 = vmax.f32 %v7653_v54, %v7654_v30  ;;  %v7657_v10 = vld [vmem:[#allocation25_spill] sm:$0xff]  ;;  %v7668_v30 = vld [vmem:[#allocation32_spill] sm:$0xff] }
 0x215   : > { %v3206_v59 = vmax.f32 %v2532_v49, %v3032_v14  ;;  %v3269_v13 = vmax.f32 %v3205_v18, 0.0 }
 0x216   : > { %v3204_v26 = vmax.f32 %v2530_v0, %v3024_v11  ;;  %v5279_v32 = vpop.f32.mrb[92].mxu0  ;;  %v5347_v7 = vpop.f32.mrb[92].mxu1  ;;  %v3267_v57 = vmax.f32 %v3203_v52, 0.0  ;;  %v7658_v0 = vmax.f32 %v7656_v34, %v7657_v10  ;;  %v7678_v34 = vld [vmem:[#allocation39_spill] sm:$0xff] }
 0x217   : > { %v3270_v27 = vmax.f32 %v3206_v59, 0.0  ;;  %v2371_v48 = vadd.f32 %v6981_v41, %v5279_v32  ;;  %v3045_v43 = vadd.f32 %v6981_v41, %v5347_v7  ;;  %v2362_v20 = vpop.f32.mrb[93].mxu0  ;;  %v3036_v23 = vpop.f32.mrb[93].mxu1 }
 0x218   : > { %v3268_v1 = vmax.f32 %v3204_v26, 0.0  ;;  %v2363_v55 = vadd.f32 %v6981_v41, %v2362_v20  ;;  %v3037_v56 = vadd.f32 %v6981_v41, %v3036_v23  ;;  %v5280_v6 = vpop.f32.mrb[94].mxu0  ;;  %v5348_v50 = vpop.f32.mrb[94].mxu1 }
 0x219   : > { %v4850_v35 = vpack.c.bf16 %v3270_v27, %v3269_v13  ;;  %v2535_v39 = vmax.f32 %v7646_v15, %v2371_v48  ;;  %v2374_v31 = vadd.f32 %v6981_v41, %v5280_v6  ;;  %v2365_v17 = vpop.f32.mrb[95].mxu0  ;;  %v3039_v40 = vpop.f32.mrb[95].mxu1  ;;  %v3048_v51 = vadd.f32 %v6981_v41, %v5348_v50  ;;  %v7659_v13 = vld [vmem:[#allocation26_spill] sm:$0xff]  ;;  %v7660_v27 = vld [vmem:[#allocation27_spill] sm:$0xff] }
 0x21a   : > { %v4845_v44 = vpack.c.bf16 %v3268_v1, %v3267_v57  ;;  %v2533_v62 = vmax.f32 %v7649_v61, %v2363_v55  ;;  %v2366_v45 = vadd.f32 %v6981_v41, %v2365_v17  ;;  %v3040_v58 = vadd.f32 %v6981_v41, %v3039_v40  ;;  %v7662_v57 = vld [vmem:[#allocation28_spill] sm:$0xff]  ;;  %v7663_v1 = vld [vmem:[#allocation29_spill] sm:$0xff] }
 0x21b   : > { %4954 = vst [vmem:[%s6900_s12 + $0x68] sm:$0xff] %v4850_v35   ;;  %v3209_v46 = vmax.f32 %v2535_v39, %v3045_v43  ;;  %v2536_v36 = vmax.f32 %v7652_v25, %v2374_v31  ;;  %v7661_v48 = vmax.f32 %v7659_v13, %v7660_v27  ;;  %v7664_v55 = vmax.f32 %v7662_v57, %v7663_v1  ;;  %v7665_v35 = vld [vmem:[#allocation30_spill] sm:$0xff] }
 0x21c   : > { %4953 = vst [vmem:[%s6900_s12 + $0x60] sm:$0xff] %v4845_v44   ;;  %v3207_v53 = vmax.f32 %v2533_v62, %v3037_v56  ;;  %v2534_v3 = vmax.f32 %v7655_v4, %v2366_v45  ;;  %v7667_v38 = vmax.f32 %v7665_v35, %v7666_v37  ;;  %v7669_v4 = vld [vmem:[#allocation33_spill] sm:$0xff]  ;;  %v7680_v37 = vld [vmem:[#allocation40_spill] sm:$0xff] }
 0x21d   : > { %v3210_v2 = vmax.f32 %v2536_v36, %v3048_v51  ;;  %v3273_v19 = vmax.f32 %v3209_v46, 0.0 }
 0x21e   : > { %v3208_v60 = vmax.f32 %v2534_v3, %v3040_v58  ;;  %v5283_v63 = vpop.f32.mrb[96].mxu0  ;;  %v5351_v5 = vpop.f32.mrb[96].mxu1  ;;  %v3271_v42 = vmax.f32 %v3207_v53, 0.0  ;;  %v7670_v3 = vmax.f32 %v7668_v30, %v7669_v4  ;;  %v7690_v30 = vld [vmem:[#allocation47_spill] sm:$0xff] }
 0x21f   : > { %v3274_v24 = vmax.f32 %v3210_v2, 0.0  ;;  %v2387_v8 = vadd.f32 %v6981_v41, %v5283_v63  ;;  %v3061_v28 = vadd.f32 %v6981_v41, %v5351_v5  ;;  %v2378_v29 = vpop.f32.mrb[97].mxu0  ;;  %v3052_v18 = vpop.f32.mrb[97].mxu1 }
 0x220   : > { %v3272_v12 = vmax.f32 %v3208_v60, 0.0  ;;  %v2379_v9 = vadd.f32 %v6981_v41, %v2378_v29  ;;  %v3053_v49 = vadd.f32 %v6981_v41, %v3052_v18  ;;  %v5284_v14 = vpop.f32.mrb[98].mxu0  ;;  %v5352_v52 = vpop.f32.mrb[98].mxu1 }
 0x221   : > { %v4860_v33 = vpack.c.bf16 %v3274_v24, %v3273_v19  ;;  %v2539_v11 = vmax.f32 %v7658_v0, %v2387_v8  ;;  %v2390_v59 = vadd.f32 %v6981_v41, %v5284_v14  ;;  %v2381_v26 = vpop.f32.mrb[99].mxu0  ;;  %v3055_v32 = vpop.f32.mrb[99].mxu1  ;;  %v3064_v6 = vadd.f32 %v6981_v41, %v5352_v52  ;;  %v7671_v19 = vld [vmem:[#allocation34_spill] sm:$0xff]  ;;  %v7672_v24 = vld [vmem:[#allocation35_spill] sm:$0xff] }
 0x222   : > { %v4855_v7 = vpack.c.bf16 %v3272_v12, %v3271_v42  ;;  %v2537_v43 = vmax.f32 %v7661_v48, %v2379_v9  ;;  %v2382_v20 = vadd.f32 %v6981_v41, %v2381_v26  ;;  %v3056_v39 = vadd.f32 %v6981_v41, %v3055_v32  ;;  %v7674_v42 = vld [vmem:[#allocation36_spill] sm:$0xff]  ;;  %v7675_v12 = vld [vmem:[#allocation37_spill] sm:$0xff] }
 0x223   : > { %4956 = vst [vmem:[%s6900_s12 + $0x78] sm:$0xff] %v4860_v33   ;;  %v3213_v23 = vmax.f32 %v2539_v11, %v3061_v28  ;;  %v2540_v56 = vmax.f32 %v7664_v55, %v2390_v59  ;;  %v7673_v8 = vmax.f32 %v7671_v19, %v7672_v24  ;;  %v7676_v9 = vmax.f32 %v7674_v42, %v7675_v12  ;;  %v7677_v33 = vld [vmem:[#allocation38_spill] sm:$0xff] }
 0x224   : > { %4955 = vst [vmem:[%s6900_s12 + $0x70] sm:$0xff] %v4855_v7   ;;  %v3211_v50 = vmax.f32 %v2537_v43, %v3053_v49  ;;  %v2538_v15 = vmax.f32 %v7667_v38, %v2382_v20  ;;  %v7679_v10 = vmax.f32 %v7677_v33, %v7678_v34  ;;  %v7681_v38 = vld [vmem:[#allocation41_spill] sm:$0xff]  ;;  %v7692_v34 = vld [vmem:[#allocation48_spill] sm:$0xff] }
 0x225   : > { %v3214_v31 = vmax.f32 %v2540_v56, %v3064_v6  ;;  %v3277_v47 = vmax.f32 %v3213_v23, 0.0 }
 0x226   : > { %v3212_v17 = vmax.f32 %v2538_v15, %v3056_v39  ;;  %v5287_v40 = vpop.f32.mrb[100].mxu0  ;;  %v5355_v44 = vpop.f32.mrb[100].mxu1  ;;  %v3275_v21 = vmax.f32 %v3211_v50, 0.0  ;;  %v7682_v15 = vmax.f32 %v7680_v37, %v7681_v38  ;;  %v7702_v37 = vld [vmem:[#allocation55_spill] sm:$0xff] }
 0x227   : > { %v3278_v16 = vmax.f32 %v3214_v31, 0.0  ;;  %v2403_v61 = vadd.f32 %v6981_v41, %v5287_v40  ;;  %v3077_v62 = vadd.f32 %v6981_v41, %v5355_v44  ;;  %v2394_v45 = vpop.f32.mrb[101].mxu0  ;;  %v3068_v46 = vpop.f32.mrb[101].mxu1 }
 0x228   : > { %v3276_v22 = vmax.f32 %v3212_v17, 0.0  ;;  %v2395_v25 = vadd.f32 %v6981_v41, %v2394_v45  ;;  %v3069_v36 = vadd.f32 %v6981_v41, %v3068_v46  ;;  %v5288_v51 = vpop.f32.mrb[102].mxu0  ;;  %v5356_v53 = vpop.f32.mrb[102].mxu1 }
 0x229   : > { %v4870_v54 = vpack.c.bf16 %v3278_v16, %v3277_v47  ;;  %v2543_v58 = vmax.f32 %v7670_v3, %v2403_v61  ;;  %v2406_v2 = vadd.f32 %v6981_v41, %v5288_v51  ;;  %v2397_v60 = vpop.f32.mrb[103].mxu0  ;;  %v3071_v63 = vpop.f32.mrb[103].mxu1  ;;  %v3080_v14 = vadd.f32 %v6981_v41, %v5356_v53  ;;  %v7683_v47 = vld [vmem:[#allocation42_spill] sm:$0xff]  ;;  %v7684_v16 = vld [vmem:[#allocation43_spill] sm:$0xff] }
 0x22a   : > { %v4865_v5 = vpack.c.bf16 %v3276_v22, %v3275_v21  ;;  %v2541_v28 = vmax.f32 %v7673_v8, %v2395_v25  ;;  %v2398_v29 = vadd.f32 %v6981_v41, %v2397_v60  ;;  %v3072_v11 = vadd.f32 %v6981_v41, %v3071_v63  ;;  %v7686_v21 = vld [vmem:[#allocation44_spill] sm:$0xff]  ;;  %v7687_v22 = vld [vmem:[#allocation45_spill] sm:$0xff] }
 0x22b   : > { %4958 = vst [vmem:[%s6900_s12 + $0x88] sm:$0xff] %v4870_v54   ;;  %v3217_v18 = vmax.f32 %v2543_v58, %v3077_v62  ;;  %v2544_v49 = vmax.f32 %v7676_v9, %v2406_v2  ;;  %v7685_v61 = vmax.f32 %v7683_v47, %v7684_v16  ;;  %v7688_v25 = vmax.f32 %v7686_v21, %v7687_v22  ;;  %v7689_v54 = vld [vmem:[#allocation46_spill] sm:$0xff] }
 0x22c   : > { %4957 = vst [vmem:[%s6900_s12 + $0x80] sm:$0xff] %v4865_v5   ;;  %v3215_v52 = vmax.f32 %v2541_v28, %v3069_v36  ;;  %v2542_v0 = vmax.f32 %v7679_v10, %v2398_v29  ;;  %v7691_v4 = vmax.f32 %v7689_v54, %v7690_v30  ;;  %v7693_v10 = vld [vmem:[#allocation49_spill] sm:$0xff]  ;;  %v7704_v30 = vld [vmem:[#allocation56_spill] sm:$0xff] }
 0x22d   : > { %v3218_v59 = vmax.f32 %v2544_v49, %v3080_v14  ;;  %v3281_v13 = vmax.f32 %v3217_v18, 0.0 }
 0x22e   : > { %v3216_v26 = vmax.f32 %v2542_v0, %v3072_v11  ;;  %v5291_v32 = vpop.f32.mrb[104].mxu0  ;;  %v5359_v7 = vpop.f32.mrb[104].mxu1  ;;  %v3279_v57 = vmax.f32 %v3215_v52, 0.0  ;;  %v7694_v0 = vmax.f32 %v7692_v34, %v7693_v10  ;;  %v7714_v34 = vld [vmem:[#allocation63_spill] sm:$0xff] }
 0x22f   : > { %v3282_v27 = vmax.f32 %v3218_v59, 0.0  ;;  %v2419_v48 = vadd.f32 %v6981_v41, %v5291_v32  ;;  %v3093_v43 = vadd.f32 %v6981_v41, %v5359_v7  ;;  %v2410_v20 = vpop.f32.mrb[105].mxu0  ;;  %v3084_v23 = vpop.f32.mrb[105].mxu1 }
 0x230   : > { %v3280_v1 = vmax.f32 %v3216_v26, 0.0  ;;  %v2411_v55 = vadd.f32 %v6981_v41, %v2410_v20  ;;  %v3085_v56 = vadd.f32 %v6981_v41, %v3084_v23  ;;  %v5292_v6 = vpop.f32.mrb[106].mxu0  ;;  %v5360_v50 = vpop.f32.mrb[106].mxu1 }
 0x231   : > { %v4880_v35 = vpack.c.bf16 %v3282_v27, %v3281_v13  ;;  %v2547_v39 = vmax.f32 %v7682_v15, %v2419_v48  ;;  %v2422_v31 = vadd.f32 %v6981_v41, %v5292_v6  ;;  %v2413_v17 = vpop.f32.mrb[107].mxu0  ;;  %v3087_v40 = vpop.f32.mrb[107].mxu1  ;;  %v3096_v51 = vadd.f32 %v6981_v41, %v5360_v50  ;;  %v7695_v13 = vld [vmem:[#allocation50_spill] sm:$0xff]  ;;  %v7696_v27 = vld [vmem:[#allocation51_spill] sm:$0xff] }
 0x232   : > { %v4875_v44 = vpack.c.bf16 %v3280_v1, %v3279_v57  ;;  %v2545_v62 = vmax.f32 %v7685_v61, %v2411_v55  ;;  %v2414_v45 = vadd.f32 %v6981_v41, %v2413_v17  ;;  %v3088_v58 = vadd.f32 %v6981_v41, %v3087_v40  ;;  %v7698_v57 = vld [vmem:[#allocation52_spill] sm:$0xff]  ;;  %v7699_v1 = vld [vmem:[#allocation53_spill] sm:$0xff] }
 0x233   : > { %4960 = vst [vmem:[%s6900_s12 + $0x98] sm:$0xff] %v4880_v35   ;;  %v3221_v46 = vmax.f32 %v2547_v39, %v3093_v43  ;;  %v2548_v36 = vmax.f32 %v7688_v25, %v2422_v31  ;;  %v7697_v48 = vmax.f32 %v7695_v13, %v7696_v27  ;;  %v7700_v55 = vmax.f32 %v7698_v57, %v7699_v1  ;;  %v7701_v35 = vld [vmem:[#allocation54_spill] sm:$0xff] }
 0x234   : > { %4959 = vst [vmem:[%s6900_s12 + $0x90] sm:$0xff] %v4875_v44   ;;  %v3219_v53 = vmax.f32 %v2545_v62, %v3085_v56  ;;  %v2546_v3 = vmax.f32 %v7691_v4, %v2414_v45  ;;  %v7703_v38 = vmax.f32 %v7701_v35, %v7702_v37  ;;  %v7705_v4 = vld [vmem:[#allocation57_spill] sm:$0xff]  ;;  %v7716_v37 = vld [vmem:[#allocation64_spill] sm:$0xff] }
 0x235   : > { %v3222_v2 = vmax.f32 %v2548_v36, %v3096_v51  ;;  %v3285_v19 = vmax.f32 %v3221_v46, 0.0 }
 0x236   : > { %v3220_v60 = vmax.f32 %v2546_v3, %v3088_v58  ;;  %v5295_v63 = vpop.f32.mrb[108].mxu0  ;;  %v5363_v5 = vpop.f32.mrb[108].mxu1  ;;  %v3283_v42 = vmax.f32 %v3219_v53, 0.0  ;;  %v7706_v3 = vmax.f32 %v7704_v30, %v7705_v4  ;;  %v7726_v30 = vld [vmem:[#allocation71_spill] sm:$0xff] }
 0x237   : > { %v3286_v24 = vmax.f32 %v3222_v2, 0.0  ;;  %v2435_v8 = vadd.f32 %v6981_v41, %v5295_v63  ;;  %v3109_v28 = vadd.f32 %v6981_v41, %v5363_v5  ;;  %v2426_v29 = vpop.f32.mrb[109].mxu0  ;;  %v3100_v18 = vpop.f32.mrb[109].mxu1 }
 0x238   : > { %v3284_v12 = vmax.f32 %v3220_v60, 0.0  ;;  %v2427_v9 = vadd.f32 %v6981_v41, %v2426_v29  ;;  %v3101_v49 = vadd.f32 %v6981_v41, %v3100_v18  ;;  %v5296_v14 = vpop.f32.mrb[110].mxu0  ;;  %v5364_v52 = vpop.f32.mrb[110].mxu1 }
 0x239   : > { %v4890_v33 = vpack.c.bf16 %v3286_v24, %v3285_v19  ;;  %v2551_v11 = vmax.f32 %v7694_v0, %v2435_v8  ;;  %v2438_v59 = vadd.f32 %v6981_v41, %v5296_v14  ;;  %v2429_v26 = vpop.f32.mrb[111].mxu0  ;;  %v3103_v32 = vpop.f32.mrb[111].mxu1  ;;  %v3112_v6 = vadd.f32 %v6981_v41, %v5364_v52  ;;  %v7707_v19 = vld [vmem:[#allocation58_spill] sm:$0xff]  ;;  %v7708_v24 = vld [vmem:[#allocation59_spill] sm:$0xff] }
 0x23a   : > { %v4885_v7 = vpack.c.bf16 %v3284_v12, %v3283_v42  ;;  %v2549_v43 = vmax.f32 %v7697_v48, %v2427_v9  ;;  %v2430_v20 = vadd.f32 %v6981_v41, %v2429_v26  ;;  %v3104_v39 = vadd.f32 %v6981_v41, %v3103_v32  ;;  %v7710_v42 = vld [vmem:[#allocation60_spill] sm:$0xff]  ;;  %v7711_v12 = vld [vmem:[#allocation61_spill] sm:$0xff] }
 0x23b   : > { %4962 = vst [vmem:[%s6900_s12 + $0xa8] sm:$0xff] %v4890_v33   ;;  %v3225_v23 = vmax.f32 %v2551_v11, %v3109_v28  ;;  %v2552_v56 = vmax.f32 %v7700_v55, %v2438_v59  ;;  %v7709_v8 = vmax.f32 %v7707_v19, %v7708_v24  ;;  %v7712_v9 = vmax.f32 %v7710_v42, %v7711_v12  ;;  %v7713_v33 = vld [vmem:[#allocation62_spill] sm:$0xff] }
 0x23c   : > { %4961 = vst [vmem:[%s6900_s12 + $0xa0] sm:$0xff] %v4885_v7   ;;  %v3223_v50 = vmax.f32 %v2549_v43, %v3101_v49  ;;  %v2550_v15 = vmax.f32 %v7703_v38, %v2430_v20  ;;  %v7715_v10 = vmax.f32 %v7713_v33, %v7714_v34  ;;  %v7717_v38 = vld [vmem:[#allocation65_spill] sm:$0xff]  ;;  %v7728_v34 = vld [vmem:[#allocation72_spill] sm:$0xff] }
 0x23d   : > { %v3226_v31 = vmax.f32 %v2552_v56, %v3112_v6  ;;  %v3289_v47 = vmax.f32 %v3225_v23, 0.0 }
 0x23e   : > { %v3224_v17 = vmax.f32 %v2550_v15, %v3104_v39  ;;  %v5299_v40 = vpop.f32.mrb[112].mxu0  ;;  %v5367_v44 = vpop.f32.mrb[112].mxu1  ;;  %v3287_v21 = vmax.f32 %v3223_v50, 0.0  ;;  %v7718_v15 = vmax.f32 %v7716_v37, %v7717_v38  ;;  %v7738_v37 = vld [vmem:[#allocation79_spill] sm:$0xff] }
 0x23f   : > { %v3290_v16 = vmax.f32 %v3226_v31, 0.0  ;;  %v2451_v61 = vadd.f32 %v6981_v41, %v5299_v40  ;;  %v3125_v62 = vadd.f32 %v6981_v41, %v5367_v44  ;;  %v2442_v45 = vpop.f32.mrb[113].mxu0  ;;  %v3116_v46 = vpop.f32.mrb[113].mxu1 }
 0x240   : > { %v3288_v22 = vmax.f32 %v3224_v17, 0.0  ;;  %v2443_v25 = vadd.f32 %v6981_v41, %v2442_v45  ;;  %v3117_v36 = vadd.f32 %v6981_v41, %v3116_v46  ;;  %v5300_v51 = vpop.f32.mrb[114].mxu0  ;;  %v5368_v53 = vpop.f32.mrb[114].mxu1 }
 0x241   : > { %v4900_v54 = vpack.c.bf16 %v3290_v16, %v3289_v47  ;;  %v2555_v58 = vmax.f32 %v7706_v3, %v2451_v61  ;;  %v2454_v2 = vadd.f32 %v6981_v41, %v5300_v51  ;;  %v2445_v60 = vpop.f32.mrb[115].mxu0  ;;  %v3119_v63 = vpop.f32.mrb[115].mxu1  ;;  %v3128_v14 = vadd.f32 %v6981_v41, %v5368_v53  ;;  %v7719_v47 = vld [vmem:[#allocation66_spill] sm:$0xff]  ;;  %v7720_v16 = vld [vmem:[#allocation67_spill] sm:$0xff] }
 0x242   : > { %v4895_v5 = vpack.c.bf16 %v3288_v22, %v3287_v21  ;;  %v2553_v28 = vmax.f32 %v7709_v8, %v2443_v25  ;;  %v2446_v29 = vadd.f32 %v6981_v41, %v2445_v60  ;;  %v3120_v11 = vadd.f32 %v6981_v41, %v3119_v63  ;;  %v7722_v21 = vld [vmem:[#allocation68_spill] sm:$0xff]  ;;  %v7723_v22 = vld [vmem:[#allocation69_spill] sm:$0xff] }
 0x243   : > { %4964 = vst [vmem:[%s6900_s12 + $0xb8] sm:$0xff] %v4900_v54   ;;  %v3229_v18 = vmax.f32 %v2555_v58, %v3125_v62  ;;  %v2556_v49 = vmax.f32 %v7712_v9, %v2454_v2  ;;  %v7721_v61 = vmax.f32 %v7719_v47, %v7720_v16  ;;  %v7724_v25 = vmax.f32 %v7722_v21, %v7723_v22  ;;  %v7725_v54 = vld [vmem:[#allocation70_spill] sm:$0xff] }
 0x244   : > { %4963 = vst [vmem:[%s6900_s12 + $0xb0] sm:$0xff] %v4895_v5   ;;  %v3227_v52 = vmax.f32 %v2553_v28, %v3117_v36  ;;  %v2554_v0 = vmax.f32 %v7715_v10, %v2446_v29  ;;  %v7727_v4 = vmax.f32 %v7725_v54, %v7726_v30  ;;  %v7729_v10 = vld [vmem:[#allocation73_spill] sm:$0xff]  ;;  %v7740_v30 = vld [vmem:[#allocation80_spill] sm:$0xff] }
 0x245   : > { %v3230_v59 = vmax.f32 %v2556_v49, %v3128_v14  ;;  %v3293_v13 = vmax.f32 %v3229_v18, 0.0 }
 0x246   : > { %v3228_v26 = vmax.f32 %v2554_v0, %v3120_v11  ;;  %v5303_v32 = vpop.f32.mrb[116].mxu0  ;;  %v5371_v7 = vpop.f32.mrb[116].mxu1  ;;  %v3291_v57 = vmax.f32 %v3227_v52, 0.0  ;;  %v7730_v0 = vmax.f32 %v7728_v34, %v7729_v10  ;;  %v7750_v34 = vld [vmem:[#allocation87_spill] sm:$0xff] }
 0x247   : > { %v3294_v27 = vmax.f32 %v3230_v59, 0.0  ;;  %v2467_v48 = vadd.f32 %v6981_v41, %v5303_v32  ;;  %v3141_v43 = vadd.f32 %v6981_v41, %v5371_v7  ;;  %v2458_v20 = vpop.f32.mrb[117].mxu0  ;;  %v3132_v23 = vpop.f32.mrb[117].mxu1 }
 0x248   : > { %v3292_v1 = vmax.f32 %v3228_v26, 0.0  ;;  %v2459_v55 = vadd.f32 %v6981_v41, %v2458_v20  ;;  %v3133_v56 = vadd.f32 %v6981_v41, %v3132_v23  ;;  %v5304_v6 = vpop.f32.mrb[118].mxu0  ;;  %v5372_v50 = vpop.f32.mrb[118].mxu1 }
 0x249   : > { %v4910_v35 = vpack.c.bf16 %v3294_v27, %v3293_v13  ;;  %v2559_v39 = vmax.f32 %v7718_v15, %v2467_v48  ;;  %v2470_v31 = vadd.f32 %v6981_v41, %v5304_v6  ;;  %v2461_v17 = vpop.f32.mrb[119].mxu0  ;;  %v3135_v40 = vpop.f32.mrb[119].mxu1  ;;  %v3144_v51 = vadd.f32 %v6981_v41, %v5372_v50  ;;  %v7731_v13 = vld [vmem:[#allocation74_spill] sm:$0xff]  ;;  %v7732_v27 = vld [vmem:[#allocation75_spill] sm:$0xff] }
 0x24a   : > { %v4905_v44 = vpack.c.bf16 %v3292_v1, %v3291_v57  ;;  %v2557_v62 = vmax.f32 %v7721_v61, %v2459_v55  ;;  %v2462_v45 = vadd.f32 %v6981_v41, %v2461_v17  ;;  %v3136_v58 = vadd.f32 %v6981_v41, %v3135_v40  ;;  %v7734_v57 = vld [vmem:[#allocation76_spill] sm:$0xff]  ;;  %v7735_v1 = vld [vmem:[#allocation77_spill] sm:$0xff] }
 0x24b   : > { %4966 = vst [vmem:[%s6900_s12 + $0xc8] sm:$0xff] %v4910_v35   ;;  %v3233_v46 = vmax.f32 %v2559_v39, %v3141_v43  ;;  %v2560_v36 = vmax.f32 %v7724_v25, %v2470_v31  ;;  %v7733_v48 = vmax.f32 %v7731_v13, %v7732_v27  ;;  %v7736_v55 = vmax.f32 %v7734_v57, %v7735_v1  ;;  %v7737_v35 = vld [vmem:[#allocation78_spill] sm:$0xff] }
 0x24c   : > { %4965 = vst [vmem:[%s6900_s12 + $0xc0] sm:$0xff] %v4905_v44   ;;  %v3231_v53 = vmax.f32 %v2557_v62, %v3133_v56  ;;  %v2558_v3 = vmax.f32 %v7727_v4, %v2462_v45  ;;  %v7739_v38 = vmax.f32 %v7737_v35, %v7738_v37  ;;  %v7741_v4 = vld [vmem:[#allocation81_spill] sm:$0xff] }
 0x24d   : > { %v3234_v2 = vmax.f32 %v2560_v36, %v3144_v51  ;;  %v3297_v19 = vmax.f32 %v3233_v46, 0.0 }
 0x24e   : > { %v3232_v60 = vmax.f32 %v2558_v3, %v3136_v58  ;;  %v5307_v63 = vpop.f32.mrb[120].mxu0  ;;  %v5375_v5 = vpop.f32.mrb[120].mxu1  ;;  %v3295_v42 = vmax.f32 %v3231_v53, 0.0  ;;  %v7742_v3 = vmax.f32 %v7740_v30, %v7741_v4 }
 0x24f   : > { %v3298_v24 = vmax.f32 %v3234_v2, 0.0  ;;  %v2483_v8 = vadd.f32 %v6981_v41, %v5307_v63  ;;  %v3157_v28 = vadd.f32 %v6981_v41, %v5375_v5  ;;  %v2474_v29 = vpop.f32.mrb[121].mxu0  ;;  %v3148_v18 = vpop.f32.mrb[121].mxu1 }
 0x250   : > { %v3296_v12 = vmax.f32 %v3232_v60, 0.0  ;;  %v2475_v9 = vadd.f32 %v6981_v41, %v2474_v29  ;;  %v3149_v49 = vadd.f32 %v6981_v41, %v3148_v18  ;;  %v5308_v14 = vpop.f32.mrb[122].mxu0  ;;  %v5376_v52 = vpop.f32.mrb[122].mxu1 }
 0x251   : > { %v4920_v33 = vpack.c.bf16 %v3298_v24, %v3297_v19  ;;  %v2563_v11 = vmax.f32 %v7730_v0, %v2483_v8  ;;  %v2486_v59 = vadd.f32 %v6981_v41, %v5308_v14  ;;  %v2477_v26 = vpop.f32.mrb[123].mxu0  ;;  %v3151_v32 = vpop.f32.mrb[123].mxu1  ;;  %v3160_v6 = vadd.f32 %v6981_v41, %v5376_v52  ;;  %v7743_v19 = vld [vmem:[#allocation82_spill] sm:$0xff]  ;;  %v7744_v24 = vld [vmem:[#allocation83_spill] sm:$0xff] }
 0x252   : > { %v4915_v7 = vpack.c.bf16 %v3296_v12, %v3295_v42  ;;  %v2561_v43 = vmax.f32 %v7733_v48, %v2475_v9  ;;  %v2478_v20 = vadd.f32 %v6981_v41, %v2477_v26  ;;  %v3152_v39 = vadd.f32 %v6981_v41, %v3151_v32  ;;  %v7746_v42 = vld [vmem:[#allocation84_spill] sm:$0xff]  ;;  %v7747_v12 = vld [vmem:[#allocation85_spill] sm:$0xff] }
 0x253   : > { %4968 = vst [vmem:[%s6900_s12 + $0xd8] sm:$0xff] %v4920_v33   ;;  %v3237_v23 = vmax.f32 %v2563_v11, %v3157_v28  ;;  %v2564_v56 = vmax.f32 %v7736_v55, %v2486_v59  ;;  %v7745_v8 = vmax.f32 %v7743_v19, %v7744_v24  ;;  %v7748_v9 = vmax.f32 %v7746_v42, %v7747_v12  ;;  %v7749_v33 = vld [vmem:[#allocation86_spill] sm:$0xff] }
 0x254   : > { %4967 = vst [vmem:[%s6900_s12 + $0xd0] sm:$0xff] %v4915_v7   ;;  %v3235_v50 = vmax.f32 %v2561_v43, %v3149_v49  ;;  %v2562_v15 = vmax.f32 %v7739_v38, %v2478_v20  ;;  %v7751_v10 = vmax.f32 %v7749_v33, %v7750_v34 }
 0x255   : > { %v3238_v31 = vmax.f32 %v2564_v56, %v3160_v6  ;;  %v3301_v47 = vmax.f32 %v3237_v23, 0.0 }
 0x256   : > { %v3236_v17 = vmax.f32 %v2562_v15, %v3152_v39  ;;  %v5311_v40 = vpop.f32.mrb[124].mxu0  ;;  %v5379_v44 = vpop.f32.mrb[124].mxu1  ;;  %v3299_v21 = vmax.f32 %v3235_v50, 0.0 }
 0x257   : > { %v3302_v16 = vmax.f32 %v3238_v31, 0.0  ;;  %v2499_v61 = vadd.f32 %v6981_v41, %v5311_v40  ;;  %v3173_v62 = vadd.f32 %v6981_v41, %v5379_v44  ;;  %v2490_v45 = vpop.f32.mrb[125].mxu0  ;;  %v3164_v46 = vpop.f32.mrb[125].mxu1 }
 0x258   : > { %v3300_v22 = vmax.f32 %v3236_v17, 0.0  ;;  %v2491_v25 = vadd.f32 %v6981_v41, %v2490_v45  ;;  %v3165_v36 = vadd.f32 %v6981_v41, %v3164_v46  ;;  %v5312_v51 = vpop.f32.mrb[126].mxu0  ;;  %v5380_v53 = vpop.f32.mrb[126].mxu1 }
 0x259   : > { %v4930_v54 = vpack.c.bf16 %v3302_v16, %v3301_v47  ;;  %v2567_v58 = vmax.f32 %v7742_v3, %v2499_v61  ;;  %v2502_v2 = vadd.f32 %v6981_v41, %v5312_v51  ;;  %v2493_v60 = vpop.f32.mrb[127].mxu0  ;;  %v3167_v63 = vpop.f32.mrb[127].mxu1  ;;  %v3176_v14 = vadd.f32 %v6981_v41, %v5380_v53 }
 0x25a   : > { %v4925_v5 = vpack.c.bf16 %v3300_v22, %v3299_v21  ;;  %v2565_v28 = vmax.f32 %v7745_v8, %v2491_v25  ;;  %v2494_v29 = vadd.f32 %v6981_v41, %v2493_v60  ;;  %v3168_v11 = vadd.f32 %v6981_v41, %v3167_v63 }
 0x25b   : > { %4970 = vst [vmem:[%s6900_s12 + $0xe8] sm:$0xff] %v4930_v54   ;;  %v3241_v18 = vmax.f32 %v2567_v58, %v3173_v62  ;;  %v2568_v49 = vmax.f32 %v7748_v9, %v2502_v2 }
 0x25c   : > { %4969 = vst [vmem:[%s6900_s12 + $0xe0] sm:$0xff] %v4925_v5   ;;  %v3239_v52 = vmax.f32 %v2565_v28, %v3165_v36  ;;  %v2566_v0 = vmax.f32 %v7751_v10, %v2494_v29 }
 0x25d   : > { %v3242_v59 = vmax.f32 %v2568_v49, %v3176_v14  ;;  %v3305_v32 = vmax.f32 %v3241_v18, 0.0 }
 0x25e   : > { %v3240_v26 = vmax.f32 %v2566_v0, %v3168_v11  ;;  %v3303_v13 = vmax.f32 %v3239_v52, 0.0  ;;  %3633 = sbr.rel (!%p5867_p5) target bundleno = 704 (0x2c0), region = 98 }
 0x25f   : > { %v3306_v7 = vmax.f32 %v3242_v59, 0.0 }
 0x260   : > { %v3304_v27 = vmax.f32 %v3240_v26, 0.0 }
 0x261   : > { %v4940_v48 = vpack.c.bf16 %v3306_v7, %v3305_v32 }
 0x262   : > { %v4935_v43 = vpack.c.bf16 %v3304_v27, %v3303_v13 }
 0x263   : > { %4972 = vst [vmem:[%s6900_s12 + $0xf8] sm:$0xff] %v4940_v48  }
 0x264   : > { %4971 = vst [vmem:[%s6900_s12 + $0xf0] sm:$0xff] %v4935_v43  }
 0x265   : > { %s7765_s21 = smov (!%p3636_p4, %s3635_s21), 64 }
 0x266   : > { %s4697_s26 = sshll.u32 %s7765_s21, 6 }
 0x267   : > { %p4700_p6 = scmp.eq.s32.totalorder %s4697_s26, 0 }
 0x268   : > { %s7240_s20 = sshrl.u32 (!%p4700_p6), %s7765_s21, 6 }
 0x269   : > { %3644 = sbr.rel (%p4700_p6) target bundleno = 704 (0x2c0), region = 102  ;;  %p4701_p5 = scmp.le.s32.totalorder (!%p4700_p6), %s7240_s20, 0 }
 0x270   : > { %4115 = sbr.rel (%p4701_p5) target bundleno = 683 (0x2ab), region = 218  ;;  %s7752_s15 = smov (!%p4701_p5), %s7234_s25 }
 0x271   : > { %s7753_s24 = smov (!%p4701_p5), %s6900_s12  ;;  %s7249_s27 = smov (!%p4701_p5), 0  }
 0x272   : > { %s7251_s28 = smov (!%p4701_p5), 0  }
 0x277 LB: >> { %v3660_v41 = vld [vmem:[%s5790_s24] sm:$0xf]  ;;  %v3662_v20 = vld [vmem:[%s5790_s24 + $0x4] sm:$0xf]  ;;  %v3664_v23 = vld [vmem:[%s5790_s24 + $0x8] sm:$0xf]  ;;  %s5798_s28 = sphi %s7251_s28, %s3654_s28   ;;  %s5794_s27 = sphi %s7249_s27, %s7754_s27   ;;  %s5790_s24 = sphi %s7753_s24, %s3793_s24   ;;  %s5786_s15 = sphi %s7752_s15, %s3794_s15  }
 0x278   : >> { %3661 = vst [vmem:[%s5786_s15] sm:$0xf] %v3660_v41  ;;  %3663 = vst [vmem:[%s5786_s15 + $0x4] sm:$0xf] %v3662_v20  ;;  %v3666_v57 = vld [vmem:[%s5790_s24 + $0xc] sm:$0xf]  ;;  %s3788_s29 = sadd.s32 1, %s5794_s27 }
 0x279   : >> { %3665 = vst [vmem:[%s5786_s15 + $0x8] sm:$0xf] %v3664_v23  ;;  %v3668_v1 = vld [vmem:[%s5790_s24 + $0x10] sm:$0xf]  ;;  %v3670_v55 = vld [vmem:[%s5790_s24 + $0x14] sm:$0xf]  ;;  %p3789_p7 = scmp.ge.s32.totalorder %s3788_s29, %s7240_s20 }
 0x27a   : >> { %3667 = vst [vmem:[%s5786_s15 + $0xc] sm:$0xf] %v3666_v57  ;;  %3669 = vst [vmem:[%s5786_s15 + $0x10] sm:$0xf] %v3668_v1  ;;  %v3672_v56 = vld [vmem:[%s5790_s24 + $0x18] sm:$0xf] }
 0x27b   : >> { %3671 = vst [vmem:[%s5786_s15 + $0x14] sm:$0xf] %v3670_v55  ;;  %v3674_v6 = vld [vmem:[%s5790_s24 + $0x1c] sm:$0xf]  ;;  %v3676_v50 = vld [vmem:[%s5790_s24 + $0x20] sm:$0xf] }
 0x27c   : >> { %3673 = vst [vmem:[%s5786_s15 + $0x18] sm:$0xf] %v3672_v56  ;;  %3675 = vst [vmem:[%s5786_s15 + $0x1c] sm:$0xf] %v3674_v6  ;;  %v3678_v35 = vld [vmem:[%s5790_s24 + $0x24] sm:$0xf] }
 0x27d   : >> { %3677 = vst [vmem:[%s5786_s15 + $0x20] sm:$0xf] %v3676_v50  ;;  %v3680_v37 = vld [vmem:[%s5790_s24 + $0x28] sm:$0xf]  ;;  %v3682_v38 = vld [vmem:[%s5790_s24 + $0x2c] sm:$0xf] }
 0x27e   : >> { %3679 = vst [vmem:[%s5786_s15 + $0x24] sm:$0xf] %v3678_v35  ;;  %3681 = vst [vmem:[%s5786_s15 + $0x28] sm:$0xf] %v3680_v37  ;;  %v3684_v15 = vld [vmem:[%s5790_s24 + $0x30] sm:$0xf] }
 0x27f   : >> { %3683 = vst [vmem:[%s5786_s15 + $0x2c] sm:$0xf] %v3682_v38  ;;  %v3686_v39 = vld [vmem:[%s5790_s24 + $0x34] sm:$0xf]  ;;  %v3688_v31 = vld [vmem:[%s5790_s24 + $0x38] sm:$0xf] }
 0x280   : >> { %3685 = vst [vmem:[%s5786_s15 + $0x30] sm:$0xf] %v3684_v15  ;;  %3687 = vst [vmem:[%s5786_s15 + $0x34] sm:$0xf] %v3686_v39  ;;  %v3690_v17 = vld [vmem:[%s5790_s24 + $0x3c] sm:$0xf] }
 0x281   : >> { %3689 = vst [vmem:[%s5786_s15 + $0x38] sm:$0xf] %v3688_v31  ;;  %v3692_v40 = vld [vmem:[%s5790_s24 + $0x40] sm:$0xf]  ;;  %v3694_v44 = vld [vmem:[%s5790_s24 + $0x44] sm:$0xf] }
 0x282   : >> { %3691 = vst [vmem:[%s5786_s15 + $0x3c] sm:$0xf] %v3690_v17  ;;  %3693 = vst [vmem:[%s5786_s15 + $0x40] sm:$0xf] %v3692_v40  ;;  %v3696_v47 = vld [vmem:[%s5790_s24 + $0x48] sm:$0xf] }
 0x283   : >> { %3695 = vst [vmem:[%s5786_s15 + $0x44] sm:$0xf] %v3694_v44  ;;  %v3698_v16 = vld [vmem:[%s5790_s24 + $0x4c] sm:$0xf]  ;;  %v3700_v61 = vld [vmem:[%s5790_s24 + $0x50] sm:$0xf] }
 0x284   : >> { %3697 = vst [vmem:[%s5786_s15 + $0x48] sm:$0xf] %v3696_v47  ;;  %3699 = vst [vmem:[%s5786_s15 + $0x4c] sm:$0xf] %v3698_v16  ;;  %v3702_v62 = vld [vmem:[%s5790_s24 + $0x54] sm:$0xf] }
 0x285   : >> { %3701 = vst [vmem:[%s5786_s15 + $0x50] sm:$0xf] %v3700_v61  ;;  %v3704_v45 = vld [vmem:[%s5790_s24 + $0x58] sm:$0xf]  ;;  %v3706_v46 = vld [vmem:[%s5790_s24 + $0x5c] sm:$0xf] }
 0x286   : >> { %3703 = vst [vmem:[%s5786_s15 + $0x54] sm:$0xf] %v3702_v62  ;;  %3705 = vst [vmem:[%s5786_s15 + $0x58] sm:$0xf] %v3704_v45  ;;  %v3708_v21 = vld [vmem:[%s5790_s24 + $0x60] sm:$0xf] }
 0x287   : >> { %3707 = vst [vmem:[%s5786_s15 + $0x5c] sm:$0xf] %v3706_v46  ;;  %v3710_v22 = vld [vmem:[%s5790_s24 + $0x64] sm:$0xf]  ;;  %v3712_v25 = vld [vmem:[%s5790_s24 + $0x68] sm:$0xf] }
 0x288   : >> { %3709 = vst [vmem:[%s5786_s15 + $0x60] sm:$0xf] %v3708_v21  ;;  %3711 = vst [vmem:[%s5786_s15 + $0x64] sm:$0xf] %v3710_v22  ;;  %v3714_v36 = vld [vmem:[%s5790_s24 + $0x6c] sm:$0xf] }
 0x289   : >> { %3713 = vst [vmem:[%s5786_s15 + $0x68] sm:$0xf] %v3712_v25  ;;  %v3716_v51 = vld [vmem:[%s5790_s24 + $0x70] sm:$0xf]  ;;  %v3718_v53 = vld [vmem:[%s5790_s24 + $0x74] sm:$0xf] }
 0x28a   : >> { %3715 = vst [vmem:[%s5786_s15 + $0x6c] sm:$0xf] %v3714_v36  ;;  %3717 = vst [vmem:[%s5786_s15 + $0x70] sm:$0xf] %v3716_v51  ;;  %v3720_v54 = vld [vmem:[%s5790_s24 + $0x78] sm:$0xf] }
 0x28b   : >> { %3719 = vst [vmem:[%s5786_s15 + $0x74] sm:$0xf] %v3718_v53  ;;  %v3722_v30 = vld [vmem:[%s5790_s24 + $0x7c] sm:$0xf]  ;;  %v3724_v4 = vld [vmem:[%s5790_s24 + $0x80] sm:$0xf] }
 0x28c   : >> { %3721 = vst [vmem:[%s5786_s15 + $0x78] sm:$0xf] %v3720_v54  ;;  %3723 = vst [vmem:[%s5786_s15 + $0x7c] sm:$0xf] %v3722_v30  ;;  %v3726_v3 = vld [vmem:[%s5790_s24 + $0x84] sm:$0xf] }
 0x28d   : >> { %3725 = vst [vmem:[%s5786_s15 + $0x80] sm:$0xf] %v3724_v4  ;;  %v3728_v58 = vld [vmem:[%s5790_s24 + $0x88] sm:$0xf]  ;;  %v3730_v2 = vld [vmem:[%s5790_s24 + $0x8c] sm:$0xf] }
 0x28e   : >> { %3727 = vst [vmem:[%s5786_s15 + $0x84] sm:$0xf] %v3726_v3  ;;  %3729 = vst [vmem:[%s5786_s15 + $0x88] sm:$0xf] %v3728_v58  ;;  %v3732_v60 = vld [vmem:[%s5790_s24 + $0x90] sm:$0xf] }
 0x28f   : >> { %3731 = vst [vmem:[%s5786_s15 + $0x8c] sm:$0xf] %v3730_v2  ;;  %v3734_v63 = vld [vmem:[%s5790_s24 + $0x94] sm:$0xf]  ;;  %v3736_v5 = vld [vmem:[%s5790_s24 + $0x98] sm:$0xf] }
 0x290   : >> { %3733 = vst [vmem:[%s5786_s15 + $0x90] sm:$0xf] %v3732_v60  ;;  %3735 = vst [vmem:[%s5786_s15 + $0x94] sm:$0xf] %v3734_v63  ;;  %v3738_v19 = vld [vmem:[%s5790_s24 + $0x9c] sm:$0xf] }
 0x291   : >> { %3737 = vst [vmem:[%s5786_s15 + $0x98] sm:$0xf] %v3736_v5  ;;  %v3740_v24 = vld [vmem:[%s5790_s24 + $0xa0] sm:$0xf]  ;;  %v3742_v8 = vld [vmem:[%s5790_s24 + $0xa4] sm:$0xf] }
 0x292   : >> { %3739 = vst [vmem:[%s5786_s15 + $0x9c] sm:$0xf] %v3738_v19  ;;  %3741 = vst [vmem:[%s5786_s15 + $0xa0] sm:$0xf] %v3740_v24  ;;  %v3744_v28 = vld [vmem:[%s5790_s24 + $0xa8] sm:$0xf] }
 0x293   : >> { %3743 = vst [vmem:[%s5786_s15 + $0xa4] sm:$0xf] %v3742_v8  ;;  %v3746_v29 = vld [vmem:[%s5790_s24 + $0xac] sm:$0xf]  ;;  %v3748_v18 = vld [vmem:[%s5790_s24 + $0xb0] sm:$0xf] }
 0x294   : >> { %3745 = vst [vmem:[%s5786_s15 + $0xa8] sm:$0xf] %v3744_v28  ;;  %3747 = vst [vmem:[%s5786_s15 + $0xac] sm:$0xf] %v3746_v29  ;;  %v3750_v42 = vld [vmem:[%s5790_s24 + $0xb4] sm:$0xf] }
 0x295   : >> { %3749 = vst [vmem:[%s5786_s15 + $0xb0] sm:$0xf] %v3748_v18  ;;  %v3752_v12 = vld [vmem:[%s5790_s24 + $0xb8] sm:$0xf]  ;;  %v3754_v9 = vld [vmem:[%s5790_s24 + $0xbc] sm:$0xf] }
 0x296   : >> { %3751 = vst [vmem:[%s5786_s15 + $0xb4] sm:$0xf] %v3750_v42  ;;  %3753 = vst [vmem:[%s5786_s15 + $0xb8] sm:$0xf] %v3752_v12  ;;  %v3756_v49 = vld [vmem:[%s5790_s24 + $0xc0] sm:$0xf] }
 0x297   : >> { %3755 = vst [vmem:[%s5786_s15 + $0xbc] sm:$0xf] %v3754_v9  ;;  %v3758_v14 = vld [vmem:[%s5790_s24 + $0xc4] sm:$0xf]  ;;  %v3760_v52 = vld [vmem:[%s5790_s24 + $0xc8] sm:$0xf] }
 0x298   : >> { %3757 = vst [vmem:[%s5786_s15 + $0xc0] sm:$0xf] %v3756_v49  ;;  %3759 = vst [vmem:[%s5786_s15 + $0xc4] sm:$0xf] %v3758_v14  ;;  %v3762_v33 = vld [vmem:[%s5790_s24 + $0xcc] sm:$0xf] }
 0x299   : >> { %3761 = vst [vmem:[%s5786_s15 + $0xc8] sm:$0xf] %v3760_v52  ;;  %v3764_v34 = vld [vmem:[%s5790_s24 + $0xd0] sm:$0xf]  ;;  %v3766_v10 = vld [vmem:[%s5790_s24 + $0xd4] sm:$0xf] }
 0x29a   : >> { %3763 = vst [vmem:[%s5786_s15 + $0xcc] sm:$0xf] %v3762_v33  ;;  %3765 = vst [vmem:[%s5786_s15 + $0xd0] sm:$0xf] %v3764_v34  ;;  %v3768_v0 = vld [vmem:[%s5790_s24 + $0xd8] sm:$0xf] }
 0x29b   : >> { %3767 = vst [vmem:[%s5786_s15 + $0xd4] sm:$0xf] %v3766_v10  ;;  %v3770_v11 = vld [vmem:[%s5790_s24 + $0xdc] sm:$0xf]  ;;  %v3772_v59 = vld [vmem:[%s5790_s24 + $0xe0] sm:$0xf] }
 0x29c   : >> { %3769 = vst [vmem:[%s5786_s15 + $0xd8] sm:$0xf] %v3768_v0  ;;  %3771 = vst [vmem:[%s5786_s15 + $0xdc] sm:$0xf] %v3770_v11  ;;  %v3774_v26 = vld [vmem:[%s5790_s24 + $0xe4] sm:$0xf] }
 0x29d   : >> { %3773 = vst [vmem:[%s5786_s15 + $0xe0] sm:$0xf] %v3772_v59  ;;  %v3776_v32 = vld [vmem:[%s5790_s24 + $0xe8] sm:$0xf]  ;;  %v3778_v7 = vld [vmem:[%s5790_s24 + $0xec] sm:$0xf] }
 0x29e   : >> { %3775 = vst [vmem:[%s5786_s15 + $0xe4] sm:$0xf] %v3774_v26  ;;  %3777 = vst [vmem:[%s5786_s15 + $0xe8] sm:$0xf] %v3776_v32  ;;  %v3780_v13 = vld [vmem:[%s5790_s24 + $0xf0] sm:$0xf] }
 0x29f   : >> { %3779 = vst [vmem:[%s5786_s15 + $0xec] sm:$0xf] %v3778_v7  ;;  %v3782_v27 = vld [vmem:[%s5790_s24 + $0xf4] sm:$0xf]  ;;  %v3784_v48 = vld [vmem:[%s5790_s24 + $0xf8] sm:$0xf] }
 0x2a0   : >> { %3781 = vst [vmem:[%s5786_s15 + $0xf0] sm:$0xf] %v3780_v13  ;;  %3783 = vst [vmem:[%s5786_s15 + $0xf4] sm:$0xf] %v3782_v27  ;;  %v3786_v43 = vld [vmem:[%s5790_s24 + $0xfc] sm:$0xf] }
 0x2a1   : >> { %3785 = vst [vmem:[%s5786_s15 + $0xf8] sm:$0xf] %v3784_v48  ;;  %3787 = vst [vmem:[%s5786_s15 + $0xfc] sm:$0xf] %v3786_v43  ;;  %s7767_s29 = smov (%p3789_p7, %s3788_s29), 0  ;;  %s3654_s28 = sadd.s32 1, %s5798_s28  }
 0x2a2   : >> { %s4702_s30 = sshll.u32 %s7767_s29, 8  ;;  %p3653_p8 = scmp.ge.s32.totalorder %s3654_s28, %s7240_s20 }
 0x2a3   : >> { %s3793_s24 = scalar_lea.vmem %s6900_s12, %s4702_s30 [#allocation3]   ;;  %s3794_s15 = scalar_lea.vmem %s7234_s25, %s4702_s30  }
 0x2a4   : >> { %s7754_s27 = smov %s7767_s29  ;;  %3656 = sbr.rel (!%p3653_p8) target bundleno = 631 (0x277), region = 224 }
 0x2ab PF: > { %s7408_s4 = sand.u32 63, %s7765_s21   ;;  %s4780_s5 = sshll.u32 %s7240_s20, 8 }
 0x2ac   : > { %s3799_s6 = scalar_lea.vmem %s6900_s12, %s4780_s5 [#allocation3]   ;;  %s3801_s14 = scalar_lea.vmem %s7234_s25, %s4780_s5  }
 0x2ad   : > { %p4707_p9 = scmp.le.s32.totalorder %s7408_s4, 0 }
 0x2ae   : > { %s5800_s7 = smov (!%p4707_p9), %s3801_s14   ;;  %s5804_s8 = smov (!%p4707_p9), %s3799_s6  }
 0x2af   : > { %4129 = sbr.rel (%p4707_p9) target bundleno = 704 (0x2c0), region = 229  ;;  %s5808_s9 = smov (!%p4707_p9), 0  }
 0x2b0   : > { %s5812_s10 = smov (!%p4707_p9), 0  }
 0x2b6 LB: >> { %v3811_v41 = vld [vmem:[%s5806_s8] sm:$0xf]  ;;  %s3813_s11 = sadd.s32 1, %s5810_s9  ;;  %s3805_s10 = sadd.s32 1, %s5814_s10   ;;  %s5814_s10 = sphi %s5812_s10, %s3805_s10   ;;  %s5810_s9 = sphi %s5808_s9, %s5809_s9   ;;  %s5806_s8 = sphi %s5804_s8, %s3818_s8   ;;  %s5802_s7 = sphi %s5800_s7, %s3819_s7  }
 0x2b7   : >> { %3812 = vst [vmem:[%s5802_s7] sm:$0xf] %v3811_v41  ;;  %p3814_p10 = scmp.ge.s32.totalorder %s3813_s11, %s7408_s4  ;;  %p3804_p11 = scmp.ge.s32.totalorder %s3805_s10, %s7408_s4 }
 0x2b9   : >> { %s7769_s11 = smov (%p3814_p10, %s3813_s11), 0  ;;  %3807 = sbr.rel (!%p3804_p11) target bundleno = 694 (0x2b6), region = 235 }
 0x2ba   : >> { %s4708_s12 = sshll.u32 %s7769_s11, 2  ;;  %s5809_s9 = smov %s7769_s11  }
 0x2bb   : >> { %s3818_s8 = scalar_lea.vmem %s3799_s6, %s4708_s12 [#allocation3]   ;;  %s3819_s7 = scalar_lea.vmem %s3801_s14, %s4708_s12  }
 0x2c0 PF: > { %p10_p12 = scmp.ge.s32.totalorder %s5855_s16, 5   ;;  %s7755_s12 = smov %s5746_s13 }
 0x2c1   : > { %s7756_s13 = smov %s5865_s19  ;;  %s7757_s14 = smov %s5855_s16 }
 0x2c2   :  { %12 = sbr.rel (!%p10_p12) target bundleno = 2 (0x2), region = 246 }

// kernel: offline_cnn_lstm_forward.5
= control target key start
LH: loop header
LB: loop body
LE: loop exit
PB: predicated region body
PF: predicated region fallthrough
CT: control target
= control target key end

     0   :  { %s4196_s0 = inlined_call_operand.vmem [shape: bf16[200,3200], index: 0, kind: input, shape index: {}]   ;;  %s4197_s1 = inlined_call_operand.vmem [shape: bf16[3200,256], index: 1, kind: input, shape index: {}]   ;;  %s4198_s2 = inlined_call_operand.vmem [shape: f32[1,256], index: 2, kind: input, shape index: {}]   ;;  %s4199_s3 = inlined_call_operand.vmem [shape: bf16[200,256], index: 3, kind: output, shape index: {}]  }
   0x1   :  { %4201 = sst [smem:[#allocation7_spill]] %s4196_s0 }
   0x2   :  { %4202 = sst [smem:[#allocation8_spill]] %s4197_s1 }
   0x3   :  { %s3395_s12 = smov 0   ;;  %s3397_s13 = smov 0  }
   0x4   :  { %s3399_s14 = smov 0   ;;  %s3401_s15 = smov 0  }
   0x5   :  { %s3403_s16 = smov 0   ;;  %s3405_s17 = smov 0  }
   0x6   :  { %s3407_s18 = smov 0   ;;  %s3409_s19 = smov 0  }
   0x7   :  { %s3411_s20 = smov 0   ;;  %s3413_s21 = smov 0  }
   0x8   :  { %s3415_s22 = smov 0  }
   0x9 LB: > { %s2474_s23 = sadd.s32 4294967295, %s3370_s22   ;;  %s25_s24 = sadd.s32 1, %s3362_s20  ;;  %s3370_s22 = sphi %s3415_s22, %s13_s22   ;;  %s3366_s21 = sphi %s3413_s21, %s4219_s21   ;;  %s3362_s20 = sphi %s3411_s20, %s4218_s20   ;;  %s3358_s19 = sphi %s3409_s19, %s4217_s19   ;;  %s3354_s18 = sphi %s3407_s18, %s4216_s18   ;;  %s3350_s17 = sphi %s3405_s17, %s4215_s17   ;;  %s3346_s16 = sphi %s3403_s16, %s4214_s16   ;;  %s3342_s15 = sphi %s3401_s15, %s4213_s15   ;;  %s3338_s14 = sphi %s3399_s14, %s4212_s14   ;;  %s3334_s13 = sphi %s3397_s13, %s4211_s13   ;;  %s3330_s12 = sphi %s3395_s12, %s4210_s12  }
   0xa   : > { %p26_p0 = scmp.ge.s32.totalorder %s25_s24, 5  ;;  %s28_s25 = sadd.s32 1, %s3366_s21 }
   0xb   : > { %s41_s26 = sadd.s32 1, %s3350_s17  ;;  %p48_p1 = scmp.ne.s32.totalorder %s3350_s17, %s3346_s16 }
   0xc   : > { %s4221_s24 = smov (%p26_p0, %s25_s24), 0  ;;  %s4223_s25 = smov (!%p26_p0, %s28_s25), %s3366_s21 }
   0xd   : > { %s37_s27 = ssub.s32 %s3362_s20, %s4221_s24  ;;  %p49_p2 = scmp.eq.s32.totalorder %s3370_s22, 0 }
   0xe   : > { %p30_p3 = scmp.ge.s32.totalorder %s4223_s25, 2  ;;  %p39_p4 = scmp.eq.s32.totalorder %s37_s27, 0 }
   0xf   : > { %p3462_p5 = por %p49_p2, %p48_p1  ;;  %s69_s29 = sadd.s32 1, %s3342_s15 }
  0x10   : > { %s4225_s25 = smov (%p30_p3, %s4223_s25), 0  ;;  %p76_p6 = scmp.ne.s32.totalorder %s3342_s15, %s3338_s14 }
  0x11   : > { %4204 = sst [smem:[#allocation6_spill]] %s4225_s25  ;;  %s65_s4 = ssub.s32 %s3366_s21, %s4225_s25 }
  0x12   : > { %s3470_s30 = scalar_select %p39_p4, %s3350_s17, %s41_s26  }
  0x13   : > { %s66_s5 = sor.u32 %s65_s4, %s37_s27  ;;  %p121_p7 = scmp.eq.s32.totalorder %s65_s4, 0 }
  0x14   : > { %p67_p8 = scmp.eq.s32.totalorder %s66_s5, 0  ;;  %p3476_p9 = por %p76_p6, %p49_p2 }
  0x15   : > { %s123_s7 = sadd.s32 1, %s3334_s13  ;;  %p133_p10 = scmp.ne.s32.totalorder %s3334_s13, %s3330_s12 }
  0x16   : > { %s3484_s8 = scalar_select %p67_p8, %s3342_s15, %s69_s29  }
  0x17   : > { %s3487_s9 = scalar_select %p121_p7, %s3334_s13, %s123_s7  }
  0x18   : > { %p134_p11 = scmp.eq.s32.totalorder %s2474_s23, 9  ;;  %p2477_p13 = scmp.ge.s32.totalorder %s3370_s22, 10 }
  0x1a   : > { %p3489_p12 = por %p134_p11, %p133_p10  ;;  %156 = sbr.rel (%p2477_p13) target bundleno = 145 (0x91), region = 16 }
  0x21   : > { %159 = sbr.rel (!%p3462_p5) target bundleno = 83 (0x53), region = 20  ;;  %s161_s11 = sand.u32 (%p3462_p5), 1, %s3350_s17  }
  0x22   : > { %s2668_s26 = smul.u32 (%p3462_p5), 20, %s3362_s20  ;;  %s4207_s0 = sld [smem:[#allocation7_spill]] (%p3462_p5) }
  0x23   : > { %s3059_s27 = smul.u32 (%p3462_p5), 500, %s161_s11 }
  0x25   : > { %s3506_s23 = scalar_lea.vmem (%p3462_p5), [#allocation3], %s3059_s27 }
  0x28   : > { %s3501_s5 = scalar_lea.vmem %s4207_s0, %s2668_s26 }
  0x29   : > { %v184_v0 = vld [vmem:[%s3501_s5] sm:$0xff]  ;;  %v186_v1 = vld [vmem:[%s3501_s5 + $0x8] sm:$0xff]  ;;  %v194_v5 = vld [vmem:[%s3501_s5 + $0xd0] sm:$0xff] }
  0x2a   : > { %v188_v2 = vld [vmem:[%s3501_s5 + $0x64] sm:$0xff]  ;;  %185 = vst [vmem:[%s3506_s23] sm:$0xff] %v184_v0  ;;  %187 = vst [vmem:[%s3506_s23 + $0x8] sm:$0xff] %v186_v1  ;;  %v190_v3 = vld [vmem:[%s3501_s5 + $0x6c] sm:$0xff] }
  0x2b   : > { %189 = vst [vmem:[%s3506_s23 + $0x14] sm:$0xff] %v188_v2  ;;  %v192_v4 = vld [vmem:[%s3501_s5 + $0xc8] sm:$0xff]  ;;  %191 = vst [vmem:[%s3506_s23 + $0x1c] sm:$0xff] %v190_v3  ;;  %v198_v7 = vld [vmem:[%s3501_s5 + $0x134] sm:$0xff] }
  0x2c   : > { %193 = vst [vmem:[%s3506_s23 + $0x28] sm:$0xff] %v192_v4  ;;  %195 = vst [vmem:[%s3506_s23 + $0x30] sm:$0xff] %v194_v5  ;;  %v196_v6 = vld [vmem:[%s3501_s5 + $0x12c] sm:$0xff]  ;;  %v202_v9 = vld [vmem:[%s3501_s5 + $0x198] sm:$0xff] }
  0x2d   : > { %v200_v8 = vld [vmem:[%s3501_s5 + $0x190] sm:$0xff]  ;;  %197 = vst [vmem:[%s3506_s23 + $0x3c] sm:$0xff] %v196_v6  ;;  %199 = vst [vmem:[%s3506_s23 + $0x44] sm:$0xff] %v198_v7  ;;  %v206_v11 = vld [vmem:[%s3501_s5 + $0x1fc] sm:$0xff] }
  0x2e   : > { %201 = vst [vmem:[%s3506_s23 + $0x50] sm:$0xff] %v200_v8  ;;  %v204_v10 = vld [vmem:[%s3501_s5 + $0x1f4] sm:$0xff]  ;;  %203 = vst [vmem:[%s3506_s23 + $0x58] sm:$0xff] %v202_v9  ;;  %v210_v13 = vld [vmem:[%s3501_s5 + $0x260] sm:$0xff] }
  0x2f   : > { %205 = vst [vmem:[%s3506_s23 + $0x64] sm:$0xff] %v204_v10  ;;  %207 = vst [vmem:[%s3506_s23 + $0x6c] sm:$0xff] %v206_v11  ;;  %v208_v12 = vld [vmem:[%s3501_s5 + $0x258] sm:$0xff]  ;;  %v214_v15 = vld [vmem:[%s3501_s5 + $0x2c4] sm:$0xff] }
  0x30   : > { %v212_v14 = vld [vmem:[%s3501_s5 + $0x2bc] sm:$0xff]  ;;  %209 = vst [vmem:[%s3506_s23 + $0x78] sm:$0xff] %v208_v12  ;;  %211 = vst [vmem:[%s3506_s23 + $0x80] sm:$0xff] %v210_v13  ;;  %v218_v17 = vld [vmem:[%s3501_s5 + $0x328] sm:$0xff] }
  0x31   : > { %213 = vst [vmem:[%s3506_s23 + $0x8c] sm:$0xff] %v212_v14  ;;  %v216_v16 = vld [vmem:[%s3501_s5 + $0x320] sm:$0xff]  ;;  %215 = vst [vmem:[%s3506_s23 + $0x94] sm:$0xff] %v214_v15  ;;  %v222_v19 = vld [vmem:[%s3501_s5 + $0x38c] sm:$0xff] }
  0x32   : > { %217 = vst [vmem:[%s3506_s23 + $0xa0] sm:$0xff] %v216_v16  ;;  %219 = vst [vmem:[%s3506_s23 + $0xa8] sm:$0xff] %v218_v17  ;;  %v220_v18 = vld [vmem:[%s3501_s5 + $0x384] sm:$0xff]  ;;  %v226_v21 = vld [vmem:[%s3501_s5 + $0x3f0] sm:$0xff] }
  0x33   : > { %v224_v20 = vld [vmem:[%s3501_s5 + $0x3e8] sm:$0xff]  ;;  %221 = vst [vmem:[%s3506_s23 + $0xb4] sm:$0xff] %v220_v18  ;;  %223 = vst [vmem:[%s3506_s23 + $0xbc] sm:$0xff] %v222_v19  ;;  %v230_v23 = vld [vmem:[%s3501_s5 + $0x454] sm:$0xff] }
  0x34   : > { %225 = vst [vmem:[%s3506_s23 + $0xc8] sm:$0xff] %v224_v20  ;;  %v228_v22 = vld [vmem:[%s3501_s5 + $0x44c] sm:$0xff]  ;;  %227 = vst [vmem:[%s3506_s23 + $0xd0] sm:$0xff] %v226_v21  ;;  %v234_v25 = vld [vmem:[%s3501_s5 + $0x4b8] sm:$0xff] }
  0x35   : > { %229 = vst [vmem:[%s3506_s23 + $0xdc] sm:$0xff] %v228_v22  ;;  %231 = vst [vmem:[%s3506_s23 + $0xe4] sm:$0xff] %v230_v23  ;;  %v232_v24 = vld [vmem:[%s3501_s5 + $0x4b0] sm:$0xff]  ;;  %v238_v27 = vld [vmem:[%s3501_s5 + $0x51c] sm:$0xff] }
  0x36   : > { %v236_v26 = vld [vmem:[%s3501_s5 + $0x514] sm:$0xff]  ;;  %233 = vst [vmem:[%s3506_s23 + $0xf0] sm:$0xff] %v232_v24  ;;  %235 = vst [vmem:[%s3506_s23 + $0xf8] sm:$0xff] %v234_v25  ;;  %v242_v29 = vld [vmem:[%s3501_s5 + $0x580] sm:$0xff] }
  0x37   : > { %237 = vst [vmem:[%s3506_s23 + $0x104] sm:$0xff] %v236_v26  ;;  %v240_v28 = vld [vmem:[%s3501_s5 + $0x578] sm:$0xff]  ;;  %239 = vst [vmem:[%s3506_s23 + $0x10c] sm:$0xff] %v238_v27  ;;  %v246_v31 = vld [vmem:[%s3501_s5 + $0x5e4] sm:$0xff] }
  0x38   : > { %241 = vst [vmem:[%s3506_s23 + $0x118] sm:$0xff] %v240_v28  ;;  %243 = vst [vmem:[%s3506_s23 + $0x120] sm:$0xff] %v242_v29  ;;  %v244_v30 = vld [vmem:[%s3501_s5 + $0x5dc] sm:$0xff]  ;;  %v250_v33 = vld [vmem:[%s3501_s5 + $0x648] sm:$0xff] }
  0x39   : > { %v248_v32 = vld [vmem:[%s3501_s5 + $0x640] sm:$0xff]  ;;  %245 = vst [vmem:[%s3506_s23 + $0x12c] sm:$0xff] %v244_v30  ;;  %247 = vst [vmem:[%s3506_s23 + $0x134] sm:$0xff] %v246_v31  ;;  %v254_v35 = vld [vmem:[%s3501_s5 + $0x6ac] sm:$0xff] }
  0x3a   : > { %249 = vst [vmem:[%s3506_s23 + $0x140] sm:$0xff] %v248_v32  ;;  %v252_v34 = vld [vmem:[%s3501_s5 + $0x6a4] sm:$0xff]  ;;  %251 = vst [vmem:[%s3506_s23 + $0x148] sm:$0xff] %v250_v33  ;;  %v258_v37 = vld [vmem:[%s3501_s5 + $0x710] sm:$0xff] }
  0x3b   : > { %253 = vst [vmem:[%s3506_s23 + $0x154] sm:$0xff] %v252_v34  ;;  %255 = vst [vmem:[%s3506_s23 + $0x15c] sm:$0xff] %v254_v35  ;;  %v256_v36 = vld [vmem:[%s3501_s5 + $0x708] sm:$0xff]  ;;  %v262_v39 = vld [vmem:[%s3501_s5 + $0x774] sm:$0xff] }
  0x3c   : > { %v260_v38 = vld [vmem:[%s3501_s5 + $0x76c] sm:$0xff]  ;;  %257 = vst [vmem:[%s3506_s23 + $0x168] sm:$0xff] %v256_v36  ;;  %259 = vst [vmem:[%s3506_s23 + $0x170] sm:$0xff] %v258_v37  ;;  %v266_v41 = vld [vmem:[%s3501_s5 + $0x7d8] sm:$0xff] }
  0x3d   : > { %261 = vst [vmem:[%s3506_s23 + $0x17c] sm:$0xff] %v260_v38  ;;  %v264_v40 = vld [vmem:[%s3501_s5 + $0x7d0] sm:$0xff]  ;;  %263 = vst [vmem:[%s3506_s23 + $0x184] sm:$0xff] %v262_v39  ;;  %v270_v43 = vld [vmem:[%s3501_s5 + $0x83c] sm:$0xff] }
  0x3e   : > { %265 = vst [vmem:[%s3506_s23 + $0x190] sm:$0xff] %v264_v40  ;;  %267 = vst [vmem:[%s3506_s23 + $0x198] sm:$0xff] %v266_v41  ;;  %v268_v42 = vld [vmem:[%s3501_s5 + $0x834] sm:$0xff]  ;;  %v274_v45 = vld [vmem:[%s3501_s5 + $0x8a0] sm:$0xff] }
  0x3f   : > { %v272_v44 = vld [vmem:[%s3501_s5 + $0x898] sm:$0xff]  ;;  %269 = vst [vmem:[%s3506_s23 + $0x1a4] sm:$0xff] %v268_v42  ;;  %271 = vst [vmem:[%s3506_s23 + $0x1ac] sm:$0xff] %v270_v43  ;;  %v278_v47 = vld [vmem:[%s3501_s5 + $0x904] sm:$0xff] }
  0x40   : > { %273 = vst [vmem:[%s3506_s23 + $0x1b8] sm:$0xff] %v272_v44  ;;  %v276_v46 = vld [vmem:[%s3501_s5 + $0x8fc] sm:$0xff]  ;;  %275 = vst [vmem:[%s3506_s23 + $0x1c0] sm:$0xff] %v274_v45  ;;  %v282_v49 = vld [vmem:[%s3501_s5 + $0x968] sm:$0xff] }
  0x41   : > { %277 = vst [vmem:[%s3506_s23 + $0x1cc] sm:$0xff] %v276_v46  ;;  %279 = vst [vmem:[%s3506_s23 + $0x1d4] sm:$0xff] %v278_v47  ;;  %v280_v48 = vld [vmem:[%s3501_s5 + $0x960] sm:$0xff]  ;;  %v2479_v50 = vld [vmem:[%s3501_s5 + $0x10] sm:$0xf] }
  0x42   : > { %281 = vst [vmem:[%s3506_s23 + $0x1e0] sm:$0xff] %v280_v48  ;;  %283 = vst [vmem:[%s3506_s23 + $0x1e8] sm:$0xff] %v282_v49  ;;  %v2481_v51 = vld [vmem:[%s3501_s5 + $0x74] sm:$0xf]  ;;  %v2483_v52 = vld [vmem:[%s3501_s5 + $0xd8] sm:$0xf] }
  0x43   : > { %2480 = vst [vmem:[%s3506_s23 + $0x10] sm:$0xf] %v2479_v50  ;;  %v2485_v53 = vld [vmem:[%s3501_s5 + $0x13c] sm:$0xf]  ;;  %2482 = vst [vmem:[%s3506_s23 + $0x24] sm:$0xf] %v2481_v51 }
  0x44   : > { %2484 = vst [vmem:[%s3506_s23 + $0x38] sm:$0xf] %v2483_v52  ;;  %2486 = vst [vmem:[%s3506_s23 + $0x4c] sm:$0xf] %v2485_v53  ;;  %v2487_v54 = vld [vmem:[%s3501_s5 + $0x1a0] sm:$0xf] }
  0x45   : > { %v2489_v55 = vld [vmem:[%s3501_s5 + $0x204] sm:$0xf]  ;;  %v2491_v56 = vld [vmem:[%s3501_s5 + $0x268] sm:$0xf]  ;;  %2488 = vst [vmem:[%s3506_s23 + $0x60] sm:$0xf] %v2487_v54 }
  0x46   : > { %2490 = vst [vmem:[%s3506_s23 + $0x74] sm:$0xf] %v2489_v55  ;;  %2492 = vst [vmem:[%s3506_s23 + $0x88] sm:$0xf] %v2491_v56  ;;  %v2493_v57 = vld [vmem:[%s3501_s5 + $0x2cc] sm:$0xf] }
  0x47   : > { %v2495_v58 = vld [vmem:[%s3501_s5 + $0x330] sm:$0xf]  ;;  %v2497_v59 = vld [vmem:[%s3501_s5 + $0x394] sm:$0xf]  ;;  %2494 = vst [vmem:[%s3506_s23 + $0x9c] sm:$0xf] %v2493_v57 }
  0x48   : > { %2496 = vst [vmem:[%s3506_s23 + $0xb0] sm:$0xf] %v2495_v58  ;;  %2498 = vst [vmem:[%s3506_s23 + $0xc4] sm:$0xf] %v2497_v59  ;;  %v2499_v60 = vld [vmem:[%s3501_s5 + $0x3f8] sm:$0xf] }
  0x49   : > { %v2501_v61 = vld [vmem:[%s3501_s5 + $0x45c] sm:$0xf]  ;;  %v2503_v62 = vld [vmem:[%s3501_s5 + $0x4c0] sm:$0xf]  ;;  %2500 = vst [vmem:[%s3506_s23 + $0xd8] sm:$0xf] %v2499_v60 }
  0x4a   : > { %2502 = vst [vmem:[%s3506_s23 + $0xec] sm:$0xf] %v2501_v61  ;;  %2504 = vst [vmem:[%s3506_s23 + $0x100] sm:$0xf] %v2503_v62  ;;  %v2505_v63 = vld [vmem:[%s3501_s5 + $0x524] sm:$0xf] }
  0x4b   : > { %v2507_v0 = vld [vmem:[%s3501_s5 + $0x588] sm:$0xf]  ;;  %v2509_v1 = vld [vmem:[%s3501_s5 + $0x5ec] sm:$0xf]  ;;  %2506 = vst [vmem:[%s3506_s23 + $0x114] sm:$0xf] %v2505_v63 }
  0x4c   : > { %2508 = vst [vmem:[%s3506_s23 + $0x128] sm:$0xf] %v2507_v0  ;;  %2510 = vst [vmem:[%s3506_s23 + $0x13c] sm:$0xf] %v2509_v1  ;;  %v2511_v2 = vld [vmem:[%s3501_s5 + $0x650] sm:$0xf] }
  0x4d   : > { %v2513_v3 = vld [vmem:[%s3501_s5 + $0x6b4] sm:$0xf]  ;;  %v2515_v4 = vld [vmem:[%s3501_s5 + $0x718] sm:$0xf]  ;;  %2512 = vst [vmem:[%s3506_s23 + $0x150] sm:$0xf] %v2511_v2 }
  0x4e   : > { %2514 = vst [vmem:[%s3506_s23 + $0x164] sm:$0xf] %v2513_v3  ;;  %2516 = vst [vmem:[%s3506_s23 + $0x178] sm:$0xf] %v2515_v4  ;;  %v2517_v5 = vld [vmem:[%s3501_s5 + $0x77c] sm:$0xf] }
  0x4f   : > { %v2519_v6 = vld [vmem:[%s3501_s5 + $0x7e0] sm:$0xf]  ;;  %v2521_v7 = vld [vmem:[%s3501_s5 + $0x844] sm:$0xf]  ;;  %2518 = vst [vmem:[%s3506_s23 + $0x18c] sm:$0xf] %v2517_v5 }
  0x50   : > { %2520 = vst [vmem:[%s3506_s23 + $0x1a0] sm:$0xf] %v2519_v6  ;;  %2522 = vst [vmem:[%s3506_s23 + $0x1b4] sm:$0xf] %v2521_v7  ;;  %v2523_v8 = vld [vmem:[%s3501_s5 + $0x8a8] sm:$0xf] }
  0x51   : > { %v2525_v9 = vld [vmem:[%s3501_s5 + $0x90c] sm:$0xf]  ;;  %v2527_v10 = vld [vmem:[%s3501_s5 + $0x970] sm:$0xf]  ;;  %2524 = vst [vmem:[%s3506_s23 + $0x1c8] sm:$0xf] %v2523_v8 }
  0x52   : > { %2526 = vst [vmem:[%s3506_s23 + $0x1dc] sm:$0xf] %v2525_v9  ;;  %2528 = vst [vmem:[%s3506_s23 + $0x1f0] sm:$0xf] %v2527_v10 }
  0x53 PF: > { %346 = sbr.rel (!%p3476_p9) target bundleno = 145 (0x91), region = 46  ;;  %s348_s28 = sand.u32 (%p3476_p9), 1, %s3342_s15  }
  0x54   : > { %s2669_s7 = smul.u32 (%p3476_p9), 160, %s3362_s20  ;;  %s4208_s1 = sld [smem:[#allocation8_spill]] (%p3476_p9) }
  0x55   : > { %s3060_s11 = smul.u32 (%p3476_p9), 320, %s348_s28 }
  0x56   : > { %s353_s26 = sadd.s32 (%p3476_p9), %s3366_s21, %s2669_s7 }
  0x57   : > { %s2530_s27 = sshll.u32 (%p3476_p9), %s353_s26, 2  ;;  %s3668_s6 = scalar_lea.vmem (%p3476_p9), [#allocation4], %s3060_s11 }
  0x5a   : > { %s3663_s0 = scalar_lea.vmem %s4208_s1, %s2530_s27 }
  0x5b   : > { %v371_v11 = vld [vmem:[%s3663_s0] sm:$0xf]  ;;  %v373_v12 = vld [vmem:[%s3663_s0 + $0x8] sm:$0xf]  ;;  %v375_v13 = vld [vmem:[%s3663_s0 + $0x10] sm:$0xf] }
  0x5c   : > { %372 = vst [vmem:[%s3668_s6] sm:$0xf] %v371_v11  ;;  %374 = vst [vmem:[%s3668_s6 + $0x4] sm:$0xf] %v373_v12  ;;  %v377_v14 = vld [vmem:[%s3663_s0 + $0x18] sm:$0xf] }
  0x5d   : > { %376 = vst [vmem:[%s3668_s6 + $0x8] sm:$0xf] %v375_v13  ;;  %v379_v15 = vld [vmem:[%s3663_s0 + $0x20] sm:$0xf]  ;;  %v381_v16 = vld [vmem:[%s3663_s0 + $0x28] sm:$0xf] }
  0x5e   : > { %378 = vst [vmem:[%s3668_s6 + $0xc] sm:$0xf] %v377_v14  ;;  %380 = vst [vmem:[%s3668_s6 + $0x10] sm:$0xf] %v379_v15  ;;  %v383_v17 = vld [vmem:[%s3663_s0 + $0x30] sm:$0xf] }
  0x5f   : > { %382 = vst [vmem:[%s3668_s6 + $0x14] sm:$0xf] %v381_v16  ;;  %v385_v18 = vld [vmem:[%s3663_s0 + $0x38] sm:$0xf]  ;;  %v387_v19 = vld [vmem:[%s3663_s0 + $0x40] sm:$0xf] }
  0x60   : > { %384 = vst [vmem:[%s3668_s6 + $0x18] sm:$0xf] %v383_v17  ;;  %386 = vst [vmem:[%s3668_s6 + $0x1c] sm:$0xf] %v385_v18  ;;  %v389_v20 = vld [vmem:[%s3663_s0 + $0x48] sm:$0xf] }
  0x61   : > { %388 = vst [vmem:[%s3668_s6 + $0x20] sm:$0xf] %v387_v19  ;;  %v391_v21 = vld [vmem:[%s3663_s0 + $0x50] sm:$0xf]  ;;  %v393_v22 = vld [vmem:[%s3663_s0 + $0x58] sm:$0xf] }
  0x62   : > { %390 = vst [vmem:[%s3668_s6 + $0x24] sm:$0xf] %v389_v20  ;;  %392 = vst [vmem:[%s3668_s6 + $0x28] sm:$0xf] %v391_v21  ;;  %v395_v23 = vld [vmem:[%s3663_s0 + $0x60] sm:$0xf] }
  0x63   : > { %394 = vst [vmem:[%s3668_s6 + $0x2c] sm:$0xf] %v393_v22  ;;  %v397_v24 = vld [vmem:[%s3663_s0 + $0x68] sm:$0xf]  ;;  %v399_v25 = vld [vmem:[%s3663_s0 + $0x70] sm:$0xf] }
  0x64   : > { %396 = vst [vmem:[%s3668_s6 + $0x30] sm:$0xf] %v395_v23  ;;  %398 = vst [vmem:[%s3668_s6 + $0x34] sm:$0xf] %v397_v24  ;;  %v401_v26 = vld [vmem:[%s3663_s0 + $0x78] sm:$0xf] }
  0x65   : > { %400 = vst [vmem:[%s3668_s6 + $0x38] sm:$0xf] %v399_v25  ;;  %v403_v27 = vld [vmem:[%s3663_s0 + $0x80] sm:$0xf]  ;;  %v405_v28 = vld [vmem:[%s3663_s0 + $0x88] sm:$0xf] }
  0x66   : > { %402 = vst [vmem:[%s3668_s6 + $0x3c] sm:$0xf] %v401_v26  ;;  %404 = vst [vmem:[%s3668_s6 + $0x40] sm:$0xf] %v403_v27  ;;  %v407_v29 = vld [vmem:[%s3663_s0 + $0x90] sm:$0xf] }
  0x67   : > { %406 = vst [vmem:[%s3668_s6 + $0x44] sm:$0xf] %v405_v28  ;;  %v409_v30 = vld [vmem:[%s3663_s0 + $0x98] sm:$0xf]  ;;  %v411_v31 = vld [vmem:[%s3663_s0 + $0xa0] sm:$0xf] }
  0x68   : > { %408 = vst [vmem:[%s3668_s6 + $0x48] sm:$0xf] %v407_v29  ;;  %410 = vst [vmem:[%s3668_s6 + $0x4c] sm:$0xf] %v409_v30  ;;  %v413_v32 = vld [vmem:[%s3663_s0 + $0xa8] sm:$0xf] }
  0x69   : > { %412 = vst [vmem:[%s3668_s6 + $0x50] sm:$0xf] %v411_v31  ;;  %v415_v33 = vld [vmem:[%s3663_s0 + $0xb0] sm:$0xf]  ;;  %v417_v34 = vld [vmem:[%s3663_s0 + $0xb8] sm:$0xf] }
  0x6a   : > { %414 = vst [vmem:[%s3668_s6 + $0x54] sm:$0xf] %v413_v32  ;;  %416 = vst [vmem:[%s3668_s6 + $0x58] sm:$0xf] %v415_v33  ;;  %v419_v35 = vld [vmem:[%s3663_s0 + $0xc0] sm:$0xf] }
  0x6b   : > { %418 = vst [vmem:[%s3668_s6 + $0x5c] sm:$0xf] %v417_v34  ;;  %v421_v36 = vld [vmem:[%s3663_s0 + $0xc8] sm:$0xf]  ;;  %v423_v37 = vld [vmem:[%s3663_s0 + $0xd0] sm:$0xf] }
  0x6c   : > { %420 = vst [vmem:[%s3668_s6 + $0x60] sm:$0xf] %v419_v35  ;;  %422 = vst [vmem:[%s3668_s6 + $0x64] sm:$0xf] %v421_v36  ;;  %v425_v38 = vld [vmem:[%s3663_s0 + $0xd8] sm:$0xf] }
  0x6d   : > { %424 = vst [vmem:[%s3668_s6 + $0x68] sm:$0xf] %v423_v37  ;;  %v427_v39 = vld [vmem:[%s3663_s0 + $0xe0] sm:$0xf]  ;;  %v429_v40 = vld [vmem:[%s3663_s0 + $0xe8] sm:$0xf] }
  0x6e   : > { %426 = vst [vmem:[%s3668_s6 + $0x6c] sm:$0xf] %v425_v38  ;;  %428 = vst [vmem:[%s3668_s6 + $0x70] sm:$0xf] %v427_v39  ;;  %v431_v41 = vld [vmem:[%s3663_s0 + $0xf0] sm:$0xf] }
  0x6f   : > { %430 = vst [vmem:[%s3668_s6 + $0x74] sm:$0xf] %v429_v40  ;;  %v433_v42 = vld [vmem:[%s3663_s0 + $0xf8] sm:$0xf]  ;;  %v435_v43 = vld [vmem:[%s3663_s0 + $0x100] sm:$0xf] }
  0x70   : > { %432 = vst [vmem:[%s3668_s6 + $0x78] sm:$0xf] %v431_v41  ;;  %434 = vst [vmem:[%s3668_s6 + $0x7c] sm:$0xf] %v433_v42  ;;  %v437_v44 = vld [vmem:[%s3663_s0 + $0x108] sm:$0xf] }
  0x71   : > { %436 = vst [vmem:[%s3668_s6 + $0x80] sm:$0xf] %v435_v43  ;;  %v439_v45 = vld [vmem:[%s3663_s0 + $0x110] sm:$0xf]  ;;  %v441_v46 = vld [vmem:[%s3663_s0 + $0x118] sm:$0xf] }
  0x72   : > { %438 = vst [vmem:[%s3668_s6 + $0x84] sm:$0xf] %v437_v44  ;;  %440 = vst [vmem:[%s3668_s6 + $0x88] sm:$0xf] %v439_v45  ;;  %v443_v47 = vld [vmem:[%s3663_s0 + $0x120] sm:$0xf] }
  0x73   : > { %442 = vst [vmem:[%s3668_s6 + $0x8c] sm:$0xf] %v441_v46  ;;  %v445_v48 = vld [vmem:[%s3663_s0 + $0x128] sm:$0xf]  ;;  %v447_v49 = vld [vmem:[%s3663_s0 + $0x130] sm:$0xf] }
  0x74   : > { %444 = vst [vmem:[%s3668_s6 + $0x90] sm:$0xf] %v443_v47  ;;  %446 = vst [vmem:[%s3668_s6 + $0x94] sm:$0xf] %v445_v48  ;;  %v449_v50 = vld [vmem:[%s3663_s0 + $0x138] sm:$0xf] }
  0x75   : > { %448 = vst [vmem:[%s3668_s6 + $0x98] sm:$0xf] %v447_v49  ;;  %v451_v51 = vld [vmem:[%s3663_s0 + $0x140] sm:$0xf]  ;;  %v453_v52 = vld [vmem:[%s3663_s0 + $0x148] sm:$0xf] }
  0x76   : > { %450 = vst [vmem:[%s3668_s6 + $0x9c] sm:$0xf] %v449_v50  ;;  %452 = vst [vmem:[%s3668_s6 + $0xa0] sm:$0xf] %v451_v51  ;;  %v455_v53 = vld [vmem:[%s3663_s0 + $0x150] sm:$0xf] }
  0x77   : > { %454 = vst [vmem:[%s3668_s6 + $0xa4] sm:$0xf] %v453_v52  ;;  %v457_v54 = vld [vmem:[%s3663_s0 + $0x158] sm:$0xf]  ;;  %v459_v55 = vld [vmem:[%s3663_s0 + $0x160] sm:$0xf] }
  0x78   : > { %456 = vst [vmem:[%s3668_s6 + $0xa8] sm:$0xf] %v455_v53  ;;  %458 = vst [vmem:[%s3668_s6 + $0xac] sm:$0xf] %v457_v54  ;;  %v461_v56 = vld [vmem:[%s3663_s0 + $0x168] sm:$0xf] }
  0x79   : > { %460 = vst [vmem:[%s3668_s6 + $0xb0] sm:$0xf] %v459_v55  ;;  %v463_v57 = vld [vmem:[%s3663_s0 + $0x170] sm:$0xf]  ;;  %v465_v58 = vld [vmem:[%s3663_s0 + $0x178] sm:$0xf] }
  0x7a   : > { %462 = vst [vmem:[%s3668_s6 + $0xb4] sm:$0xf] %v461_v56  ;;  %464 = vst [vmem:[%s3668_s6 + $0xb8] sm:$0xf] %v463_v57  ;;  %v467_v59 = vld [vmem:[%s3663_s0 + $0x180] sm:$0xf] }
  0x7b   : > { %466 = vst [vmem:[%s3668_s6 + $0xbc] sm:$0xf] %v465_v58  ;;  %v469_v60 = vld [vmem:[%s3663_s0 + $0x188] sm:$0xf]  ;;  %v471_v61 = vld [vmem:[%s3663_s0 + $0x190] sm:$0xf] }
  0x7c   : > { %468 = vst [vmem:[%s3668_s6 + $0xc0] sm:$0xf] %v467_v59  ;;  %470 = vst [vmem:[%s3668_s6 + $0xc4] sm:$0xf] %v469_v60  ;;  %v473_v62 = vld [vmem:[%s3663_s0 + $0x198] sm:$0xf] }
  0x7d   : > { %472 = vst [vmem:[%s3668_s6 + $0xc8] sm:$0xf] %v471_v61  ;;  %v475_v63 = vld [vmem:[%s3663_s0 + $0x1a0] sm:$0xf]  ;;  %v477_v0 = vld [vmem:[%s3663_s0 + $0x1a8] sm:$0xf] }
  0x7e   : > { %474 = vst [vmem:[%s3668_s6 + $0xcc] sm:$0xf] %v473_v62  ;;  %476 = vst [vmem:[%s3668_s6 + $0xd0] sm:$0xf] %v475_v63  ;;  %v479_v1 = vld [vmem:[%s3663_s0 + $0x1b0] sm:$0xf] }
  0x7f   : > { %478 = vst [vmem:[%s3668_s6 + $0xd4] sm:$0xf] %v477_v0  ;;  %v481_v2 = vld [vmem:[%s3663_s0 + $0x1b8] sm:$0xf]  ;;  %v483_v3 = vld [vmem:[%s3663_s0 + $0x1c0] sm:$0xf] }
  0x80   : > { %480 = vst [vmem:[%s3668_s6 + $0xd8] sm:$0xf] %v479_v1  ;;  %482 = vst [vmem:[%s3668_s6 + $0xdc] sm:$0xf] %v481_v2  ;;  %v485_v4 = vld [vmem:[%s3663_s0 + $0x1c8] sm:$0xf] }
  0x81   : > { %484 = vst [vmem:[%s3668_s6 + $0xe0] sm:$0xf] %v483_v3  ;;  %v487_v5 = vld [vmem:[%s3663_s0 + $0x1d0] sm:$0xf]  ;;  %v489_v6 = vld [vmem:[%s3663_s0 + $0x1d8] sm:$0xf] }
  0x82   : > { %486 = vst [vmem:[%s3668_s6 + $0xe4] sm:$0xf] %v485_v4  ;;  %488 = vst [vmem:[%s3668_s6 + $0xe8] sm:$0xf] %v487_v5  ;;  %v491_v7 = vld [vmem:[%s3663_s0 + $0x1e0] sm:$0xf] }
  0x83   : > { %490 = vst [vmem:[%s3668_s6 + $0xec] sm:$0xf] %v489_v6  ;;  %v493_v8 = vld [vmem:[%s3663_s0 + $0x1e8] sm:$0xf]  ;;  %v495_v9 = vld [vmem:[%s3663_s0 + $0x1f0] sm:$0xf] }
  0x84   : > { %492 = vst [vmem:[%s3668_s6 + $0xf0] sm:$0xf] %v491_v7  ;;  %494 = vst [vmem:[%s3668_s6 + $0xf4] sm:$0xf] %v493_v8  ;;  %v497_v10 = vld [vmem:[%s3663_s0 + $0x1f8] sm:$0xf] }
  0x85   : > { %496 = vst [vmem:[%s3668_s6 + $0xf8] sm:$0xf] %v495_v9  ;;  %v499_v11 = vld [vmem:[%s3663_s0 + $0x200] sm:$0xf]  ;;  %v501_v12 = vld [vmem:[%s3663_s0 + $0x208] sm:$0xf] }
  0x86   : > { %498 = vst [vmem:[%s3668_s6 + $0xfc] sm:$0xf] %v497_v10  ;;  %500 = vst [vmem:[%s3668_s6 + $0x100] sm:$0xf] %v499_v11  ;;  %v503_v13 = vld [vmem:[%s3663_s0 + $0x210] sm:$0xf] }
  0x87   : > { %502 = vst [vmem:[%s3668_s6 + $0x104] sm:$0xf] %v501_v12  ;;  %v505_v14 = vld [vmem:[%s3663_s0 + $0x218] sm:$0xf]  ;;  %v507_v15 = vld [vmem:[%s3663_s0 + $0x220] sm:$0xf] }
  0x88   : > { %504 = vst [vmem:[%s3668_s6 + $0x108] sm:$0xf] %v503_v13  ;;  %506 = vst [vmem:[%s3668_s6 + $0x10c] sm:$0xf] %v505_v14  ;;  %v509_v16 = vld [vmem:[%s3663_s0 + $0x228] sm:$0xf] }
  0x89   : > { %508 = vst [vmem:[%s3668_s6 + $0x110] sm:$0xf] %v507_v15  ;;  %v511_v17 = vld [vmem:[%s3663_s0 + $0x230] sm:$0xf]  ;;  %v513_v18 = vld [vmem:[%s3663_s0 + $0x238] sm:$0xf] }
  0x8a   : > { %510 = vst [vmem:[%s3668_s6 + $0x114] sm:$0xf] %v509_v16  ;;  %512 = vst [vmem:[%s3668_s6 + $0x118] sm:$0xf] %v511_v17  ;;  %v515_v19 = vld [vmem:[%s3663_s0 + $0x240] sm:$0xf] }
  0x8b   : > { %514 = vst [vmem:[%s3668_s6 + $0x11c] sm:$0xf] %v513_v18  ;;  %v517_v20 = vld [vmem:[%s3663_s0 + $0x248] sm:$0xf]  ;;  %v519_v21 = vld [vmem:[%s3663_s0 + $0x250] sm:$0xf] }
  0x8c   : > { %516 = vst [vmem:[%s3668_s6 + $0x120] sm:$0xf] %v515_v19  ;;  %518 = vst [vmem:[%s3668_s6 + $0x124] sm:$0xf] %v517_v20  ;;  %v521_v22 = vld [vmem:[%s3663_s0 + $0x258] sm:$0xf] }
  0x8d   : > { %520 = vst [vmem:[%s3668_s6 + $0x128] sm:$0xf] %v519_v21  ;;  %v523_v23 = vld [vmem:[%s3663_s0 + $0x260] sm:$0xf]  ;;  %v525_v24 = vld [vmem:[%s3663_s0 + $0x268] sm:$0xf] }
  0x8e   : > { %522 = vst [vmem:[%s3668_s6 + $0x12c] sm:$0xf] %v521_v22  ;;  %524 = vst [vmem:[%s3668_s6 + $0x130] sm:$0xf] %v523_v23  ;;  %v527_v25 = vld [vmem:[%s3663_s0 + $0x270] sm:$0xf] }
  0x8f   : > { %526 = vst [vmem:[%s3668_s6 + $0x134] sm:$0xf] %v525_v24  ;;  %v529_v26 = vld [vmem:[%s3663_s0 + $0x278] sm:$0xf]  ;;  %528 = vst [vmem:[%s3668_s6 + $0x138] sm:$0xf] %v527_v25 }
  0x90   : > { %530 = vst [vmem:[%s3668_s6 + $0x13c] sm:$0xf] %v529_v26 }
  0x91 PF: > { %p2531_p0 = scmp.ge.s32.totalorder %s3370_s22, 1  ;;  %p718_p1 = scmp.lt.s32.totalorder %s3370_s22, 11 }
  0x93   : > { %p719_p2 = pnand %p2531_p0, %p718_p1 }
  0x94   : > { %s725_s5 = sand.u32 (!%p719_p2), 1, %s3346_s16   ;;  %s732_s23 = sand.u32 (!%p719_p2), 1, %s3338_s14  }
  0x95   : > { %722 = sbr.rel (%p719_p2) target bundleno = 605 (0x25d), region = 91  ;;  %s758_s7 = sand.u32 (!%p719_p2), 1, %s3330_s12  }
  0x96   : > { %s3061_s28 = smul.u32 (!%p719_p2), 500, %s725_s5  ;;  %p764_p3 = scmp.lt.s32.totalorder (!%p719_p2), %s3358_s19, 1 }
  0x97   : > { %s3062_s0 = smul.u32 (!%p719_p2), 320, %s732_s23  ;;  %p2532_p4 = scmp.ne.s32.totalorder (!%p719_p2), %s3354_s18, 0 }
  0x98   : > { %s3063_s11 = smul.u32 (!%p719_p2), 100, %s758_s7  ;;  %s3840_s6 = scalar_lea.vmem (!%p719_p2), [#allocation3], %s3061_s28 }
  0x99   : > { %s3842_s1 = scalar_lea.vmem (!%p719_p2), [#allocation4], %s3062_s0 }
  0x9a   : > { %s3844_s25 = scalar_lea.vmem (!%p719_p2), [#allocation5], %s3063_s11 }
  0x9c   : > { %s3834_s26 = scalar_select %p764_p3, %s3358_s19, 1 }
  0x9d   : > { %772 = sbr.rel (%p2532_p4) target bundleno = 171 (0xab), region = 103  ;;  %v3372_v27 = vmov (!%p2532_p4), 0.0  }
  0x9e   : > { %s766_s4 = scalar_lea.vmem %s4198_s2, %s3834_s26  ;;  %773 = vst [vmem:[#allocation2] sm:$0xff] (!%p2532_p4), %v3372_v27  ;;  %774 = vst [vmem:[#allocation2 + $0x8] sm:$0xff] (!%p2532_p4), %v3372_v27 }
  0x9f   : > { %775 = vst [vmem:[#allocation2 + $0x10] sm:$0xff] (!%p2532_p4), %v3372_v27  ;;  %776 = vst [vmem:[#allocation2 + $0x18] sm:$0xff] (!%p2532_p4), %v3372_v27 }
  0xa0   : > { %777 = vst [vmem:[#allocation2 + $0x20] sm:$0xff] (!%p2532_p4), %v3372_v27  ;;  %778 = vst [vmem:[#allocation2 + $0x28] sm:$0xff] (!%p2532_p4), %v3372_v27 }
  0xa1   : > { %779 = vst [vmem:[#allocation2 + $0x30] sm:$0xff] (!%p2532_p4), %v3372_v27  ;;  %780 = vst [vmem:[#allocation2 + $0x38] sm:$0xff] (!%p2532_p4), %v3372_v27 }
  0xa2   : > { %781 = vst [vmem:[#allocation2 + $0x40] sm:$0xff] (!%p2532_p4), %v3372_v27  ;;  %782 = vst [vmem:[#allocation2 + $0x48] sm:$0xff] (!%p2532_p4), %v3372_v27 }
  0xa3   : > { %783 = vst [vmem:[#allocation2 + $0x50] sm:$0xff] (!%p2532_p4), %v3372_v27  ;;  %784 = vst [vmem:[#allocation2 + $0x58] sm:$0xff] (!%p2532_p4), %v3372_v27 }
  0xa4   : > { %785 = vst [vmem:[#allocation2 + $0x60] sm:$0xff] %v3372_v27  ;;  %786 = vst [vmem:[#allocation2 + $0x68] sm:$0xff] %v3372_v27 }
  0xa5   : > { %787 = vst [vmem:[#allocation2 + $0x70] sm:$0xff] %v3372_v27  ;;  %788 = vst [vmem:[#allocation2 + $0x78] sm:$0xff] %v3372_v27 }
  0xa6   : > { %789 = vst [vmem:[#allocation2 + $0x80] sm:$0xff] %v3372_v27  ;;  %790 = vst [vmem:[#allocation2 + $0x88] sm:$0xff] %v3372_v27 }
  0xa7   : > { %791 = vst [vmem:[#allocation2 + $0x90] sm:$0xff] %v3372_v27  ;;  %792 = vst [vmem:[#allocation2 + $0x98] sm:$0xff] %v3372_v27 }
  0xa8   : > { %793 = vst [vmem:[#allocation2 + $0xa0] sm:$0xff] %v3372_v27  ;;  %794 = vst [vmem:[#allocation2 + $0xa8] sm:$0xff] %v3372_v27 }
  0xa9   : > { %795 = vst [vmem:[#allocation2 + $0xb0] sm:$0xff] %v3372_v27  ;;  %796 = vst [vmem:[#allocation2 + $0xb8] sm:$0xff] %v3372_v27 }
  0xaa   : > { %797 = vst [vmem:[#allocation2 + $0xc0] sm:$0xff] %v3372_v27 }
  0xab PF: > { %v3155_v28 = vld [vmem:[%s3842_s1 + $0x40] sm:$0xff]   ;;  %v3157_v30 = vld [vmem:[%s3842_s1 + $0x48] sm:$0xff]   ;;  %v3159_v32 = vld [vmem:[%s3842_s1 + $0x50] sm:$0xff]   ;;  %v3373_v52 = vmov 0.0   ;;  %vm3374_vm0 = vmmov 0   ;;  %p2638_p5 = scmp.ne.s32.totalorder %s3354_s18, 4 }
  0xac   : > { %v3156_v29 = vld [vmem:[%s3842_s1] sm:$0xff]   ;;  %2766 = vmatprep.subr.bf16.mxu0 %v3155_v28  ;;  %3043 = vmatprep.subr.bf16.mxu1 %v3155_v28  ;;  %v3158_v31 = vld [vmem:[%s3842_s1 + $0x8] sm:$0xff]   ;;  %v3160_v33 = vld [vmem:[%s3842_s1 + $0x10] sm:$0xff]  }
  0xad   : > { %2767 = vmatpush3.bf16.msra.mxu0 %v3156_v29  ;;  %3051 = vmatpush3.bf16.msra.mxu1 %v3156_v29  ;;  %v3161_v34 = vld [vmem:[%s3842_s1 + $0x58] sm:$0xff]   ;;  %v3163_v36 = vld [vmem:[%s3842_s1 + $0x60] sm:$0xff]   ;;  %v3165_v38 = vld [vmem:[%s3842_s1 + $0x68] sm:$0xff]  }
  0xae   : > { %2768 = vmatprep.subr.bf16.mxu0 %v3157_v30  ;;  %3044 = vmatprep.subr.bf16.mxu1 %v3157_v30  ;;  %v3162_v35 = vld [vmem:[%s3842_s1 + $0x18] sm:$0xff]   ;;  %v3164_v37 = vld [vmem:[%s3842_s1 + $0x20] sm:$0xff]   ;;  %v3166_v41 = vld [vmem:[%s3842_s1 + $0x28] sm:$0xff]  }
  0xaf   : > { %v3173_v39 = vld [vmem:[%s3840_s6 + $0x4] ss:$20 sps:$4 sm:$0xff]   ;;  %v3176_v40 = vld [vmem:[%s3840_s6 + $0x11c] ss:$20 sps:$4 sm:$0xff]   ;;  %v3171_v47 = vld [vmem:[%s3840_s6] ss:$20 sps:$4 sm:$0xff]  }
  0xb0   : > { %v3167_v42 = vld [vmem:[%s3842_s1 + $0x70] sm:$0xff]   ;;  %1580 = vmatprep.mubr.bf16.mxu0 %v3173_v39  ;;  %1636 = vmatprep.mubr.bf16.mxu1 %v3176_v40  ;;  %v3169_v44 = vld [vmem:[%s3842_s1 + $0x78] sm:$0xff]   ;;  %v3178_v46 = vld [vmem:[%s3842_s1 + $0xc0] sm:$0xff]  }
  0xb1   : > { %2769 = vmatpush3.bf16.msra.mxu0 %v3158_v31  ;;  %3052 = vmatpush3.bf16.msra.mxu1 %v3158_v31  ;;  %v3168_v43 = vld [vmem:[%s3842_s1 + $0x30] sm:$0xff]   ;;  %v3170_v45 = vld [vmem:[%s3842_s1 + $0x38] sm:$0xff]   ;;  %v3177_v49 = vld [vmem:[%s3842_s1 + $0x100] sm:$0xff]  }
  0xb2   : > { %2770 = vmatprep.subr.bf16.mxu0 %v3159_v32  ;;  %3045 = vmatprep.subr.bf16.mxu1 %v3159_v32  ;;  %v3174_v48 = vld [vmem:[%s3840_s6 + $0x118] ss:$20 sps:$4 sm:$0xff]   ;;  %v3187_v54 = vld [vmem:[%s3842_s1 + $0xc8] sm:$0xff]  }
  0xb3   : > { %v3179_v50 = vld [vmem:[%s3842_s1 + $0x80] sm:$0xff]   ;;  %v3186_v55 = vld [vmem:[%s3842_s1 + $0x108] sm:$0xff]   ;;  %v3193_v58 = vld [vmem:[%s3842_s1 + $0xd0] sm:$0xff]  }
  0xb4   : > { %v3180_v51 = vld [vmem:[%s3840_s6 + $0x2c] ss:$20 sps:$4 sm:$0xff]   ;;  %v3182_v53 = vld [vmem:[%s3840_s6 + $0x144] ss:$20 sps:$4 sm:$0xff]   ;;  %v3184_v57 = vld [vmem:[%s3840_s6 + $0x28] ss:$20 sps:$4 sm:$0xff]  }
  0xb5   : > { %2771 = vmatpush3.bf16.msra.mxu0 %v3160_v33  ;;  %3053 = vmatpush3.bf16.msra.mxu1 %v3160_v33  ;;  %v3188_v56 = vld [vmem:[%s3842_s1 + $0x88] sm:$0xff]   ;;  %v3194_v62 = vld [vmem:[%s3842_s1 + $0x110] sm:$0xff]   ;;  %v3198_v0 = vld [vmem:[%s3842_s1 + $0xd8] sm:$0xff]  }
  0xb6   : > { %2772 = vmatprep.subr.bf16.mxu0 %v3161_v34  ;;  %3046 = vmatprep.subr.bf16.mxu1 %v3161_v34  ;;  %v3185_v59 = vld [vmem:[%s3840_s6 + $0x140] ss:$20 sps:$4 sm:$0xff]   ;;  %v3197_v63 = vld [vmem:[%s3842_s1 + $0x90] sm:$0xff]  }
  0xb7   : > { %v3189_v60 = vld [vmem:[%s3840_s6 + $0x54] ss:$20 sps:$4 sm:$0xff]   ;;  %v3191_v61 = vld [vmem:[%s3840_s6 + $0x16c] ss:$20 sps:$4 sm:$0xff]   ;;  %v3195_v2 = vld [vmem:[%s3840_s6 + $0x50] ss:$20 sps:$4 sm:$0xff]  }
  0xb8   : > { %v3199_v1 = vld [vmem:[%s3842_s1 + $0x98] sm:$0xff]   ;;  %v3196_v3 = vld [vmem:[%s3840_s6 + $0x168] ss:$20 sps:$4 sm:$0xff]  }
  0xb9   : > { %2773 = vmatpush3.bf16.msra.mxu0 %v3162_v35  ;;  %3054 = vmatpush3.bf16.msra.mxu1 %v3162_v35  ;;  %v3200_v4 = vld [vmem:[%s3842_s1 + $0x118] sm:$0xff]   ;;  %v3207_v5 = vld [vmem:[%s3842_s1 + $0xe0] sm:$0xff]   ;;  %v3216_v10 = vld [vmem:[%s3842_s1 + $0xe8] sm:$0xff]  }
  0xba   : > { %2774 = vmatprep.subr.bf16.mxu0 %v3163_v36  ;;  %3047 = vmatprep.subr.bf16.mxu1 %v3163_v36  ;;  %v3201_v6 = vld [vmem:[%s3840_s6 + $0x7c] ss:$20 sps:$4 sm:$0xff]   ;;  %v3203_v7 = vld [vmem:[%s3840_s6 + $0x194] ss:$20 sps:$4 sm:$0xff]   ;;  %v3205_v12 = vld [vmem:[%s3840_s6 + $0x78] ss:$20 sps:$4 sm:$0xff]  }
  0xbb   : > { %v3208_v8 = vld [vmem:[%s3842_s1 + $0xa0] sm:$0xff]   ;;  %v3217_v11 = vld [vmem:[%s3842_s1 + $0xa8] sm:$0xff]   ;;  %v3222_v15 = vld [vmem:[%s3842_s1 + $0xf0] sm:$0xff]  }
  0xbc   : > { %v3209_v9 = vld [vmem:[%s3842_s1 + $0x120] sm:$0xff]   ;;  %v3206_v13 = vld [vmem:[%s3840_s6 + $0x190] ss:$20 sps:$4 sm:$0xff]  }
  0xbd   : > { %2775 = vmatpush3.bf16.msra.mxu0 %v3164_v37  ;;  %3055 = vmatpush3.bf16.msra.mxu1 %v3164_v37  ;;  %v3218_v14 = vld [vmem:[%s3842_s1 + $0x128] sm:$0xff]   ;;  %v3210_v16 = vld [vmem:[%s3840_s6 + $0xa4] ss:$20 sps:$4 sm:$0xff]  }
  0xbe   : > { %2776 = vmatprep.subr.bf16.mxu0 %v3165_v38  ;;  %3048 = vmatprep.subr.bf16.mxu1 %v3165_v38  ;;  %v3212_v17 = vld [vmem:[%s3840_s6 + $0x1bc] ss:$20 sps:$4 sm:$0xff]   ;;  %v895_v21 = vld [vmem:[%s3840_s6 + $0x1e0] sm:$0xff]  ;;  %v3215_v25 = vld [vmem:[%s3840_s6 + $0x1b8] ss:$20 sps:$4 sm:$0xff]  }
  0xbf   : > { %v3225_v18 = vld [vmem:[%s3842_s1 + $0xb0] sm:$0xff]   ;;  %v3227_v20 = vld [vmem:[%s3842_s1 + $0xf8] sm:$0xff]   ;;  %v2594_v27 = vcombine.high %v895_v21, %v895_v21  ;;  %v2593_v29 = vcombine.low %v895_v21, %v895_v21 }
  0xc0   : > { %v3226_v19 = vld [vmem:[%s3842_s1 + $0x130] sm:$0xff]   ;;  %v3228_v22 = vld [vmem:[%s3842_s1 + $0xb8] sm:$0xff]  }
  0xc1   : > { %2777 = vmatpush3.bf16.msra.mxu0 %v3166_v41  ;;  %3056 = vmatpush3.bf16.msra.mxu1 %v3166_v41  ;;  %v3235_v23 = vld [vmem:[%s3842_s1 + $0x138] sm:$0xff]   ;;  %v3223_v28 = vld [vmem:[%s3840_s6 + $0xc8] ss:$20 sps:$4 sm:$0xff]  }
  0xc2   : > { %2778 = vmatprep.subr.bf16.mxu0 %v3167_v42  ;;  %3049 = vmatprep.subr.bf16.mxu1 %v3167_v42  ;;  %v3214_v24 = vld [vmem:[%s3840_s6 + $0xa0] ss:$20 sps:$4 sm:$0xff]   ;;  %v3231_v32 = vld [vmem:[%s3840_s6 + $0x8] ss:$20 sps:$4 sm:$0xff]   ;;  %v3234_v33 = vld [vmem:[%s3840_s6 + $0xf0] ss:$20 sps:$4 sm:$0xff]  }
  0xc3   : > { %v3219_v26 = vld [vmem:[%s3840_s6 + $0xcc] ss:$20 sps:$4 sm:$0xff]   ;;  %v3229_v30 = vld [vmem:[%s3840_s6 + $0xf4] ss:$20 sps:$4 sm:$0xff]   ;;  %v3238_v35 = vld [vmem:[%s3840_s6 + $0x30] ss:$20 sps:$4 sm:$0xff]  }
  0xc4   : > { %v3233_v31 = vld [vmem:[%s3840_s6 + $0xc] ss:$20 sps:$4 sm:$0xff]   ;;  %v3236_v34 = vld [vmem:[%s3840_s6 + $0x34] ss:$20 sps:$4 sm:$0xff]   ;;  %v3239_v36 = vld [vmem:[%s3840_s6 + $0x10] ss:$20 sps:$4 sm:$0xff]  }
  0xc5   : > { %2779 = vmatpush3.bf16.msra.mxu0 %v3168_v43  ;;  %3057 = vmatpush3.bf16.msra.mxu1 %v3168_v43  ;;  %v3240_v37 = vld [vmem:[%s3840_s6 + $0x5c] ss:$20 sps:$4 sm:$0xff]   ;;  %v3242_v38 = vld [vmem:[%s3840_s6 + $0x58] ss:$20 sps:$4 sm:$0xff]   ;;  %v3246_v41 = vld [vmem:[%s3840_s6 + $0x80] ss:$20 sps:$4 sm:$0xff]  }
  0xc6   : > { %2780 = vmatprep.subr.bf16.mxu0 %v3169_v44  ;;  %3050 = vmatprep.subr.bf16.mxu1 %v3169_v44  ;;  %v3243_v39 = vld [vmem:[%s3840_s6 + $0x38] ss:$20 sps:$4 sm:$0xff]   ;;  %v3247_v42 = vld [vmem:[%s3840_s6 + $0x60] ss:$20 sps:$4 sm:$0xff]   ;;  %v3250_v44 = vld [vmem:[%s3840_s6 + $0xa8] ss:$20 sps:$4 sm:$0xff]  }
  0xc7   : > { %v3244_v40 = vld [vmem:[%s3840_s6 + $0x84] ss:$20 sps:$4 sm:$0xff]   ;;  %v3248_v43 = vld [vmem:[%s3840_s6 + $0xac] ss:$20 sps:$4 sm:$0xff]  }
  0xc9   : > { %2781 = vmatpush3.bf16.msra.mxu0 %v3170_v45  ;;  %3058 = vmatpush3.bf16.msra.mxu1 %v3170_v45  ;;  %v3251_v45 = vld [vmem:[%s3840_s6 + $0x88] ss:$20 sps:$4 sm:$0xff]  }
  0xca   : > { %2975 = vmatprep.subr.bf16.mxu0 %v3373_v52  ;;  %2860 = vmatprep.subr.bf16.mxu1 %v3178_v46  ;;  %v3252_v46 = vld [vmem:[%s3840_s6 + $0xd4] ss:$20 sps:$4 sm:$0xff]  }
  0xcc   : > { %1581 = vmatmul.mubr.bf16.vlgmr.msra.gmra.mrb[0].mxu0 %v3171_v47  ;;  %1637 = vmatmul.mubr.bf16.vlgmr.msra.gmra.mrb[0].mxu1 %v3174_v48  ;;  %v3254_v47 = vld [vmem:[%s3840_s6 + $0xd0] ss:$20 sps:$4 sm:$0xff]  }
  0xcd   : > { %2976 = vmatpush3.bf16.msra.mxu0 %v3177_v49  ;;  %2861 = vmatpush3.bf16.msra.mxu1 %v3179_v50  ;;  %v3255_v48 = vld [vmem:[%s3840_s6 + $0xb0] ss:$20 sps:$4 sm:$0xff]   ;;  %v3258_v50 = vld [vmem:[%s3840_s6 + $0xf8] ss:$20 sps:$4 sm:$0xff]  }
  0xce   : > { %1588 = vmatprep.mubr.bf16.mxu0 %v3180_v51  ;;  %1644 = vmatprep.mubr.bf16.mxu1 %v3182_v53  ;;  %v3256_v49 = vld [vmem:[%s3840_s6 + $0xfc] ss:$20 sps:$4 sm:$0xff]   ;;  %v3259_v51 = vld [vmem:[%s3840_s6 + $0xd8] ss:$20 sps:$4 sm:$0xff]  }
  0xcf   : > { %2977 = vmatprep.subr.bf16.mxu0 %v3373_v52  ;;  %2862 = vmatprep.subr.bf16.mxu1 %v3187_v54  ;;  %v3260_v53 = vld [vmem:[%s3840_s6 + $0x124] ss:$20 sps:$4 sm:$0xff]   ;;  %v3262_v54 = vld [vmem:[%s3840_s6 + $0x120] ss:$20 sps:$4 sm:$0xff]  }
  0xd1   : > { %2978 = vmatpush3.bf16.msra.mxu0 %v3186_v55  ;;  %2863 = vmatpush3.bf16.msra.mxu1 %v3188_v56  ;;  %v3263_v55 = vld [vmem:[%s3840_s6 + $0x100] ss:$20 sps:$4 sm:$0xff]  }
  0xd2   : > { %2979 = vmatprep.subr.bf16.mxu0 %v3373_v52  ;;  %2864 = vmatprep.subr.bf16.mxu1 %v3193_v58  ;;  %v3264_v56 = vld [vmem:[%s3840_s6 + $0x14c] ss:$20 sps:$4 sm:$0xff]   ;;  %v3267_v58 = vld [vmem:[%s3840_s6 + $0x128] ss:$20 sps:$4 sm:$0xff]  }
  0xd4   : > { %1589 = vmatmul.mubr.bf16.gmra.mrb[4].mxu0 %v3184_v57  ;;  %1645 = vmatmul.mubr.bf16.gmra.mrb[4].mxu1 %v3185_v59  ;;  %v3266_v57 = vld [vmem:[%s3840_s6 + $0x148] ss:$20 sps:$4 sm:$0xff]  }
  0xd5   : > { %1596 = vmatprep.mubr.bf16.mxu0 %v3189_v60  ;;  %1652 = vmatprep.mubr.bf16.mxu1 %v3191_v61  ;;  %v3268_v59 = vld [vmem:[%s3840_s6 + $0x174] ss:$20 sps:$4 sm:$0xff]   ;;  %v3270_v60 = vld [vmem:[%s3840_s6 + $0x170] ss:$20 sps:$4 sm:$0xff]  }
  0xd6   : > { %2980 = vmatpush3.bf16.msra.mxu0 %v3194_v62  ;;  %2865 = vmatpush3.bf16.msra.mxu1 %v3197_v63  ;;  %v3271_v61 = vld [vmem:[%s3840_s6 + $0x150] ss:$20 sps:$4 sm:$0xff]   ;;  %v3274_v63 = vld [vmem:[%s3840_s6 + $0x198] ss:$20 sps:$4 sm:$0xff]  }
  0xd7   : > { %2866 = vmatprep.subr.bf16.mxu1 %v3198_v0  ;;  %2981 = vmatprep.subr.bf16.mxu0 %v3373_v52  ;;  %v3272_v62 = vld [vmem:[%s3840_s6 + $0x19c] ss:$20 sps:$4 sm:$0xff]   ;;  %v3275_v0 = vld [vmem:[%s3840_s6 + $0x178] ss:$20 sps:$4 sm:$0xff]  }
  0xda   : > { %2867 = vmatpush3.bf16.msra.mxu1 %v3199_v1  ;;  %2982 = vmatpush3.bf16.msra.mxu0 %v3200_v4  ;;  %v3276_v1 = vld [vmem:[%s3840_s6 + $0x1c4] ss:$20 sps:$4 sm:$0xff]   ;;  %v3279_v4 = vld [vmem:[%s3840_s6 + $0x1a0] ss:$20 sps:$4 sm:$0xff]  }
  0xdb   : > { %2868 = vmatprep.subr.bf16.mxu1 %v3207_v5  ;;  %2983 = vmatprep.subr.bf16.mxu0 %v3373_v52 }
  0xdc   : > { %1597 = vmatmul.mubr.bf16.gmra.mrb[8].mxu0 %v3195_v2  ;;  %1653 = vmatmul.mubr.bf16.gmra.mrb[8].mxu1 %v3196_v3  ;;  %v896_v2 = vld [vmem:[%s3840_s6 + $0x1e8] sm:$0xff]  ;;  %v3278_v3 = vld [vmem:[%s3840_s6 + $0x1c0] ss:$20 sps:$4 sm:$0xff]  }
  0xdd   : > { %1604 = vmatprep.mubr.bf16.mxu0 %v3201_v6  ;;  %1660 = vmatprep.mubr.bf16.mxu1 %v3203_v7  ;;  %v2596_v5 = vcombine.high %v896_v2, %v896_v2  ;;  %v2595_v6 = vcombine.low %v896_v2, %v896_v2  ;;  %v3282_v7 = vld [vmem:[%s3840_s6 + $0x1c8] ss:$20 sps:$4 sm:$0xff]  }
  0xde   : > { %2869 = vmatpush3.bf16.msra.mxu1 %v3208_v8  ;;  %2984 = vmatpush3.bf16.msra.mxu0 %v3209_v9  ;;  %v3283_v8 = vld [vmem:[%s3840_s6 + $0x1f0] ss:$0 sps:$4 sm:$0xff]  }
  0xdf   : > { %2870 = vmatprep.subr.bf16.mxu1 %v3216_v10  ;;  %2985 = vmatprep.subr.bf16.mxu0 %v3373_v52 }
  0xe2   : > { %2871 = vmatpush3.bf16.msra.mxu1 %v3217_v11  ;;  %2986 = vmatpush3.bf16.msra.mxu0 %v3218_v14 }
  0xe3   : > { %2872 = vmatprep.subr.bf16.mxu1 %v3222_v15  ;;  %2987 = vmatprep.subr.bf16.mxu0 %v3373_v52 }
  0xe4   : > { %1605 = vmatmul.mubr.bf16.gmra.mrb[12].mxu0 %v3205_v12  ;;  %1661 = vmatmul.mubr.bf16.gmra.mrb[12].mxu1 %v3206_v13 }
  0xe5   : > { %1612 = vmatprep.mubr.bf16.mxu0 %v3210_v16  ;;  %1668 = vmatprep.mubr.bf16.mxu1 %v3212_v17 }
  0xe6   : > { %2873 = vmatpush3.bf16.msra.mxu1 %v3225_v18  ;;  %2988 = vmatpush3.bf16.msra.mxu0 %v3226_v19 }
  0xe7   : > { %2874 = vmatprep.subr.bf16.mxu1 %v3227_v20  ;;  %2989 = vmatprep.subr.bf16.mxu0 %v3373_v52 }
  0xea   : > { %2875 = vmatpush3.bf16.msra.mxu1 %v3228_v22  ;;  %2990 = vmatpush3.bf16.msra.mxu0 %v3235_v23 }
  0xec   : > { %1613 = vmatmul.mubr.bf16.gmra.mrb[16].mxu0 %v3214_v24  ;;  %1669 = vmatmul.mubr.bf16.gmra.mrb[16].mxu1 %v3215_v25 }
  0xed   : > { %1620 = vmatprep.mubr.bf16.mxu0 %v3219_v26  ;;  %1676 = vmatprep.mubr.bf16.mxu1 %v2594_v27 }
  0xf4   : > { %1621 = vmatmul.mubr.bf16.gmra.mrb[20].mxu0 %v3223_v28  ;;  %1677 = vmatmul.mubr.bf16.gmra.mrb[20].mxu1 %v2593_v29 }
  0xf5   : > { %1628 = vmatprep.mubr.bf16.mxu0 %v3229_v30  ;;  %1716 = vmatprep.mubr.bf16.mxu1 %v3233_v31 }
  0xfc   : > { %1629 = vmatmul.mubr.bf16.gmra.mrb[24].mxu0 %v3234_v33  ;;  %1717 = vmatmul.mubr.bf16.vlgmr.msra.gmra.mrb[24].mxu1 %v3231_v32 }
  0xfd   : > { %1724 = vmatprep.mubr.bf16.mxu1 %v3236_v34  ;;  %2991 = vmatprep.mubr.msk.bf16.mxu0 %vm3374_vm0, %v3373_v52 }
 0x104   : > { %1725 = vmatmul.mubr.bf16.gmra.mrb[28].mxu1 %v3238_v35  ;;  %2992 = vmatmul.mubr.bf16.vlgmr.msra.gmra.mrb[28].mxu0 %v3239_v36 }
 0x105   : > { %1732 = vmatprep.mubr.bf16.mxu1 %v3240_v37  ;;  %2995 = vmatprep.mubr.msk.bf16.mxu0 %vm3374_vm0, %v3373_v52 }
 0x10c   : > { %1733 = vmatmul.mubr.bf16.gmra.mrb[32].mxu1 %v3242_v38  ;;  %2996 = vmatmul.mubr.bf16.gmra.mrb[32].mxu0 %v3243_v39 }
 0x10d   : > { %1740 = vmatprep.mubr.bf16.mxu1 %v3244_v40  ;;  %2999 = vmatprep.mubr.msk.bf16.mxu0 %vm3374_vm0, %v3373_v52 }
 0x114   : > { %1741 = vmatmul.mubr.bf16.gmra.mrb[36].mxu1 %v3246_v41  ;;  %3000 = vmatmul.mubr.bf16.gmra.mrb[36].mxu0 %v3247_v42 }
 0x115   : > { %1748 = vmatprep.mubr.bf16.mxu1 %v3248_v43  ;;  %3003 = vmatprep.mubr.msk.bf16.mxu0 %vm3374_vm0, %v3373_v52 }
 0x11c   : > { %1749 = vmatmul.mubr.bf16.gmra.mrb[40].mxu1 %v3250_v44  ;;  %3004 = vmatmul.mubr.bf16.gmra.mrb[40].mxu0 %v3251_v45 }
 0x11d   : > { %1756 = vmatprep.mubr.bf16.mxu1 %v3252_v46  ;;  %3007 = vmatprep.mubr.msk.bf16.mxu0 %vm3374_vm0, %v3373_v52 }
 0x124   : > { %1757 = vmatmul.mubr.bf16.gmra.mrb[44].mxu1 %v3254_v47  ;;  %3008 = vmatmul.mubr.bf16.gmra.mrb[44].mxu0 %v3255_v48 }
 0x125   : > { %1764 = vmatprep.mubr.bf16.mxu1 %v3256_v49  ;;  %3011 = vmatprep.mubr.msk.bf16.mxu0 %vm3374_vm0, %v3373_v52 }
 0x12c   : > { %1765 = vmatmul.mubr.bf16.gmra.mrb[48].mxu1 %v3258_v50  ;;  %3012 = vmatmul.mubr.bf16.gmra.mrb[48].mxu0 %v3259_v51 }
 0x12d   : > { %1772 = vmatprep.mubr.bf16.mxu1 %v3260_v53  ;;  %3015 = vmatprep.mubr.msk.bf16.mxu0 %vm3374_vm0, %v3373_v52 }
 0x134   : > { %1773 = vmatmul.mubr.bf16.gmra.mrb[52].mxu1 %v3262_v54  ;;  %3016 = vmatmul.mubr.bf16.gmra.mrb[52].mxu0 %v3263_v55 }
 0x135   : > { %1780 = vmatprep.mubr.bf16.mxu1 %v3264_v56  ;;  %3019 = vmatprep.mubr.msk.bf16.mxu0 %vm3374_vm0, %v3373_v52 }
 0x13c   : > { %1781 = vmatmul.mubr.bf16.gmra.mrb[56].mxu1 %v3266_v57  ;;  %3020 = vmatmul.mubr.bf16.gmra.mrb[56].mxu0 %v3267_v58 }
 0x13d   : > { %1788 = vmatprep.mubr.bf16.mxu1 %v3268_v59  ;;  %3023 = vmatprep.mubr.msk.bf16.mxu0 %vm3374_vm0, %v3373_v52 }
 0x144   : > { %1789 = vmatmul.mubr.bf16.gmra.mrb[60].mxu1 %v3270_v60  ;;  %3024 = vmatmul.mubr.bf16.gmra.mrb[60].mxu0 %v3271_v61 }
 0x145   : > { %1796 = vmatprep.mubr.bf16.mxu1 %v3272_v62  ;;  %3027 = vmatprep.mubr.msk.bf16.mxu0 %vm3374_vm0, %v3373_v52 }
 0x14c   : > { %1797 = vmatmul.mubr.bf16.gmra.mrb[64].mxu1 %v3274_v63  ;;  %3028 = vmatmul.mubr.bf16.gmra.mrb[64].mxu0 %v3275_v0 }
 0x14d   : > { %1804 = vmatprep.mubr.bf16.mxu1 %v3276_v1  ;;  %3031 = vmatprep.mubr.msk.bf16.mxu0 %vm3374_vm0, %v3373_v52 }
 0x154   : > { %1805 = vmatmul.mubr.bf16.gmra.mrb[68].mxu1 %v3278_v3  ;;  %3032 = vmatmul.mubr.bf16.gmra.mrb[68].mxu0 %v3279_v4 }
 0x155   : > { %1812 = vmatprep.mubr.bf16.mxu1 %v2596_v5  ;;  %3035 = vmatprep.mubr.msk.bf16.mxu0 %vm3374_vm0, %v3373_v52 }
 0x15c   : > { %1813 = vmatmul.mubr.bf16.gmra.mrb[72].mxu1 %v2595_v6  ;;  %3036 = vmatmul.mubr.bf16.gmra.mrb[72].mxu0 %v3282_v7 }
 0x15d   : > { %3039 = vmatprep.mubr.msk.bf16.mxu0 %vm3374_vm0, %v3373_v52 }
 0x164   : > { %3040 = vmatmul.mubr.bf16.gmra.mrb[76].mxu0 %v3283_v8 }
 0x19f   : > { %v2782_v9 = vpop.f32.mrb[0].mxu0  ;;  %v2824_v10 = vpop.f32.mrb[0].mxu1 }
 0x1a0   : > { %v2783_v11 = vpop.f32.mrb[1].mxu0  ;;  %v2825_v12 = vpop.f32.mrb[1].mxu1 }
 0x1a1   : > { %v3984_v13 = vadd.f32 %v2783_v11, %v2782_v9  ;;  %v2785_v14 = vpop.f32.mrb[2].mxu0  ;;  %v3986_v15 = vadd.f32 %v2825_v12, %v2824_v10  ;;  %v2827_v16 = vpop.f32.mrb[2].mxu1 }
 0x1a2   : > { %v2786_v17 = vpop.f32.mrb[3].mxu0  ;;  %v2828_v18 = vpop.f32.mrb[3].mxu1 }
 0x1a3   : > { %v3988_v19 = vadd.f32 %v2786_v17, %v2785_v14  ;;  %v3990_v20 = vadd.f32 %v2828_v18, %v2827_v16 }
 0x1a7   : > { %v2788_v21 = vpop.f32.mrb[4].mxu0  ;;  %v2830_v52 = vpop.f32.mrb[4].mxu1 }
 0x1a8   : > { %v2789_v22 = vpop.f32.mrb[5].mxu0  ;;  %v2831_v23 = vpop.f32.mrb[5].mxu1 }
 0x1a9   : > { %v3992_v24 = vadd.f32 %v2789_v22, %v2788_v21  ;;  %v2791_v25 = vpop.f32.mrb[6].mxu0  ;;  %v3994_v26 = vadd.f32 %v2831_v23, %v2830_v52  ;;  %v2833_v27 = vpop.f32.mrb[6].mxu1 }
 0x1aa   : > { %v2792_v28 = vpop.f32.mrb[7].mxu0  ;;  %v2834_v29 = vpop.f32.mrb[7].mxu1 }
 0x1ab   : > { %v3996_v30 = vadd.f32 %v2792_v28, %v2791_v25  ;;  %v3998_v31 = vadd.f32 %v2834_v29, %v2833_v27 }
 0x1af   : > { %v2794_v32 = vpop.f32.mrb[8].mxu0  ;;  %v2836_v33 = vpop.f32.mrb[8].mxu1 }
 0x1b0   : > { %v2795_v34 = vpop.f32.mrb[9].mxu0  ;;  %v2837_v35 = vpop.f32.mrb[9].mxu1 }
 0x1b1   : > { %v4000_v36 = vadd.f32 %v2795_v34, %v2794_v32  ;;  %v2797_v37 = vpop.f32.mrb[10].mxu0  ;;  %v4002_v38 = vadd.f32 %v2837_v35, %v2836_v33  ;;  %v2839_v39 = vpop.f32.mrb[10].mxu1 }
 0x1b2   : > { %v2798_v40 = vpop.f32.mrb[11].mxu0  ;;  %v2840_v41 = vpop.f32.mrb[11].mxu1 }
 0x1b3   : > { %v4004_v42 = vadd.f32 %v2798_v40, %v2797_v37  ;;  %v4006_v43 = vadd.f32 %v2840_v41, %v2839_v39  ;;  %v798_v40 = vld [vmem:[#allocation2] sm:$0xff] }
 0x1b7   : > { %v2800_v44 = vpop.f32.mrb[12].mxu0  ;;  %v2842_v45 = vpop.f32.mrb[12].mxu1 }
 0x1b8   : > { %v2801_v46 = vpop.f32.mrb[13].mxu0  ;;  %v2843_v47 = vpop.f32.mrb[13].mxu1 }
 0x1b9   : > { %v4008_v48 = vadd.f32 %v2801_v46, %v2800_v44  ;;  %v2803_v49 = vpop.f32.mrb[14].mxu0  ;;  %v4010_v50 = vadd.f32 %v2843_v47, %v2842_v45  ;;  %v2845_v51 = vpop.f32.mrb[14].mxu1 }
 0x1ba   : > { %v2804_v53 = vpop.f32.mrb[15].mxu0  ;;  %v2846_v54 = vpop.f32.mrb[15].mxu1 }
 0x1bb   : > { %v4012_v55 = vadd.f32 %v2804_v53, %v2803_v49  ;;  %v4014_v56 = vadd.f32 %v2846_v54, %v2845_v51  ;;  %v799_v51 = vld [vmem:[#allocation2 + $0x8] sm:$0xff] }
 0x1bf   : > { %v2806_v57 = vpop.f32.mrb[16].mxu0  ;;  %v2848_v58 = vpop.f32.mrb[16].mxu1 }
 0x1c0   : > { %v2807_v59 = vpop.f32.mrb[17].mxu0  ;;  %v2849_v60 = vpop.f32.mrb[17].mxu1 }
 0x1c1   : > { %v4016_v61 = vadd.f32 %v2807_v59, %v2806_v57  ;;  %v2809_v62 = vpop.f32.mrb[18].mxu0  ;;  %v4018_v63 = vadd.f32 %v2849_v60, %v2848_v58  ;;  %v2851_v0 = vpop.f32.mrb[18].mxu1 }
 0x1c2   : > { %v2810_v1 = vpop.f32.mrb[19].mxu0  ;;  %v2852_v2 = vpop.f32.mrb[19].mxu1 }
 0x1c3   : > { %v4020_v3 = vadd.f32 %v2810_v1, %v2809_v62  ;;  %v4022_v4 = vadd.f32 %v2852_v2, %v2851_v0  ;;  %v800_v1 = vld [vmem:[#allocation2 + $0x10] sm:$0xff] }
 0x1c7   : > { %v2812_v5 = vpop.f32.mrb[20].mxu0  ;;  %v2854_v6 = vpop.f32.mrb[20].mxu1 }
 0x1c8   : > { %v2813_v7 = vpop.f32.mrb[21].mxu0  ;;  %v2855_v8 = vpop.f32.mrb[21].mxu1 }
 0x1c9   : > { %v4024_v9 = vadd.f32 %v2813_v7, %v2812_v5  ;;  %v2815_v10 = vpop.f32.mrb[22].mxu0  ;;  %v4026_v11 = vadd.f32 %v2855_v8, %v2854_v6  ;;  %v2857_v12 = vpop.f32.mrb[22].mxu1 }
 0x1ca   : > { %v2816_v14 = vpop.f32.mrb[23].mxu0  ;;  %v2858_v16 = vpop.f32.mrb[23].mxu1  ;;  %v801_v12 = vld [vmem:[#allocation2 + $0x18] sm:$0xff] }
 0x1cb   : > { %v4028_v17 = vadd.f32 %v2816_v14, %v2815_v10 }
 0x1cf   : > { %v2818_v18 = vpop.f32.mrb[24].mxu0  ;;  %v2876_v21 = vpop.f32.mrb[24].mxu1 }
 0x1d0   : > { %v2819_v52 = vpop.f32.mrb[25].mxu0  ;;  %v2877_v22 = vpop.f32.mrb[25].mxu1 }
 0x1d1   : > { %v4030_v23 = vadd.f32 %v2819_v52, %v2818_v18  ;;  %v2878_v25 = vadd.f32 %v2877_v22, %v2876_v21  ;;  %v2821_v27 = vpop.f32.mrb[26].mxu0  ;;  %v2879_v28 = vpop.f32.mrb[26].mxu1 }
 0x1d2   : > { %v2822_v29 = vpop.f32.mrb[27].mxu0  ;;  %v2880_v32 = vpop.f32.mrb[27].mxu1 }
 0x1d3   : > { %v4032_v33 = vadd.f32 %v2822_v29, %v2821_v27  ;;  %v2881_v34 = vadd.f32 %v2880_v32, %v2879_v28  ;;  %v1719_v35 = vadd.f32 %v2878_v25, %v3984_v13  ;;  %v802_v28 = vld [vmem:[#allocation2 + $0x20] sm:$0xff] }
 0x1d5   : > { %v1722_v37 = vadd.f32 %v2881_v34, %v3988_v19 }
 0x1d7   : > { %v2882_v39 = vpop.f32.mrb[28].mxu1  ;;  %v1854_v41 = vpop.f32.mrb[28].mxu0 }
 0x1d8   : > { %v1855_v44 = vadd.f32 %v1854_v41, %v1719_v35  ;;  %v2883_v45 = vpop.f32.mrb[29].mxu1  ;;  %v2993_v46 = vpop.f32.mrb[29].mxu0 }
 0x1d9   : > { %v2884_v47 = vadd.f32 %v2883_v45, %v2882_v39  ;;  %v2885_v49 = vpop.f32.mrb[30].mxu1  ;;  %v1857_v53 = vpop.f32.mrb[30].mxu0 }
 0x1da   : > { %v1956_v54 = vadd.f32 %v1855_v44, %v798_v40  ;;  %v1858_v57 = vadd.f32 %v1857_v53, %v1722_v37  ;;  %v2886_v58 = vpop.f32.mrb[31].mxu1  ;;  %v2994_v59 = vpop.f32.mrb[31].mxu0  ;;  %v803_v40 = vld [vmem:[#allocation2 + $0x28] sm:$0xff] }
 0x1db   : > { %v2887_v60 = vadd.f32 %v2886_v58, %v2885_v49  ;;  %v1727_v62 = vadd.f32 %v2884_v47, %v3992_v24 }
 0x1dc   : > { %1981 = vst [vmem:[#allocation2] sm:$0xff] %v1956_v54  ;;  %v1957_v13 = vadd.f32 %v1858_v57, %v799_v51  ;;  %v804_v54 = vld [vmem:[#allocation2 + $0x30] sm:$0xff] }
 0x1dd   : > { %v1730_v19 = vadd.f32 %v2887_v60, %v3996_v30 }
 0x1de   : > { %1982 = vst [vmem:[#allocation2 + $0x8] sm:$0xff] %v1957_v13 }
 0x1df   : > { %v2888_v0 = vpop.f32.mrb[32].mxu1  ;;  %v1862_v2 = vpop.f32.mrb[32].mxu0 }
 0x1e0   : > { %v1863_v5 = vadd.f32 %v1862_v2, %v1727_v62  ;;  %v2889_v6 = vpop.f32.mrb[33].mxu1  ;;  %v2997_v7 = vpop.f32.mrb[33].mxu0 }
 0x1e1   : > { %v2890_v8 = vadd.f32 %v2889_v6, %v2888_v0  ;;  %v2891_v10 = vpop.f32.mrb[34].mxu1  ;;  %v1865_v14 = vpop.f32.mrb[34].mxu0 }
 0x1e2   : > { %v1958_v16 = vadd.f32 %v1863_v5, %v800_v1  ;;  %v1866_v18 = vadd.f32 %v1865_v14, %v1730_v19  ;;  %v2892_v21 = vpop.f32.mrb[35].mxu1  ;;  %v2998_v52 = vpop.f32.mrb[35].mxu0  ;;  %v805_v19 = vld [vmem:[#allocation2 + $0x38] sm:$0xff] }
 0x1e3   : > { %v2893_v24 = vadd.f32 %v2892_v21, %v2891_v10  ;;  %v1735_v22 = vadd.f32 %v2890_v8, %v4000_v36 }
 0x1e4   : > { %1983 = vst [vmem:[#allocation2 + $0x10] sm:$0xff] %v1958_v16  ;;  %v1959_v30 = vadd.f32 %v1866_v18, %v801_v12  ;;  %v806_v12 = vld [vmem:[#allocation2 + $0x40] sm:$0xff] }
 0x1e5   : > { %v1738_v25 = vadd.f32 %v2893_v24, %v4004_v42 }
 0x1e6   : > { %1984 = vst [vmem:[#allocation2 + $0x18] sm:$0xff] %v1959_v30 }
 0x1e7   : > { %v2894_v27 = vpop.f32.mrb[36].mxu1  ;;  %v1870_v29 = vpop.f32.mrb[36].mxu0 }
 0x1e8   : > { %v1871_v32 = vadd.f32 %v1870_v29, %v1735_v22  ;;  %v2895_v34 = vpop.f32.mrb[37].mxu1  ;;  %v3001_v35 = vpop.f32.mrb[37].mxu0  ;;  %v807_v22 = vld [vmem:[#allocation2 + $0x48] sm:$0xff] }
 0x1e9   : > { %v2896_v37 = vadd.f32 %v2895_v34, %v2894_v27  ;;  %v2897_v39 = vpop.f32.mrb[38].mxu1  ;;  %v1873_v41 = vpop.f32.mrb[38].mxu0 }
 0x1ea   : > { %v1960_v44 = vadd.f32 %v1871_v32, %v802_v28  ;;  %v1874_v45 = vadd.f32 %v1873_v41, %v1738_v25  ;;  %v2898_v46 = vpop.f32.mrb[39].mxu1  ;;  %v3002_v47 = vpop.f32.mrb[39].mxu0 }
 0x1eb   : > { %v2899_v36 = vadd.f32 %v2898_v46, %v2897_v39  ;;  %v1743_v49 = vadd.f32 %v2896_v37, %v4008_v48  ;;  %v808_v37 = vld [vmem:[#allocation2 + $0x50] sm:$0xff]  ;;  %v809_v47 = vld [vmem:[#allocation2 + $0x58] sm:$0xff] }
 0x1ec   : > { %1985 = vst [vmem:[#allocation2 + $0x20] sm:$0xff] %v1960_v44  ;;  %v1961_v42 = vadd.f32 %v1874_v45, %v803_v40 }
 0x1ed   : > { %v1746_v51 = vadd.f32 %v2899_v36, %v4012_v55 }
 0x1ee   : > { %1986 = vst [vmem:[#allocation2 + $0x28] sm:$0xff] %v1961_v42 }
 0x1ef   : > { %v2900_v53 = vpop.f32.mrb[40].mxu1  ;;  %v1878_v57 = vpop.f32.mrb[40].mxu0 }
 0x1f0   : > { %v1879_v58 = vadd.f32 %v1878_v57, %v1743_v49  ;;  %v2901_v59 = vpop.f32.mrb[41].mxu1  ;;  %v3005_v60 = vpop.f32.mrb[41].mxu0 }
 0x1f1   : > { %v2902_v62 = vadd.f32 %v2901_v59, %v2900_v53  ;;  %v2903_v13 = vpop.f32.mrb[42].mxu1  ;;  %v1881_v0 = vpop.f32.mrb[42].mxu0  ;;  %v810_v59 = vld [vmem:[#allocation2 + $0x60] sm:$0xff] }
 0x1f2   : > { %v1962_v1 = vadd.f32 %v1879_v58, %v804_v54  ;;  %v1882_v2 = vadd.f32 %v1881_v0, %v1746_v51  ;;  %v2904_v5 = vpop.f32.mrb[43].mxu1  ;;  %v3006_v6 = vpop.f32.mrb[43].mxu0 }
 0x1f3   : > { %v2905_v48 = vadd.f32 %v2904_v5, %v2903_v13  ;;  %v1751_v7 = vadd.f32 %v2902_v62, %v4016_v61 }
 0x1f4   : > { %1987 = vst [vmem:[#allocation2 + $0x30] sm:$0xff] %v1962_v1  ;;  %v1963_v55 = vadd.f32 %v1882_v2, %v805_v19  ;;  %v811_v2 = vld [vmem:[#allocation2 + $0x68] sm:$0xff] }
 0x1f5   : > { %v1754_v8 = vadd.f32 %v2905_v48, %v4020_v3 }
 0x1f6   : > { %1988 = vst [vmem:[#allocation2 + $0x38] sm:$0xff] %v1963_v55 }
 0x1f7   : > { %v2906_v10 = vpop.f32.mrb[44].mxu1  ;;  %v1886_v14 = vpop.f32.mrb[44].mxu0 }
 0x1f8   : > { %v1887_v16 = vadd.f32 %v1886_v14, %v1751_v7  ;;  %v2907_v18 = vpop.f32.mrb[45].mxu1  ;;  %v3009_v21 = vpop.f32.mrb[45].mxu0  ;;  %v812_v14 = vld [vmem:[#allocation2 + $0x70] sm:$0xff] }
 0x1f9   : > { %v2908_v52 = vadd.f32 %v2907_v18, %v2906_v10  ;;  %v2909_v24 = vpop.f32.mrb[46].mxu1  ;;  %v1889_v30 = vpop.f32.mrb[46].mxu0 }
 0x1fa   : > { %v1964_v25 = vadd.f32 %v1887_v16, %v806_v12  ;;  %v1890_v27 = vadd.f32 %v1889_v30, %v1754_v8  ;;  %v2910_v28 = vpop.f32.mrb[47].mxu1  ;;  %v3010_v29 = vpop.f32.mrb[47].mxu0  ;;  %v813_v30 = vld [vmem:[#allocation2 + $0x78] sm:$0xff] }
 0x1fb   : > { %v2911_v61 = vadd.f32 %v2910_v28, %v2909_v24  ;;  %v1759_v32 = vadd.f32 %v2908_v52, %v4024_v9 }
 0x1fc   : > { %1989 = vst [vmem:[#allocation2 + $0x40] sm:$0xff] %v1964_v25  ;;  %v1965_v3 = vadd.f32 %v1890_v27, %v807_v22 }
 0x1fd   : > { %v1762_v34 = vadd.f32 %v2911_v61, %v4028_v17 }
 0x1fe   : > { %1990 = vst [vmem:[#allocation2 + $0x48] sm:$0xff] %v1965_v3 }
 0x1ff   : > { %v2912_v35 = vpop.f32.mrb[48].mxu1  ;;  %v1894_v39 = vpop.f32.mrb[48].mxu0 }
 0x200   : > { %v1895_v40 = vadd.f32 %v1894_v39, %v1759_v32  ;;  %v2913_v41 = vpop.f32.mrb[49].mxu1  ;;  %v3013_v44 = vpop.f32.mrb[49].mxu0 }
 0x201   : > { %v2914_v45 = vadd.f32 %v2913_v41, %v2912_v35  ;;  %v2915_v46 = vpop.f32.mrb[50].mxu1  ;;  %v1897_v36 = vpop.f32.mrb[50].mxu0  ;;  %v814_v35 = vld [vmem:[#allocation2 + $0x80] sm:$0xff] }
 0x202   : > { %v1966_v49 = vadd.f32 %v1895_v40, %v808_v37  ;;  %v1898_v42 = vadd.f32 %v1897_v36, %v1762_v34  ;;  %v2916_v51 = vpop.f32.mrb[51].mxu1  ;;  %v3014_v53 = vpop.f32.mrb[51].mxu0 }
 0x203   : > { %v2917_v9 = vadd.f32 %v2916_v51, %v2915_v46  ;;  %v1767_v54 = vadd.f32 %v2914_v45, %v4030_v23  ;;  %v815_v46 = vld [vmem:[#allocation2 + $0x88] sm:$0xff] }
 0x204   : > { %1991 = vst [vmem:[#allocation2 + $0x50] sm:$0xff] %v1966_v49  ;;  %v1967_v17 = vadd.f32 %v1898_v42, %v809_v47 }
 0x205   : > { %v1770_v57 = vadd.f32 %v2917_v9, %v4032_v33 }
 0x206   : > { %1992 = vst [vmem:[#allocation2 + $0x58] sm:$0xff] %v1967_v17  ;;  %v816_v17 = vld [vmem:[#allocation2 + $0x90] sm:$0xff] }
 0x207   : > { %v2918_v58 = vpop.f32.mrb[52].mxu1  ;;  %v1902_v60 = vpop.f32.mrb[52].mxu0 }
 0x208   : > { %v1903_v62 = vadd.f32 %v1902_v60, %v1767_v54  ;;  %v2919_v13 = vpop.f32.mrb[53].mxu1  ;;  %v3017_v19 = vpop.f32.mrb[53].mxu0 }
 0x209   : > { %v2920_v0 = vadd.f32 %v2919_v13, %v2918_v58  ;;  %v2921_v1 = vpop.f32.mrb[54].mxu1  ;;  %v1905_v5 = vpop.f32.mrb[54].mxu0  ;;  %v817_v19 = vld [vmem:[#allocation2 + $0x98] sm:$0xff] }
 0x20a   : > { %v1968_v6 = vadd.f32 %v1903_v62, %v810_v59  ;;  %v1906_v48 = vadd.f32 %v1905_v5, %v1770_v57  ;;  %v2922_v7 = vpop.f32.mrb[55].mxu1  ;;  %v3018_v55 = vpop.f32.mrb[55].mxu0 }
 0x20b   : > { %v2923_v23 = vadd.f32 %v2922_v7, %v2921_v1  ;;  %v1775_v8 = vadd.f32 %v2920_v0, %v3986_v15 }
 0x20c   : > { %1993 = vst [vmem:[#allocation2 + $0x60] sm:$0xff] %v1968_v6  ;;  %v1969_v33 = vadd.f32 %v1906_v48, %v811_v2 }
 0x20d   : > { %v1778_v10 = vadd.f32 %v2923_v23, %v3990_v20  ;;  %v818_v23 = vld [vmem:[#allocation2 + $0xa0] sm:$0xff] }
 0x20e   : > { %1994 = vst [vmem:[#allocation2 + $0x68] sm:$0xff] %v1969_v33 }
 0x20f   : > { %v2924_v12 = vpop.f32.mrb[56].mxu1  ;;  %v1910_v16 = vpop.f32.mrb[56].mxu0 }
 0x210   : > { %v1911_v18 = vadd.f32 %v1910_v16, %v1775_v8  ;;  %v2925_v21 = vpop.f32.mrb[57].mxu1  ;;  %v3021_v52 = vpop.f32.mrb[57].mxu0 }
 0x211   : > { %v2926_v24 = vadd.f32 %v2925_v21, %v2924_v12  ;;  %v2927_v22 = vpop.f32.mrb[58].mxu1  ;;  %v1913_v25 = vpop.f32.mrb[58].mxu0 }
 0x212   : > { %v1970_v27 = vadd.f32 %v1911_v18, %v812_v14  ;;  %v1914_v28 = vadd.f32 %v1913_v25, %v1778_v10  ;;  %v2928_v29 = vpop.f32.mrb[59].mxu1  ;;  %v3022_v61 = vpop.f32.mrb[59].mxu0  ;;  %v819_v18 = vld [vmem:[#allocation2 + $0xa8] sm:$0xff] }
 0x213   : > { %v2929_v15 = vadd.f32 %v2928_v29, %v2927_v22  ;;  %v1783_v32 = vadd.f32 %v2926_v24, %v3994_v26  ;;  %v820_v29 = vld [vmem:[#allocation2 + $0xb0] sm:$0xff] }
 0x214   : > { %1995 = vst [vmem:[#allocation2 + $0x70] sm:$0xff] %v1970_v27  ;;  %v1971_v20 = vadd.f32 %v1914_v28, %v813_v30 }
 0x215   : > { %v1786_v3 = vadd.f32 %v2929_v15, %v3998_v31 }
 0x216   : > { %1996 = vst [vmem:[#allocation2 + $0x78] sm:$0xff] %v1971_v20 }
 0x217   : > { %v2930_v34 = vpop.f32.mrb[60].mxu1  ;;  %v1918_v37 = vpop.f32.mrb[60].mxu0 }
 0x218   : > { %v1919_v39 = vadd.f32 %v1918_v37, %v1783_v32  ;;  %v2931_v40 = vpop.f32.mrb[61].mxu1  ;;  %v3025_v41 = vpop.f32.mrb[61].mxu0 }
 0x219   : > { %v2932_v44 = vadd.f32 %v2931_v40, %v2930_v34  ;;  %v2933_v45 = vpop.f32.mrb[62].mxu1  ;;  %v1921_v47 = vpop.f32.mrb[62].mxu0  ;;  %v821_v34 = vld [vmem:[#allocation2 + $0xb8] sm:$0xff] }
 0x21a   : > { %v1972_v36 = vadd.f32 %v1919_v39, %v814_v35  ;;  %v1922_v49 = vadd.f32 %v1921_v47, %v1786_v3  ;;  %v2934_v42 = vpop.f32.mrb[63].mxu1  ;;  %v3026_v51 = vpop.f32.mrb[63].mxu0 }
 0x21b   : > { %v2935_v26 = vadd.f32 %v2934_v42, %v2933_v45  ;;  %v1791_v53 = vadd.f32 %v2932_v44, %v4002_v38 }
 0x21c   : > { %1997 = vst [vmem:[#allocation2 + $0x80] sm:$0xff] %v1972_v36  ;;  %v1973_v31 = vadd.f32 %v1922_v49, %v815_v46 }
 0x21d   : > { %v1794_v9 = vadd.f32 %v2935_v26, %v4006_v43  ;;  %v2010_v26 = vld [vmem:[#allocation2] sm:$0xff] (!%p2638_p5) }
 0x21e   : > { %1998 = vst [vmem:[#allocation2 + $0x88] sm:$0xff] %v1973_v31 }
 0x21f   : > { %v2936_v54 = vpop.f32.mrb[64].mxu1  ;;  %v1926_v57 = vpop.f32.mrb[64].mxu0 }
 0x220   : > { %v1927_v58 = vadd.f32 %v1926_v57, %v1791_v53  ;;  %v2937_v59 = vpop.f32.mrb[65].mxu1  ;;  %v3029_v60 = vpop.f32.mrb[65].mxu0  ;;  %v2011_v53 = vld [vmem:[#allocation2 + $0x8] sm:$0xff] (!%p2638_p5)  ;;  %v2014_v57 = vld [vmem:[#allocation2 + $0x20] sm:$0xff] (!%p2638_p5) }
 0x221   : > { %v2938_v62 = vadd.f32 %v2937_v59, %v2936_v54  ;;  %v2939_v13 = vpop.f32.mrb[66].mxu1  ;;  %v1929_v0 = vpop.f32.mrb[66].mxu0  ;;  %v2012_v54 = vld [vmem:[#allocation2 + $0x10] sm:$0xff] (!%p2638_p5)  ;;  %v2015_v60 = vld [vmem:[#allocation2 + $0x28] sm:$0xff] (!%p2638_p5) }
 0x222   : > { %v1974_v1 = vadd.f32 %v1927_v58, %v816_v17  ;;  %v1930_v2 = vadd.f32 %v1929_v0, %v1794_v9  ;;  %v2940_v5 = vpop.f32.mrb[67].mxu1  ;;  %v3030_v6 = vpop.f32.mrb[67].mxu0  ;;  %v2013_v17 = vld [vmem:[#allocation2 + $0x18] sm:$0xff] (!%p2638_p5) }
 0x223   : > { %v2941_v38 = vadd.f32 %v2940_v5, %v2939_v13  ;;  %v1799_v48 = vadd.f32 %v2938_v62, %v4010_v50  ;;  %v2016_v13 = vld [vmem:[#allocation2 + $0x30] sm:$0xff] (!%p2638_p5)  ;;  %v2018_v6 = vld [vmem:[#allocation2 + $0x40] sm:$0xff] (!%p2638_p5) }
 0x224   : > { %1999 = vst [vmem:[#allocation2 + $0x90] sm:$0xff] %v1974_v1  ;;  %v1975_v43 = vadd.f32 %v1930_v2, %v817_v19  ;;  %v2017_v19 = vld [vmem:[#allocation2 + $0x38] sm:$0xff] (!%p2638_p5) }
 0x225   : > { %v1802_v7 = vadd.f32 %v2941_v38, %v4014_v56  ;;  %v2019_v38 = vld [vmem:[#allocation2 + $0x48] sm:$0xff] (!%p2638_p5) }
 0x226   : > { %2000 = vst [vmem:[#allocation2 + $0x98] sm:$0xff] %v1975_v43 }
 0x227   : > { %v2942_v55 = vpop.f32.mrb[68].mxu1  ;;  %v1934_v8 = vpop.f32.mrb[68].mxu0 }
 0x228   : > { %v1935_v33 = vadd.f32 %v1934_v8, %v1799_v48  ;;  %v2943_v10 = vpop.f32.mrb[69].mxu1  ;;  %v3033_v12 = vpop.f32.mrb[69].mxu0  ;;  %v2020_v48 = vld [vmem:[#allocation2 + $0x50] sm:$0xff] (!%p2638_p5)  ;;  %v2021_v8 = vld [vmem:[#allocation2 + $0x58] sm:$0xff] (!%p2638_p5) }
 0x229   : > { %v2944_v14 = vadd.f32 %v2943_v10, %v2942_v55  ;;  %v2945_v16 = vpop.f32.mrb[70].mxu1  ;;  %v1937_v21 = vpop.f32.mrb[70].mxu0 }
 0x22a   : > { %v1976_v52 = vadd.f32 %v1935_v33, %v818_v23  ;;  %v1938_v24 = vadd.f32 %v1937_v21, %v1802_v7  ;;  %v2946_v22 = vpop.f32.mrb[71].mxu1  ;;  %v3034_v30 = vpop.f32.mrb[71].mxu0  ;;  %v2022_v33 = vld [vmem:[#allocation2 + $0x60] sm:$0xff] (!%p2638_p5) }
 0x22b   : > { %v2947_v50 = vadd.f32 %v2946_v22, %v2945_v16  ;;  %v1807_v25 = vadd.f32 %v2944_v14, %v4018_v63  ;;  %v2024_v30 = vld [vmem:[#allocation2 + $0x70] sm:$0xff] (!%p2638_p5) }
 0x22c   : > { %2001 = vst [vmem:[#allocation2 + $0xa0] sm:$0xff] %v1976_v52  ;;  %v1977_v56 = vadd.f32 %v1938_v24, %v819_v18  ;;  %v2023_v18 = vld [vmem:[#allocation2 + $0x68] sm:$0xff] (!%p2638_p5) }
 0x22d   : > { %v1810_v27 = vadd.f32 %v2947_v50, %v4022_v4  ;;  %v822_v4 = vld [vmem:[#allocation2 + $0xc0] sm:$0xff]  ;;  %v2025_v50 = vld [vmem:[#allocation2 + $0x78] sm:$0xff] (!%p2638_p5) }
 0x22e   : > { %2002 = vst [vmem:[#allocation2 + $0xa8] sm:$0xff] %v1977_v56 }
 0x22f   : > { %v2948_v28 = vpop.f32.mrb[72].mxu1  ;;  %v1942_v61 = vpop.f32.mrb[72].mxu0 }
 0x230   : > { %v1943_v15 = vadd.f32 %v1942_v61, %v1807_v25  ;;  %v2949_v32 = vpop.f32.mrb[73].mxu1  ;;  %v3037_v20 = vpop.f32.mrb[73].mxu0  ;;  %v2027_v61 = vld [vmem:[#allocation2 + $0x88] sm:$0xff] (!%p2638_p5) }
 0x231   : > { %v2950_v3 = vadd.f32 %v2949_v32, %v2948_v28  ;;  %v1945_v35 = vpop.f32.mrb[74].mxu0  ;;  %v2951_v37 = vpop.f32.mrb[74].mxu1 }
 0x232   : > { %v1978_v39 = vadd.f32 %v1943_v15, %v820_v29  ;;  %v1946_v40 = vadd.f32 %v1945_v35, %v1810_v27  ;;  %v3038_v41 = vpop.f32.mrb[75].mxu0  ;;  %v2952_v44 = vpop.f32.mrb[75].mxu1  ;;  %v2026_v29 = vld [vmem:[#allocation2 + $0x80] sm:$0xff] (!%p2638_p5) }
 0x233   : > { %v1815_v63 = vadd.f32 %v2950_v3, %v4026_v11  ;;  %v4065_v11 = vld [vmem:[%s766_s4] ss:$0 sm:$0xff] (!%p2638_p5)  ;;  %v2029_v41 = vld [vmem:[#allocation2 + $0x98] sm:$0xff] (!%p2638_p5) }
 0x234   : > { %2003 = vst [vmem:[#allocation2 + $0xb0] sm:$0xff] %v1978_v39  ;;  %v1979_v45 = vadd.f32 %v1946_v40, %v821_v34  ;;  %v2042_v31 = vadd.f32 (!%p2638_p5), %v4065_v11, %v2010_v26  ;;  %v2043_v9 = vadd.f32 (!%p2638_p5), %v4065_v11, %v2011_v53  ;;  %v2044_v58 = vadd.f32 (!%p2638_p5), %v4065_v11, %v2012_v54  ;;  %v2028_v34 = vld [vmem:[#allocation2 + $0x90] sm:$0xff] (!%p2638_p5) }
 0x235   : > { %v2045_v59 = vadd.f32 (!%p2638_p5), %v4065_v11, %v2013_v17  ;;  %v2046_v62 = vadd.f32 (!%p2638_p5), %v4065_v11, %v2014_v57  ;;  %v2047_v2 = vadd.f32 (!%p2638_p5), %v4065_v11, %v2015_v60  ;;  %v2048_v5 = vadd.f32 (!%p2638_p5), %v4065_v11, %v2016_v13 }
 0x236   : > { %2004 = vst [vmem:[#allocation2 + $0xb8] sm:$0xff] %v1979_v45  ;;  %2009 = sbr.rel (%p2638_p5) target bundleno = 587 (0x24b), region = 107  ;;  %v2067_v0 = vmax.f32 (!%p2638_p5), %v2042_v31, 0.0  ;;  %v2068_v1 = vmax.f32 (!%p2638_p5), %v2043_v9, 0.0  ;;  %v2069_v43 = vmax.f32 (!%p2638_p5), %v2044_v58, 0.0  ;;  %v2049_v23 = vadd.f32 (!%p2638_p5), %v4065_v11, %v2017_v19 }
 0x237   : > { %v1950_v46 = vpop.f32.mrb[76].mxu0  ;;  %v2070_v7 = vmax.f32 (!%p2638_p5), %v2045_v59, 0.0  ;;  %v2071_v55 = vmax.f32 (!%p2638_p5), %v2046_v62, 0.0  ;;  %v2072_v12 = vmax.f32 (!%p2638_p5), %v2047_v2, 0.0  ;;  %v2073_v14 = vmax.f32 (!%p2638_p5), %v2048_v5, 0.0 }
 0x238   : > { %v1951_v47 = vadd.f32 %v1950_v46, %v1815_v63  ;;  %v3041_v36 = vpop.f32.mrb[77].mxu0  ;;  %v2698_v10 = vpack.c.bf16 (!%p2638_p5), %v2068_v1, %v2067_v0  ;;  %v2050_v16 = vadd.f32 (!%p2638_p5), %v4065_v11, %v2018_v6  ;;  %v2074_v52 = vmax.f32 (!%p2638_p5), %v2049_v23, 0.0  ;;  %v2030_v46 = vld [vmem:[#allocation2 + $0xa0] sm:$0xff] (!%p2638_p5) }
 0x239   : > { %v1953_v49 = vpop.f32.mrb[78].mxu0  ;;  %v2703_v21 = vpack.c.bf16 (!%p2638_p5), %v2070_v7, %v2069_v43  ;;  %v2051_v24 = vadd.f32 (!%p2638_p5), %v4065_v11, %v2019_v38  ;;  %v2052_v22 = vadd.f32 (!%p2638_p5), %v4065_v11, %v2020_v48  ;;  %v2708_v25 = vpack.c.bf16 (!%p2638_p5), %v2072_v12, %v2071_v55 }
 0x23a   : > { %v1980_v42 = vadd.f32 %v1951_v47, %v822_v4  ;;  %v3042_v51 = vpop.f32.mrb[79].mxu0  ;;  %2699 = vst [vmem:[%s3844_s25] sm:$0xff] (!%p2638_p5), %v2698_v10   ;;  %v2075_v56 = vmax.f32 (!%p2638_p5), %v2050_v16, 0.0  ;;  %v2053_v27 = vadd.f32 (!%p2638_p5), %v4065_v11, %v2021_v8  ;;  %v2054_v28 = vadd.f32 (!%p2638_p5), %v4065_v11, %v2022_v33  ;;  %v2031_v47 = vld [vmem:[#allocation2 + $0xa8] sm:$0xff] (!%p2638_p5) }
 0x23b   : > { %2755 = vst [vmem:[%s3844_s25 + $0x8] sm:$0xff] (!%p2638_p5), %v2703_v21   ;;  %v2713_v15 = vpack.c.bf16 (!%p2638_p5), %v2074_v52, %v2073_v14  ;;  %v2076_v32 = vmax.f32 (!%p2638_p5), %v2051_v24, 0.0  ;;  %v2077_v20 = vmax.f32 (!%p2638_p5), %v2052_v22, 0.0  ;;  %v2055_v3 = vadd.f32 (!%p2638_p5), %v4065_v11, %v2023_v18  ;;  %2756 = vst [vmem:[%s3844_s25 + $0x10] sm:$0xff] (!%p2638_p5), %v2708_v25   ;;  %v2032_v26 = vld [vmem:[#allocation2 + $0xb0] sm:$0xff] (!%p2638_p5) }
 0x23c   : > { %2005 = vst [vmem:[#allocation2 + $0xc0] sm:$0xff] %v1980_v42  ;;  %v2078_v35 = vmax.f32 (!%p2638_p5), %v2053_v27, 0.0  ;;  %v2079_v37 = vmax.f32 (!%p2638_p5), %v2054_v28, 0.0  ;;  %v2056_v39 = vadd.f32 (!%p2638_p5), %v4065_v11, %v2024_v30  ;;  %v2057_v40 = vadd.f32 (!%p2638_p5), %v4065_v11, %v2025_v50 }
 0x23d   : > { %2757 = vst [vmem:[%s3844_s25 + $0x18] sm:$0xff] %v2713_v15   ;;  %v2718_v44 = vpack.c.bf16 %v2076_v32, %v2075_v56  ;;  %v2080_v63 = vmax.f32 %v2055_v3, 0.0  ;;  %v2058_v45 = vadd.f32 %v4065_v11, %v2026_v29  ;;  %v2059_v4 = vadd.f32 %v4065_v11, %v2027_v61  ;;  %v2033_v53 = vld [vmem:[#allocation2 + $0xb8] sm:$0xff] }
 0x23e   : > { %v2723_v36 = vpack.c.bf16 %v2078_v35, %v2077_v20  ;;  %v2081_v49 = vmax.f32 %v2056_v39, 0.0  ;;  %v2082_v42 = vmax.f32 %v2057_v40, 0.0  ;;  %v2060_v51 = vadd.f32 %v4065_v11, %v2028_v34 }
 0x23f   : > { %2758 = vst [vmem:[%s3844_s25 + $0x20] sm:$0xff] %v2718_v44   ;;  %v2728_v31 = vpack.c.bf16 %v2080_v63, %v2079_v37  ;;  %v2083_v9 = vmax.f32 %v2058_v45, 0.0  ;;  %v2084_v54 = vmax.f32 %v2059_v4, 0.0  ;;  %v2061_v17 = vadd.f32 %v4065_v11, %v2029_v41 }
 0x240   : > { %2759 = vst [vmem:[%s3844_s25 + $0x28] sm:$0xff] %v2723_v36   ;;  %v2733_v58 = vpack.c.bf16 %v2082_v42, %v2081_v49  ;;  %v2085_v59 = vmax.f32 %v2060_v51, 0.0  ;;  %v2062_v60 = vadd.f32 %v4065_v11, %v2030_v46  ;;  %v2063_v62 = vadd.f32 %v4065_v11, %v2031_v47 }
 0x241   : > { %2760 = vst [vmem:[%s3844_s25 + $0x30] sm:$0xff] %v2728_v31   ;;  %v2738_v13 = vpack.c.bf16 %v2084_v54, %v2083_v9  ;;  %v2086_v19 = vmax.f32 %v2061_v17, 0.0  ;;  %v2064_v0 = vadd.f32 %v4065_v11, %v2032_v26  ;;  %v2065_v1 = vadd.f32 %v4065_v11, %v2033_v53 }
 0x242   : > { %2761 = vst [vmem:[%s3844_s25 + $0x38] sm:$0xff] %v2733_v58   ;;  %v2087_v2 = vmax.f32 %v2062_v60, 0.0  ;;  %v2088_v5 = vmax.f32 %v2063_v62, 0.0 }
 0x243   : > { %v2034_v57 = vld [vmem:[#allocation2 + $0xc0] sm:$0xff]  ;;  %2762 = vst [vmem:[%s3844_s25 + $0x40] sm:$0xff] %v2738_v13   ;;  %v2743_v38 = vpack.c.bf16 %v2086_v19, %v2085_v59  ;;  %v2089_v48 = vmax.f32 %v2064_v0, 0.0  ;;  %v2090_v43 = vmax.f32 %v2065_v1, 0.0 }
 0x244   : > { %v2066_v6 = vadd.f32 %v4065_v11, %v2034_v57  ;;  %v2748_v7 = vpack.c.bf16 %v2088_v5, %v2087_v2 }
 0x245   : > { %2763 = vst [vmem:[%s3844_s25 + $0x48] sm:$0xff] %v2743_v38   ;;  %v2753_v23 = vpack.c.bf16 %v2090_v43, %v2089_v48 }
 0x246   : > { %v2091_v55 = vmax.f32 %v2066_v6, 0.0  ;;  %2764 = vst [vmem:[%s3844_s25 + $0x50] sm:$0xff] %v2748_v7  }
 0x247   : > { %2765 = vst [vmem:[%s3844_s25 + $0x58] sm:$0xff] %v2753_v23  }
 0x248   : > { %v2694_v8 = vpack.c.bf16 %v2091_v55, %v2091_v55 }
 0x24a   : > { %2217 = vst [vmem:[%s3844_s25 + $0x60] sm:$0xf] %v2694_v8 }
 0x24b PF: > { %2224 = sbr.rel (!%p3489_p12) target bundleno = 605 (0x25d), region = 111  ;;  %s2665_s14 = sshll.u32 (%p3489_p12), %s3358_s19, 2  ;;  %v2261_v52 = vld [vmem:[%s3844_s25 + $0x20] sm:$0xf] (%p3489_p12)  ;;  %v2263_v24 = vld [vmem:[%s3844_s25 + $0x24] sm:$0xf] (%p3489_p12) }
 0x24c   : > { %s4113_s5 = scalar_lea.vmem (%p3489_p12), %s4199_s3, %s2665_s14  ;;  %v2265_v22 = vld [vmem:[%s3844_s25 + $0x28] sm:$0xf] (%p3489_p12)  ;;  %v2267_v30 = vld [vmem:[%s3844_s25 + $0x2c] sm:$0xf] (%p3489_p12)  ;;  %v2269_v50 = vld [vmem:[%s3844_s25 + $0x30] sm:$0xf] (%p3489_p12) }
 0x24d   : > { %2262 = vst [vmem:[%s4113_s5 + $0x40] sm:$0xf] (%p3489_p12), %v2261_v52  ;;  %2264 = vst [vmem:[%s4113_s5 + $0x48] sm:$0xf] (%p3489_p12), %v2263_v24  ;;  %v2271_v25 = vld [vmem:[%s3844_s25 + $0x34] sm:$0xf] (%p3489_p12) }
 0x24e   : > { %2266 = vst [vmem:[%s4113_s5 + $0x50] sm:$0xf] (%p3489_p12), %v2265_v22  ;;  %2268 = vst [vmem:[%s4113_s5 + $0x58] sm:$0xf] (%p3489_p12), %v2267_v30  ;;  %v2273_v56 = vld [vmem:[%s3844_s25 + $0x38] sm:$0xf] (%p3489_p12) }
 0x24f   : > { %v2245_v11 = vld [vmem:[%s3844_s25] sm:$0xf] (%p3489_p12)  ;;  %v2247_v33 = vld [vmem:[%s3844_s25 + $0x4] sm:$0xf] (%p3489_p12)  ;;  %2270 = vst [vmem:[%s4113_s5 + $0x60] sm:$0xf] (%p3489_p12), %v2269_v50 }
 0x250   : > { %v2249_v10 = vld [vmem:[%s3844_s25 + $0x8] sm:$0xf] (%p3489_p12)  ;;  %v2251_v12 = vld [vmem:[%s3844_s25 + $0xc] sm:$0xf] (%p3489_p12)  ;;  %v2253_v14 = vld [vmem:[%s3844_s25 + $0x10] sm:$0xf] (%p3489_p12) }
 0x251   : > { %2246 = vst [vmem:[%s4113_s5] sm:$0xf] (%p3489_p12), %v2245_v11  ;;  %2248 = vst [vmem:[%s4113_s5 + $0x8] sm:$0xf] (%p3489_p12), %v2247_v33  ;;  %v2255_v16 = vld [vmem:[%s3844_s25 + $0x14] sm:$0xf] (%p3489_p12) }
 0x252   : > { %2250 = vst [vmem:[%s4113_s5 + $0x10] sm:$0xf] %v2249_v10  ;;  %2252 = vst [vmem:[%s4113_s5 + $0x18] sm:$0xf] %v2251_v12  ;;  %v2257_v18 = vld [vmem:[%s3844_s25 + $0x18] sm:$0xf] }
 0x253   : > { %2254 = vst [vmem:[%s4113_s5 + $0x20] sm:$0xf] %v2253_v14  ;;  %v2259_v21 = vld [vmem:[%s3844_s25 + $0x1c] sm:$0xf]  ;;  %2256 = vst [vmem:[%s4113_s5 + $0x28] sm:$0xf] %v2255_v16 }
 0x254   : > { %2258 = vst [vmem:[%s4113_s5 + $0x30] sm:$0xf] %v2257_v18  ;;  %2260 = vst [vmem:[%s4113_s5 + $0x38] sm:$0xf] %v2259_v21  ;;  %v2275_v27 = vld [vmem:[%s3844_s25 + $0x3c] sm:$0xf] }
 0x255   : > { %2272 = vst [vmem:[%s4113_s5 + $0x68] sm:$0xf] %v2271_v25  ;;  %v2277_v28 = vld [vmem:[%s3844_s25 + $0x40] sm:$0xf]  ;;  %2274 = vst [vmem:[%s4113_s5 + $0x70] sm:$0xf] %v2273_v56 }
 0x256   : > { %2276 = vst [vmem:[%s4113_s5 + $0x78] sm:$0xf] %v2275_v27  ;;  %2278 = vst [vmem:[%s4113_s5 + $0x80] sm:$0xf] %v2277_v28  ;;  %v2279_v29 = vld [vmem:[%s3844_s25 + $0x44] sm:$0xf] }
 0x257   : > { %v2281_v61 = vld [vmem:[%s3844_s25 + $0x48] sm:$0xf]  ;;  %v2283_v15 = vld [vmem:[%s3844_s25 + $0x4c] sm:$0xf]  ;;  %2280 = vst [vmem:[%s4113_s5 + $0x88] sm:$0xf] %v2279_v29 }
 0x258   : > { %2282 = vst [vmem:[%s4113_s5 + $0x90] sm:$0xf] %v2281_v61  ;;  %2284 = vst [vmem:[%s4113_s5 + $0x98] sm:$0xf] %v2283_v15  ;;  %v2285_v32 = vld [vmem:[%s3844_s25 + $0x50] sm:$0xf] }
 0x259   : > { %v2287_v20 = vld [vmem:[%s3844_s25 + $0x54] sm:$0xf]  ;;  %v2289_v3 = vld [vmem:[%s3844_s25 + $0x58] sm:$0xf]  ;;  %2286 = vst [vmem:[%s4113_s5 + $0xa0] sm:$0xf] %v2285_v32 }
 0x25a   : > { %2288 = vst [vmem:[%s4113_s5 + $0xa8] sm:$0xf] %v2287_v20  ;;  %2290 = vst [vmem:[%s4113_s5 + $0xb0] sm:$0xf] %v2289_v3  ;;  %v2291_v34 = vld [vmem:[%s3844_s25 + $0x5c] sm:$0xf] }
 0x25b   : > { %v2293_v35 = vld [vmem:[%s3844_s25 + $0x60] sm:$0xf]  ;;  %2292 = vst [vmem:[%s4113_s5 + $0xb8] sm:$0xf] %v2291_v34 }
 0x25c   : > { %2294 = vst [vmem:[%s4113_s5 + $0xc0] sm:$0xf] %v2293_v35 }
 0x25d PF: > { %s13_s22 = sadd.s32 1, %s3370_s22   ;;  %s4209_s10 = sld [smem:[#allocation6_spill]] }
 0x25e   : > { %p10_p6 = scmp.ge.s32.totalorder %s13_s22, 12   ;;  %s4210_s12 = smov %s3334_s13 }
 0x25f   : > { %s4211_s13 = smov %s3487_s9  ;;  %s4212_s14 = smov %s3342_s15 }
 0x260   : > { %s4213_s15 = smov %s3484_s8  ;;  %s4214_s16 = smov %s3350_s17 }
 0x261   : > { %s4215_s17 = smov %s3470_s30  ;;  %s4216_s18 = smov %s3362_s20 }
 0x262   : > { %s4217_s19 = smov %s3366_s21  ;;  %s4218_s20 = smov %s4221_s24 }
 0x263   : > { %s4219_s21 = smov %s4209_s10  ;;  %12 = sbr.rel (!%p10_p6) target bundleno = 9 (0x9), region = 200 }

// kernel: offline_cnn_lstm_forward.6
= control target key start
LH: loop header
LB: loop body
LE: loop exit
PB: predicated region body
PF: predicated region fallthrough
CT: control target
= control target key end

     0   :  { %s1623_s18 = smov 0   ;;  %s1761_s0 = inlined_call_operand.vmem [shape: bf16[8,6400], index: 0, kind: input, shape index: {}]   ;;  %s1762_s1 = inlined_call_operand.vmem [shape: bf16[6400,32], index: 1, kind: input, shape index: {}]   ;;  %s1763_s2 = inlined_call_operand.vmem [shape: f32[1,32], index: 2, kind: input, shape index: {}]   ;;  %s1764_s3 = inlined_call_operand.vmem [shape: bf16[32,256], index: 3, kind: input, shape index: {}]   ;;  %s1765_s4 = inlined_call_operand.vmem [shape: f32[1,256], index: 4, kind: input, shape index: {}]   ;;  %s1766_s5 = inlined_call_operand.vmem [shape: f32[8,256], index: 5, kind: output, shape index: {}]  }
   0x1 LB: > { %s1629_s19 = sadd.s32 4294967295, %s1589_s18   ;;  %p1264_p0 = scmp.ge.s32.totalorder %s1589_s18, 1  ;;  %s1589_s18 = sphi %s1623_s18, %s15_s18  }
   0x2   : > { %p194_p1 = scmp.lt.s32.totalorder %s1589_s18, 6 }
   0x4   : > { %p195_p2 = pnand %p1264_p0, %p194_p1 }
   0x5   : > { %s222_s20 = smul.u32 (!%p195_p2), 10, %s1629_s19  ;;  %p1267_p5 = scmp.ne.s32.totalorder (!%p195_p2), %s1629_s19, 0 }
   0x6   : > { %198 = sbr.rel (%p195_p2) target bundleno = 568 (0x238), region = 40 }
   0x7   : > { %s228_s21 = smul.u32 (!%p195_p2), 160, %s1629_s19  ;;  %p223_p3 = scmp.lt.s32.totalorder (!%p195_p2), %s222_s20, 49 }
   0x9   : > { %p229_p4 = scmp.lt.s32.totalorder (!%p195_p2), %s228_s21, 799 }
   0xd   : > { %s1768_s20 = smov (!%p223_p3, %s222_s20), 49  ;;  %s1770_s21 = smov (!%p229_p4, %s228_s21), 799 }
   0xe   : > { %s1265_s22 = sshll.u32 %s1768_s20, 2  ;;  %s1266_s26 = sshll.u32 %s1770_s21, 2  ;;  %vm239_vm0 = vcmask (!%p1267_p5), 261120   ;;  %v1591_v0 = vmov (!%p1267_p5), 0.0  }
   0xf   : > { %s1638_s25 = scalar_lea.vmem %s1761_s0, %s1265_s22  ;;  %s1643_s29 = scalar_lea.vmem %s1762_s1, %s1266_s26  ;;  %240 = vst.msk [vmem:[#allocation2] sm:$0xff] (!%p1267_p5), %vm239_vm0, %v1591_v0 }
  0x10   : > { %238 = sbr.rel (%p1267_p5) target bundleno = 23 (0x17), region = 44 }
  0x17 PF: > { %v1487_v1 = vld [vmem:[%s1643_s29 + $0x40] sm:$0xff]   ;;  %v1491_v5 = vld [vmem:[%s1643_s29 + $0x48] sm:$0xff]   ;;  %v1495_v9 = vld [vmem:[%s1643_s29 + $0x50] sm:$0xff]   ;;  %vm1123_vm1 = vcmask 261120   ;;  %p1358_p6 = scmp.ne.s32.totalorder %s1629_s19, 4 }
  0x18   : > { %v1488_v2 = vld [vmem:[%s1643_s29 + $0xc0] sm:$0xff]   ;;  %1367 = vmatprep.subr.bf16.mxu0 %v1487_v1  ;;  %v1492_v6 = vld [vmem:[%s1643_s29 + $0xc8] sm:$0xff]   ;;  %v1496_v10 = vld [vmem:[%s1643_s29 + $0xd0] sm:$0xff]  }
  0x19   : > { %v1489_v3 = vld [vmem:[%s1643_s29] sm:$0xff]   ;;  %1389 = vmatprep.subr.bf16.mxu1 %v1488_v2  ;;  %v1493_v7 = vld [vmem:[%s1643_s29 + $0x8] sm:$0xff]   ;;  %v1497_v11 = vld [vmem:[%s1643_s29 + $0x10] sm:$0xff]  }
  0x1a   : > { %v1490_v4 = vld [vmem:[%s1643_s29 + $0x80] sm:$0xff]   ;;  %1368 = vmatpush3.bf16.msra.mxu0 %v1489_v3  ;;  %v1494_v8 = vld [vmem:[%s1643_s29 + $0x88] sm:$0xff]   ;;  %v1498_v12 = vld [vmem:[%s1643_s29 + $0x90] sm:$0xff]  }
  0x1b   : > { %1390 = vmatpush3.bf16.msra.mxu1 %v1490_v4  ;;  %1369 = vmatprep.subr.bf16.mxu0 %v1491_v5  ;;  %v1499_v13 = vld [vmem:[%s1643_s29 + $0x58] sm:$0xff]   ;;  %v1503_v17 = vld [vmem:[%s1643_s29 + $0x60] sm:$0xff]   ;;  %v1507_v21 = vld [vmem:[%s1643_s29 + $0x68] sm:$0xff]  }
  0x1c   : > { %1391 = vmatprep.subr.bf16.mxu1 %v1492_v6  ;;  %v1500_v14 = vld [vmem:[%s1643_s29 + $0xd8] sm:$0xff]   ;;  %v1504_v18 = vld [vmem:[%s1643_s29 + $0xe0] sm:$0xff]   ;;  %v1508_v22 = vld [vmem:[%s1643_s29 + $0xe8] sm:$0xff]  }
  0x1d   : > { %v1501_v15 = vld [vmem:[%s1643_s29 + $0x18] sm:$0xff]   ;;  %v1505_v19 = vld [vmem:[%s1643_s29 + $0x20] sm:$0xff]   ;;  %v1509_v23 = vld [vmem:[%s1643_s29 + $0x28] sm:$0xff]  }
  0x1e   : > { %1370 = vmatpush3.bf16.msra.mxu0 %v1493_v7  ;;  %v1502_v16 = vld [vmem:[%s1643_s29 + $0x98] sm:$0xff]   ;;  %v1506_v20 = vld [vmem:[%s1643_s29 + $0xa0] sm:$0xff]   ;;  %v1510_v24 = vld [vmem:[%s1643_s29 + $0xa8] sm:$0xff]  }
  0x1f   : > { %1392 = vmatpush3.bf16.msra.mxu1 %v1494_v8  ;;  %1371 = vmatprep.subr.bf16.mxu0 %v1495_v9  ;;  %v1511_v25 = vld [vmem:[%s1643_s29 + $0x70] sm:$0xff]   ;;  %v1515_v29 = vld [vmem:[%s1643_s29 + $0x78] sm:$0xff]   ;;  %v242_v33 = vld [vmem:[%s1638_s25] sm:$0xff] }
  0x20   : > { %1393 = vmatprep.subr.bf16.mxu1 %v1496_v10  ;;  %v1512_v26 = vld [vmem:[%s1643_s29 + $0xf0] sm:$0xff]   ;;  %v1516_v30 = vld [vmem:[%s1643_s29 + $0xf8] sm:$0xff]   ;;  %v243_v34 = vld [vmem:[%s1638_s25 + $0x8] sm:$0xff]  ;;  %v1268_v35 = vcombine.low %v242_v33, %v242_v33  ;;  %v1269_v36 = vcombine.high %v242_v33, %v242_v33 }
  0x21   : > { %v1513_v27 = vld [vmem:[%s1643_s29 + $0x30] sm:$0xff]   ;;  %v1517_v31 = vld [vmem:[%s1643_s29 + $0x38] sm:$0xff]   ;;  %v1270_v37 = vcombine.low %v243_v34, %v243_v34  ;;  %v1271_v38 = vcombine.high %v243_v34, %v243_v34  ;;  %v1523_v39 = vld [vmem:[%s1643_s29 + $0x140] sm:$0xff]  }
  0x22   : > { %1372 = vmatpush3.bf16.msra.mxu0 %v1497_v11  ;;  %v1514_v28 = vld [vmem:[%s1643_s29 + $0xb0] sm:$0xff]   ;;  %v1518_v32 = vld [vmem:[%s1643_s29 + $0xb8] sm:$0xff]   ;;  %v1524_v40 = vld [vmem:[%s1643_s29 + $0x100] sm:$0xff]   ;;  %954 = vmatprep.mubr.bf16.mxu0 %v1269_v36 }
  0x23   : > { %1394 = vmatpush3.bf16.msra.mxu1 %v1498_v12  ;;  %1373 = vmatprep.subr.bf16.mxu0 %v1499_v13  ;;  %v1525_v41 = vld [vmem:[%s1643_s29 + $0x1c0] sm:$0xff]   ;;  %v1527_v43 = vld [vmem:[%s1643_s29 + $0x148] sm:$0xff]   ;;  %v1531_v47 = vld [vmem:[%s1643_s29 + $0x150] sm:$0xff]  }
  0x24   : > { %1395 = vmatprep.subr.bf16.mxu1 %v1500_v14  ;;  %994 = vmatprep.mubr.bf16.mxu1 %v1271_v38  ;;  %v1526_v42 = vld [vmem:[%s1643_s29 + $0x180] sm:$0xff]   ;;  %v1528_v44 = vld [vmem:[%s1643_s29 + $0x108] sm:$0xff]   ;;  %v1532_v48 = vld [vmem:[%s1643_s29 + $0x110] sm:$0xff]  }
  0x25   : > { %v1529_v45 = vld [vmem:[%s1643_s29 + $0x1c8] sm:$0xff]   ;;  %v1533_v49 = vld [vmem:[%s1643_s29 + $0x1d0] sm:$0xff]   ;;  %v1535_v51 = vld [vmem:[%s1643_s29 + $0x158] sm:$0xff]  }
  0x26   : > { %1374 = vmatpush3.bf16.msra.mxu0 %v1501_v15  ;;  %v1530_v46 = vld [vmem:[%s1643_s29 + $0x188] sm:$0xff]   ;;  %v1534_v50 = vld [vmem:[%s1643_s29 + $0x190] sm:$0xff]   ;;  %v1536_v52 = vld [vmem:[%s1643_s29 + $0x118] sm:$0xff]  }
  0x27   : > { %1396 = vmatpush3.bf16.msra.mxu1 %v1502_v16  ;;  %1375 = vmatprep.subr.bf16.mxu0 %v1503_v17  ;;  %v1537_v53 = vld [vmem:[%s1643_s29 + $0x1d8] sm:$0xff]   ;;  %v1539_v55 = vld [vmem:[%s1643_s29 + $0x160] sm:$0xff]   ;;  %v1543_v59 = vld [vmem:[%s1643_s29 + $0x168] sm:$0xff]  }
  0x28   : > { %1397 = vmatprep.subr.bf16.mxu1 %v1504_v18  ;;  %v1538_v54 = vld [vmem:[%s1643_s29 + $0x198] sm:$0xff]   ;;  %v1540_v56 = vld [vmem:[%s1643_s29 + $0x120] sm:$0xff]   ;;  %v1544_v60 = vld [vmem:[%s1643_s29 + $0x128] sm:$0xff]  }
  0x29   : > { %v1541_v57 = vld [vmem:[%s1643_s29 + $0x1e0] sm:$0xff]   ;;  %v1545_v61 = vld [vmem:[%s1643_s29 + $0x1e8] sm:$0xff]   ;;  %v1547_v63 = vld [vmem:[%s1643_s29 + $0x170] sm:$0xff]  }
  0x2a   : > { %1376 = vmatpush3.bf16.msra.mxu0 %v1505_v19  ;;  %v1542_v58 = vld [vmem:[%s1643_s29 + $0x1a0] sm:$0xff]   ;;  %v1546_v62 = vld [vmem:[%s1643_s29 + $0x1a8] sm:$0xff]   ;;  %v1548_v0 = vld [vmem:[%s1643_s29 + $0x130] sm:$0xff]  }
  0x2b   : > { %1398 = vmatpush3.bf16.msra.mxu1 %v1506_v20  ;;  %1377 = vmatprep.subr.bf16.mxu0 %v1507_v21  ;;  %v1549_v1 = vld [vmem:[%s1643_s29 + $0x1f0] sm:$0xff]   ;;  %v1551_v3 = vld [vmem:[%s1643_s29 + $0x178] sm:$0xff]   ;;  %v1557_v10 = vld [vmem:[%s1643_s29 + $0x240] sm:$0xff]  }
  0x2c   : > { %1399 = vmatprep.subr.bf16.mxu1 %v1508_v22  ;;  %v1550_v2 = vld [vmem:[%s1643_s29 + $0x1b0] sm:$0xff]   ;;  %v1552_v4 = vld [vmem:[%s1643_s29 + $0x138] sm:$0xff]   ;;  %v1560_v14 = vld [vmem:[%s1643_s29 + $0x200] sm:$0xff]  }
  0x2d   : > { %v1553_v5 = vld [vmem:[%s1643_s29 + $0x1f8] sm:$0xff]   ;;  %v244_v6 = vld [vmem:[%s1638_s25 + $0x10] sm:$0xff]  ;;  %v1561_v15 = vld [vmem:[%s1643_s29 + $0x248] sm:$0xff]  }
  0x2e   : > { %1378 = vmatpush3.bf16.msra.mxu0 %v1509_v23  ;;  %v1273_v7 = vcombine.high %v244_v6, %v244_v6  ;;  %v1556_v8 = vld [vmem:[%s1643_s29 + $0x1b8] sm:$0xff]   ;;  %v1272_v9 = vcombine.low %v244_v6, %v244_v6  ;;  %v1562_v16 = vld [vmem:[%s1643_s29 + $0x208] sm:$0xff]   ;;  %v1563_v17 = vld [vmem:[%s1643_s29 + $0x250] sm:$0xff]  }
  0x2f   : > { %1400 = vmatpush3.bf16.msra.mxu1 %v1510_v24  ;;  %1379 = vmatprep.subr.bf16.mxu0 %v1511_v25  ;;  %v245_v11 = vld [vmem:[%s1638_s25 + $0x18] sm:$0xff]  ;;  %v1564_v18 = vld [vmem:[%s1643_s29 + $0x210] sm:$0xff]   ;;  %v1567_v21 = vld [vmem:[%s1643_s29 + $0x260] sm:$0xff]  }
  0x30   : > { %1401 = vmatprep.subr.bf16.mxu1 %v1512_v26  ;;  %v1274_v12 = vcombine.low %v245_v11, %v245_v11  ;;  %v1275_v13 = vcombine.high %v245_v11, %v245_v11  ;;  %v1565_v19 = vld [vmem:[%s1643_s29 + $0x258] sm:$0xff]   ;;  %v246_v22 = vld [vmem:[%s1638_s25 + $0x20] sm:$0xff]  ;;  %v1569_v25 = vld [vmem:[%s1643_s29 + $0x268] sm:$0xff]  }
  0x31   : > { %v1566_v20 = vld [vmem:[%s1643_s29 + $0x218] sm:$0xff]   ;;  %v1568_v23 = vld [vmem:[%s1643_s29 + $0x220] sm:$0xff]   ;;  %v1277_v24 = vcombine.high %v246_v22, %v246_v22  ;;  %v1570_v26 = vld [vmem:[%s1643_s29 + $0x228] sm:$0xff]  }
  0x32   : > { %1380 = vmatpush3.bf16.msra.mxu0 %v1513_v27  ;;  %v1571_v27 = vld [vmem:[%s1643_s29 + $0x270] sm:$0xff]   ;;  %v1143_v11 = vld [vmem:[%s1765_s4] sm:$0x3] (!%p1358_p6) }
  0x33   : > { %1402 = vmatpush3.bf16.msra.mxu1 %v1514_v28  ;;  %1381 = vmatprep.subr.bf16.mxu0 %v1515_v29  ;;  %v1572_v28 = vld [vmem:[%s1643_s29 + $0x230] sm:$0xff]   ;;  %v1573_v29 = vld [vmem:[%s1643_s29 + $0x278] sm:$0xff]  }
  0x34   : > { %1403 = vmatprep.subr.bf16.mxu1 %v1516_v30  ;;  %v1574_v30 = vld [vmem:[%s1643_s29 + $0x238] sm:$0xff]  }
  0x36   : > { %1382 = vmatpush3.bf16.msra.mxu0 %v1517_v31  ;;  %v1276_v31 = vcombine.low %v246_v22, %v246_v22 }
  0x37   : > { %1404 = vmatpush3.bf16.msra.mxu1 %v1518_v32  ;;  %1411 = vmatprep.subr.bf16.mxu0 %v1523_v39 }
  0x38   : > { %1433 = vmatprep.subr.bf16.mxu1 %v1525_v41 }
  0x39   : > { %955 = vmatmul.mubr.bf16.vlgmr.msra.gmra.mrb[0].mxu0 %v1268_v35 }
  0x3a   : > { %995 = vmatmul.mubr.bf16.vlgmr.msra.gmra.mrb[0].mxu1 %v1270_v37  ;;  %1412 = vmatpush3.bf16.msra.mxu0 %v1524_v40 }
  0x3b   : > { %1434 = vmatpush3.bf16.msra.mxu1 %v1526_v42  ;;  %1413 = vmatprep.subr.bf16.mxu0 %v1527_v43 }
  0x3c   : > { %1435 = vmatprep.subr.bf16.mxu1 %v1529_v45  ;;  %1034 = vmatprep.mubr.bf16.mxu0 %v1273_v7 }
  0x3d   : > { %1074 = vmatprep.mubr.bf16.mxu1 %v1275_v13 }
  0x3e   : > { %1414 = vmatpush3.bf16.msra.mxu0 %v1528_v44 }
  0x3f   : > { %1436 = vmatpush3.bf16.msra.mxu1 %v1530_v46  ;;  %1415 = vmatprep.subr.bf16.mxu0 %v1531_v47 }
  0x40   : > { %1437 = vmatprep.subr.bf16.mxu1 %v1533_v49 }
  0x42   : > { %1416 = vmatpush3.bf16.msra.mxu0 %v1532_v48 }
  0x43   : > { %1438 = vmatpush3.bf16.msra.mxu1 %v1534_v50  ;;  %1417 = vmatprep.subr.bf16.mxu0 %v1535_v51 }
  0x44   : > { %1439 = vmatprep.subr.bf16.mxu1 %v1537_v53 }
  0x46   : > { %1418 = vmatpush3.bf16.msra.mxu0 %v1536_v52 }
  0x47   : > { %1440 = vmatpush3.bf16.msra.mxu1 %v1538_v54  ;;  %1419 = vmatprep.subr.bf16.mxu0 %v1539_v55 }
  0x48   : > { %1441 = vmatprep.subr.bf16.mxu1 %v1541_v57 }
  0x4a   : > { %1420 = vmatpush3.bf16.msra.mxu0 %v1540_v56 }
  0x4b   : > { %1442 = vmatpush3.bf16.msra.mxu1 %v1542_v58  ;;  %1421 = vmatprep.subr.bf16.mxu0 %v1543_v59  ;;  %v241_v59 = vld [vmem:[#allocation2] sm:$0xff] }
  0x4c   : > { %1443 = vmatprep.subr.bf16.mxu1 %v1545_v61 }
  0x4e   : > { %1422 = vmatpush3.bf16.msra.mxu0 %v1544_v60 }
  0x4f   : > { %1444 = vmatpush3.bf16.msra.mxu1 %v1546_v62  ;;  %1423 = vmatprep.subr.bf16.mxu0 %v1547_v63  ;;  %v1577_v63 = vld [vmem:[%s1764_s3 + $0x4] ss:$8 sps:$4 sm:$0xff] (!%p1358_p6)  }
  0x50   : > { %1445 = vmatprep.subr.bf16.mxu1 %v1549_v1  ;;  %v1592_v1 = vmov (!%p1358_p6), 0  }
  0x52   : > { %1424 = vmatpush3.bf16.msra.mxu0 %v1548_v0  ;;  %v1579_v0 = vld [vmem:[%s1764_s3] ss:$8 sps:$4 sm:$0xff] (!%p1358_p6)  }
  0x53   : > { %1446 = vmatpush3.bf16.msra.mxu1 %v1550_v2  ;;  %1425 = vmatprep.subr.bf16.mxu0 %v1551_v3  ;;  %v1580_v2 = vld [vmem:[%s1764_s3 + $0x14] ss:$8 sps:$4 sm:$0xff] (!%p1358_p6)  }
  0x54   : > { %1447 = vmatprep.subr.bf16.mxu1 %v1553_v5  ;;  %v1359_v5 = vld [vmem:[%s1763_s2] ss:$0 sm:$0xff] (!%p1358_p6) }
  0x56   : > { %1426 = vmatpush3.bf16.msra.mxu0 %v1552_v4  ;;  %v1582_v4 = vld [vmem:[%s1764_s3 + $0x10] ss:$8 sps:$4 sm:$0xff] (!%p1358_p6)  }
  0x57   : > { %1448 = vmatpush3.bf16.msra.mxu1 %v1556_v8  ;;  %1455 = vmatprep.subr.bf16.mxu0 %v1557_v10  ;;  %v1145_v8 = vlaneseq (!%p1358_p6) }
  0x59   : > { %1035 = vmatmul.mubr.bf16.vlgmr.msra.gmra.mrb[4].mxu0 %v1272_v9  ;;  %v1146_v9 = vshrl.u32 (!%p1358_p6), %v1145_v8, 7 }
  0x5a   : > { %1456 = vmatpush3.bf16.msra.mxu0 %v1560_v14  ;;  %1075 = vmatmul.mubr.bf16.vlgmr.msra.gmra.mrb[4].mxu1 %v1274_v12 }
  0x5b   : > { %1457 = vmatprep.subr.bf16.mxu0 %v1561_v15  ;;  %1114 = vmatprep.mubr.bf16.mxu0 %v1277_v24  ;;  %v1147_v10 = vsub.s32 (!%p1358_p6), 0, %v1146_v9  ;;  %v1151_v12 = vsub.s32 (!%p1358_p6), 1, %v1146_v9 }
  0x5d   : > { %v1148_v13 = vrot.slane (!%p1358_p6), %v1143_v11, %v1147_v10  ;;  %v1152_v14 = vrot.slane (!%p1358_p6), %v1143_v11, %v1151_v12 }
  0x5e   : > { %1458 = vmatpush3.bf16.msra.mxu0 %v1562_v16 }
  0x5f   : > { %1459 = vmatprep.subr.bf16.mxu0 %v1563_v17 }
  0x62   : > { %1460 = vmatpush3.bf16.msra.mxu0 %v1564_v18 }
  0x63   : > { %1461 = vmatprep.subr.bf16.mxu0 %v1565_v19 }
  0x66   : > { %1462 = vmatpush3.bf16.msra.mxu0 %v1566_v20 }
  0x67   : > { %1463 = vmatprep.subr.bf16.mxu0 %v1567_v21 }
  0x6a   : > { %1464 = vmatpush3.bf16.msra.mxu0 %v1568_v23 }
  0x6b   : > { %1465 = vmatprep.subr.bf16.mxu0 %v1569_v25 }
  0x6e   : > { %1466 = vmatpush3.bf16.msra.mxu0 %v1570_v26 }
  0x6f   : > { %1467 = vmatprep.subr.bf16.mxu0 %v1571_v27 }
  0x72   : > { %1468 = vmatpush3.bf16.msra.mxu0 %v1572_v28 }
  0x73   : > { %1469 = vmatprep.subr.bf16.mxu0 %v1573_v29 }
  0x76   : > { %1470 = vmatpush3.bf16.msra.mxu0 %v1574_v30 }
  0x77   : > { %1178 = vmatprep.subr.bf16.mxu0 (!%p1358_p6), %v1577_v63 }
  0x79   : > { %1115 = vmatmul.mubr.bf16.vlgmr.msra.gmra.mrb[8].mxu0 %v1276_v31 }
  0x7a   : > { %1210 = vmatprep.mubr.bf16.mxu0 (!%p1358_p6), %v1592_v1  ;;  %1179 = vmatpush1.bf16.msra.mxu0 (!%p1358_p6), %v1579_v0 }
  0x7b   : > { %1180 = vmatprep.subr.bf16.mxu0 (!%p1358_p6), %v1580_v2 }
  0x7e   : > { %1181 = vmatpush1.bf16.msra.mxu0 (!%p1358_p6), %v1582_v4 }
 0x10c   : > { %v1383_v32 = vpop.f32.mrb[0].mxu0 }
 0x10d   : > { %v1405_v33 = vpop.f32.mrb[0].mxu1  ;;  %v1384_v34 = vpop.f32.mrb[1].mxu0 }
 0x10e   : > { %v1406_v35 = vpop.f32.mrb[1].mxu1  ;;  %v1385_v36 = vadd.f32 %v1384_v34, %v1383_v32  ;;  %v1386_v38 = vpop.f32.mrb[2].mxu0 }
 0x10f   : > { %v1407_v37 = vadd.f32 %v1406_v35, %v1405_v33  ;;  %v1408_v39 = vpop.f32.mrb[2].mxu1  ;;  %v1387_v40 = vpop.f32.mrb[3].mxu0 }
 0x110   : > { %v1409_v41 = vpop.f32.mrb[3].mxu1 }
 0x111   : > { %v997_v42 = vadd.f32 %v1407_v37, %v1385_v36 }
 0x12c   : > { %v1427_v43 = vpop.f32.mrb[4].mxu0 }
 0x12d   : > { %v1428_v44 = vpop.f32.mrb[5].mxu0  ;;  %v1449_v45 = vpop.f32.mrb[4].mxu1 }
 0x12e   : > { %v1429_v46 = vadd.f32 %v1428_v44, %v1427_v43  ;;  %v1430_v47 = vpop.f32.mrb[6].mxu0  ;;  %v1450_v48 = vpop.f32.mrb[5].mxu1 }
 0x12f   : > { %v1431_v49 = vpop.f32.mrb[7].mxu0  ;;  %v1451_v50 = vadd.f32 %v1450_v48, %v1449_v45  ;;  %v1452_v51 = vpop.f32.mrb[6].mxu1 }
 0x130   : > { %v1037_v52 = vadd.f32 %v1429_v46, %v997_v42  ;;  %v1453_v53 = vpop.f32.mrb[7].mxu1 }
 0x132   : > { %v1077_v54 = vadd.f32 %v1451_v50, %v1037_v52 }
 0x14c   : > { %v1471_v55 = vpop.f32.mrb[8].mxu0 }
 0x14d   : > { %v1472_v56 = vpop.f32.mrb[9].mxu0 }
 0x14e   : > { %v1473_v57 = vadd.f32 %v1472_v56, %v1471_v55  ;;  %v1474_v58 = vpop.f32.mrb[10].mxu0  ;;  %1128 = sbr.rel (%p1358_p6) target bundleno = 568 (0x238), region = 48 }
 0x14f   : > { %v1475_v60 = vpop.f32.mrb[11].mxu0 }
 0x150   : > { %v1117_v61 = vadd.f32 %v1473_v57, %v1077_v54 }
 0x152   : > { %v1122_v62 = vadd.f32 %v1117_v61, %v241_v59 }
 0x154   : > { %1124 = vst.msk [vmem:[#allocation2] sm:$0xff] %vm1123_vm1, %v1122_v62 }
 0x15b   : > { %v1129_v3 = vld [vmem:[#allocation2] sm:$0xff] }
 0x15c   : > { %v1137_v6 = vadd.f32 %v1359_v5, %v1129_v3 }
 0x15e   : > { %v1138_v7 = vpack.c.bf16 %v1137_v6, %v1137_v6 }
 0x160   : > { %1364 = vmatmul.mubr.msk.bf16.vlgmr.msra.gmra.mrb[0].mxu0 %vm1123_vm1, %v1138_v7 }
 0x233   : > { %v1212_v15 = vpop.f32.mrb[0].mxu0 }
 0x234   : > { %v1213_v16 = vadd.f32 %v1212_v15, %v1148_v13  ;;  %v1214_v17 = vpop.f32.mrb[1].mxu0 }
 0x235   : > { %v1215_v18 = vadd.f32 %v1214_v17, %v1152_v14  ;;  %v1216_v19 = vpop.f32.mrb[2].mxu0 }
 0x236   : > { %1219 = vst [vmem:[%s1766_s5] sm:$0xff] %v1213_v16  ;;  %v1217_v20 = vpop.f32.mrb[3].mxu0 }
 0x237   : > { %1220 = vst [vmem:[%s1766_s5 + $0x8] sm:$0xff] %v1215_v18 }
 0x238 PF: > { %s15_s18 = sadd.s32 1, %s1589_s18  }
 0x239   : > { %p12_p7 = scmp.ge.s32.totalorder %s15_s18, 7  }
 0x23b   :  { %14 = sbr.rel (!%p12_p7) target bundleno = 1 (0x1), region = 77 }

// kernel: offline_cnn_lstm_forward.7
= control target key start
LH: loop header
LB: loop body
LE: loop exit
PB: predicated region body
PF: predicated region fallthrough
CT: control target
= control target key end

     0   :  { %v632_v2 = vmov 0   ;;  %s795_s0 = inlined_call_operand.vmem [shape: f32[4,2,256], index: 0, kind: input, shape index: {}]   ;;  %s796_s1 = inlined_call_operand.vmem [shape: bf16[64,256], index: 1, kind: input, shape index: {}]   ;;  %s797_s2 = inlined_call_operand.vmem [shape: bf16[64,2], index: 2, kind: input, shape index: {}]   ;;  %s798_s3 = inlined_call_operand.vmem [shape: f32[1,2], index: 3, kind: input, shape index: {}]   ;;  %s799_s4 = inlined_call_operand.hbm [shape: f32[2,2], index: 4, kind: output, shape index: {}]  }
   0x1   :  { %v560_v0 = vld [vmem:[%s796_s1 + $0x4] ss:$8 sps:$4 sm:$0xff]   ;;  %v669_v1 = vld [vmem:[%s796_s1] ss:$8 sps:$4 sm:$0xff]   ;;  %104 = vmatprep.mubr.bf16.mxu0 %v632_v2  ;;  %191 = vmatprep.mubr.bf16.mxu1 %v632_v2  ;;  %v676_v3 = vld [vmem:[%s796_s1 + $0x14] ss:$8 sps:$4 sm:$0xff]  }
   0x2   :  { %72 = vmatprep.subr.bf16.mxu0 %v560_v0  ;;  %159 = vmatprep.subr.bf16.mxu1 %v560_v0  ;;  %v682_v4 = vld [vmem:[%s796_s1 + $0x10] ss:$8 sps:$4 sm:$0xff]   ;;  %v689_v5 = vld [vmem:[%s796_s1 + $0x24] ss:$8 sps:$4 sm:$0xff]   ;;  %v695_v6 = vld [vmem:[%s796_s1 + $0x20] ss:$8 sps:$4 sm:$0xff]  }
   0x3   :  { %73 = vmatpush1.bf16.msra.mxu0 %v669_v1  ;;  %160 = vmatpush1.bf16.msra.mxu1 %v669_v1  ;;  %v703_v7 = vld [vmem:[%s796_s1 + $0x34] ss:$8 sps:$4 sm:$0xff]  }
   0x4   :  { %74 = vmatprep.subr.bf16.mxu0 %v676_v3  ;;  %161 = vmatprep.subr.bf16.mxu1 %v676_v3 }
   0x7   :  { %75 = vmatpush1.bf16.msra.mxu0 %v682_v4  ;;  %162 = vmatpush1.bf16.msra.mxu1 %v682_v4 }
   0x8   :  { %76 = vmatprep.subr.bf16.mxu0 %v689_v5  ;;  %163 = vmatprep.subr.bf16.mxu1 %v689_v5 }
   0x9   :  { %9 = vsyncpa [#allocation3], 0  ;;  %v710_v8 = vld [vmem:[%s796_s1 + $0x30] ss:$8 sps:$4 sm:$0xff]   ;;  %v633_v9 = vmov 1983009808   ;;  %v119_v11 = vlaneseq }
   0xa   :  { %v117_v10 = vunpack.c.l.s4 %v633_v9  ;;  %v27_v20 = vld [vmem:[%s795_s0] sm:$0xf]  ;;  %s634_s6 = smov 64   ;;  %vm68_vm0 = vcmask 523264   ;;  %v522_v44 = vld [vmem:[%s795_s0 + $0x4] sm:$0xf] }
   0xb   :  { %77 = vmatpush1.bf16.msra.mxu0 %v695_v6  ;;  %164 = vmatpush1.bf16.msra.mxu1 %v695_v6  ;;  %v120_v13 = vshrl.u32 %v119_v11, 7  ;;  %vm636_vm1 = vmmov 0   ;;  %s637_s22 = smov [#allocation2]   ;;  %vm497_vm2 = vcmask 9216  }
   0xc   :  { %78 = vmatprep.subr.bf16.mxu0 %v703_v7  ;;  %165 = vmatprep.subr.bf16.mxu1 %v703_v7  ;;  %v118_v12 = vunpack.c.0.s8 %v117_v10 }
   0xe   :  { %v726_v15 = vsub.s32 %v118_v12, %v120_v13 }
   0xf   :  { %79 = vmatpush1.bf16.msra.mxu0 %v710_v8  ;;  %166 = vmatpush1.bf16.msra.mxu1 %v710_v8 }
  0x10   :  { %246 = vmatprep.subr.bf16.mxu0 %v560_v0  ;;  %333 = vmatprep.subr.bf16.mxu1 %v560_v0 }
  0x12   :  { %105 = vmatmul.mubr.bf16.vlgmr.msra.gmra.mrb[0].mxu0 %v632_v2 }
  0x13   :  { %247 = vmatpush1.bf16.msra.mxu0 %v669_v1  ;;  %278 = vmatprep.mubr.bf16.mxu0 %v632_v2 }
  0x14   :  { %248 = vmatprep.subr.bf16.mxu0 %v676_v3 }
  0x17   :  { %249 = vmatpush1.bf16.msra.mxu0 %v682_v4 }
  0x18   :  { %250 = vmatprep.subr.bf16.mxu0 %v689_v5 }
  0x1b   :  { %251 = vmatpush1.bf16.msra.mxu0 %v695_v6 }
  0x1c   :  { %252 = vmatprep.subr.bf16.mxu0 %v703_v7 }
  0x1f   :  { %253 = vmatpush1.bf16.msra.mxu0 %v710_v8 }
  0xe5   :  { %v106_v14 = vpop.f32.mrb[0].mxu0 }
  0xe6   :  { %v108_v16 = vpop.f32.mrb[1].mxu0 }
  0xe7   :  { %v115_v17 = vcombine.low %v106_v14, %v108_v16  ;;  %v110_v18 = vpop.f32.mrb[2].mxu0 }
  0xe8   :  { %v111_v19 = vpop.f32.mrb[3].mxu0 }
  0xe9   :  { %v122_v21 = vrot.slane %v115_v17, %v726_v15 }
  0xeb   :  { %v124_v22 = vadd.f32 %v122_v21, %v27_v20 }
  0xed   :  { %132 = vrot.lane.b32.xlu0 %v124_v22, %s634_s6  ;;  %v521_v23 = vmul.f32 -1.442695, %v124_v22 }
  0xef   :  { %576 = vpow2.f32 %v521_v23 }
  0xf9   :  { %v577_v24 = vpop.eup %576 }
  0xfa   :  { %v128_v25 = vadd.f32 1.0, %v577_v24 }
  0xfc   :  { %578 = vrcp.f32 %v128_v25 }
 0x106   :  { %v579_v28 = vpop.eup %578 }
 0x107   :  { %v137_v31 = vmul.f32 0.0, %v579_v28  ;;  %v146_v35 = vrot.slane %v579_v28, 2 }
 0x15f   :  { %v133_v26 = vpop.permute.xlu0 %132 }
 0x160   :  { %v134_v27 = vrot.slane %v133_v26, 2 }
 0x162   :  { %580 = vtanh.f32 %v134_v27 }
 0x16c   :  { %v581_v29 = vpop.eup %580 }
 0x16d   :  { %v138_v30 = vmul.f32 %v581_v29, %v579_v28  ;;  %v528_v29 = vld [vmem:[%s795_s0 + $0xc] sm:$0xf] }
 0x16f   :  { %140 = vrot.lane.b32.xlu0 %v138_v30, %s634_s6 }
 0x1e1   :  { %v141_v32 = vpop.permute.xlu0 %140 }
 0x1e2   :  { %v143_v33 = vadd.f32 %v141_v32, %v137_v31 }
 0x1e4   :  { %582 = vtanh.f32 %v143_v33 }
 0x1ee   :  { %v583_v34 = vpop.eup %582 }
 0x1ef   :  { %149 = vrot.lane.b32.xlu1 %v583_v34, %s634_s6 }
 0x261   :  { %v150_v36 = vpop.permute.xlu1 %149 }
 0x262   :  { %v152_v37 = vmul.f32 %v150_v36, %v146_v35 }
 0x264   :  { %v155_v38 = vpack.c.bf16 %v152_v37, %v152_v37 }
 0x266   :  { %523 = vmatmul.mubr.msk.bf16.vlgmr.msra.gmra.mrb[0].mxu1 %vm68_vm0, %v155_v38 }
 0x267   :  { %334 = vmatpush1.bf16.msra.mxu1 %v669_v1  ;;  %365 = vmatprep.mubr.bf16.mxu1 %v632_v2 }
 0x268   :  { %335 = vmatprep.subr.bf16.mxu1 %v676_v3 }
 0x26b   :  { %336 = vmatpush1.bf16.msra.mxu1 %v682_v4  ;;  %v525_v4 = vld [vmem:[%s795_s0 + $0x8] sm:$0xf] }
 0x26c   :  { %337 = vmatprep.subr.bf16.mxu1 %v689_v5 }
 0x26f   :  { %338 = vmatpush1.bf16.msra.mxu1 %v695_v6 }
 0x270   :  { %339 = vmatprep.subr.bf16.mxu1 %v703_v7 }
 0x273   :  { %340 = vmatpush1.bf16.msra.mxu1 %v710_v8 }
 0x339   :  { %v193_v39 = vpop.f32.mrb[0].mxu1 }
 0x33a   :  { %v195_v40 = vpop.f32.mrb[1].mxu1 }
 0x33b   :  { %v202_v41 = vcombine.low %v193_v39, %v195_v40  ;;  %v197_v42 = vpop.f32.mrb[2].mxu1  ;;  %v635_v40 = vmov 0.0  }
 0x33c   :  { %v198_v43 = vpop.f32.mrb[3].mxu1  ;;  %542 = vmatprep.subr.bf16.mxu0 %v635_v40  ;;  %v574_v42 = vld [vmem:[%s797_s2 + $0x10] sm:$0xff]  }
 0x33d   :  { %v209_v45 = vrot.slane %v202_v41, %v726_v15  ;;  %v573_v41 = vld [vmem:[%s797_s2 + $0x8] sm:$0xff]  }
 0x33f   :  { %v211_v46 = vadd.f32 %v522_v44, %v209_v45  ;;  %v575_v45 = vld [vmem:[%s797_s2 + $0x18] sm:$0xff]  }
 0x341   :  { %219 = vrot.lane.b32.xlu1 %v211_v46, %s634_s6  ;;  %v524_v47 = vmul.f32 -1.442695, %v211_v46 }
 0x343   :  { %584 = vpow2.f32 %v524_v47 }
 0x34d   :  { %v585_v48 = vpop.eup %584 }
 0x34e   :  { %v215_v49 = vadd.f32 1.0, %v585_v48 }
 0x350   :  { %586 = vrcp.f32 %v215_v49 }
 0x35a   :  { %v587_v52 = vpop.eup %586 }
 0x35b   :  { %v224_v55 = vmul.f32 %v587_v52, %v143_v33  ;;  %v233_v59 = vrot.slane %v587_v52, 2 }
 0x3b3   :  { %v220_v50 = vpop.permute.xlu1 %219 }
 0x3b4   :  { %v221_v51 = vrot.slane %v220_v50, 2 }
 0x3b6   :  { %588 = vtanh.f32 %v221_v51 }
 0x3c0   :  { %v589_v53 = vpop.eup %588 }
 0x3c1   :  { %v225_v54 = vmul.f32 %v589_v53, %v587_v52  ;;  %v531_v52 = vld [vmem:[%s798_s3] ss:$0 sm:$0xff] }
 0x3c3   :  { %227 = vrot.lane.b32.xlu0 %v225_v54, %s634_s6 }
 0x435   :  { %v228_v56 = vpop.permute.xlu0 %227 }
 0x436   :  { %v230_v57 = vadd.f32 %v228_v56, %v224_v55 }
 0x438   :  { %590 = vtanh.f32 %v230_v57 }
 0x442   :  { %v591_v58 = vpop.eup %590 }
 0x443   :  { %236 = vrot.lane.b32.xlu1 %v591_v58, %s634_s6 }
 0x4b5   :  { %v237_v60 = vpop.permute.xlu1 %236 }
 0x4b6   :  { %v239_v61 = vmul.f32 %v237_v60, %v233_v59 }
 0x4b8   :  { %v242_v62 = vpack.c.bf16 %v239_v61, %v239_v61 }
 0x4ba   :  { %526 = vmatmul.mubr.msk.bf16.vlgmr.msra.gmra.mrb[4].mxu0 %vm68_vm0, %v242_v62 }
 0x4bb   :  { %550 = vmatprep.mubr.msk.bf16.mxu0 %vm636_vm1, %v635_v40 }
 0x58d   :  { %v280_v63 = vpop.f32.mrb[4].mxu0 }
 0x58e   :  { %v282_v0 = vpop.f32.mrb[5].mxu0 }
 0x58f   :  { %v289_v1 = vcombine.low %v280_v63, %v282_v0  ;;  %v284_v2 = vpop.f32.mrb[6].mxu0 }
 0x590   :  { %v285_v3 = vpop.f32.mrb[7].mxu0 }
 0x591   :  { %v296_v5 = vrot.slane %v289_v1, %v726_v15 }
 0x593   :  { %v298_v6 = vadd.f32 %v525_v4, %v296_v5 }
 0x595   :  { %306 = vrot.lane.b32.xlu0 %v298_v6, %s634_s6  ;;  %v527_v7 = vmul.f32 -1.442695, %v298_v6 }
 0x597   :  { %592 = vpow2.f32 %v527_v7 }
 0x5a1   :  { %v593_v8 = vpop.eup %592 }
 0x5a2   :  { %v302_v9 = vadd.f32 1.0, %v593_v8 }
 0x5a4   :  { %594 = vrcp.f32 %v302_v9 }
 0x5ae   :  { %v595_v12 = vpop.eup %594 }
 0x5af   :  { %v311_v16 = vmul.f32 %v595_v12, %v230_v57  ;;  %v320_v20 = vrot.slane %v595_v12, 2 }
 0x607   :  { %v307_v10 = vpop.permute.xlu0 %306 }
 0x608   :  { %v308_v11 = vrot.slane %v307_v10, 2 }
 0x60a   :  { %596 = vtanh.f32 %v308_v11 }
 0x614   :  { %v597_v13 = vpop.eup %596 }
 0x615   :  { %v312_v14 = vmul.f32 %v597_v13, %v595_v12 }
 0x617   :  { %314 = vrot.lane.b32.xlu1 %v312_v14, %s634_s6 }
 0x689   :  { %v315_v17 = vpop.permute.xlu1 %314 }
 0x68a   :  { %v317_v18 = vadd.f32 %v315_v17, %v311_v16 }
 0x68c   :  { %598 = vtanh.f32 %v317_v18 }
 0x696   :  { %v599_v19 = vpop.eup %598 }
 0x697   :  { %323 = vrot.lane.b32.xlu0 %v599_v19, %s634_s6 }
 0x709   :  { %v324_v21 = vpop.permute.xlu0 %323 }
 0x70a   :  { %v326_v22 = vmul.f32 %v324_v21, %v320_v20 }
 0x70c   :  { %v329_v23 = vpack.c.bf16 %v326_v22, %v326_v22 }
 0x70e   :  { %529 = vmatmul.mubr.msk.bf16.vlgmr.msra.gmra.mrb[4].mxu1 %vm68_vm0, %v329_v23 }
 0x7e1   :  { %v367_v24 = vpop.f32.mrb[4].mxu1 }
 0x7e2   :  { %v369_v25 = vpop.f32.mrb[5].mxu1 }
 0x7e3   :  { %v376_v26 = vcombine.low %v367_v24, %v369_v25  ;;  %v371_v27 = vpop.f32.mrb[6].mxu1 }
 0x7e4   :  { %v372_v28 = vpop.f32.mrb[7].mxu1 }
 0x7e5   :  { %v383_v30 = vrot.slane %v376_v26, %v726_v15  ;;  %v572_v15 = vld [vmem:[%s797_s2] sm:$0xff]   ;;  %s505_s2 = sshll.u32 %s637_s22, 4  ;;  %s506_s2 = int_to_ptr.vmem [resolvable:$true] %s505_s2 }
 0x7e6   :  { %543 = vmatpush3.bf16.msra.mxu0 %v572_v15  ;;  %s608_s23 = scalar_lea.vmem %s506_s2, 32  ;;  %p613_p1 = scmp.lt.s32.totalorder %s506_s2, %s506_s2 }
 0x7e7   :  { %v385_v31 = vadd.f32 %v528_v29, %v383_v30  ;;  %544 = vmatprep.subr.bf16.mxu0 %v635_v40  ;;  %p609_p0 = scmp.ne.s32.totalorder %s506_s2, %s608_s23  ;;  %p614_p2 = scmp.lt.s32.totalorder %s608_s23, %s608_s23 }
 0x7e9   :  { %393 = vrot.lane.b32.xlu1 %v385_v31, %s634_s6  ;;  %v530_v32 = vmul.f32 -1.442695, %v385_v31  ;;  %p615_p3 = por %p614_p2, %p613_p1 }
 0x7ea   :  { %545 = vmatpush3.bf16.msra.mxu0 %v573_v41 }
 0x7eb   :  { %600 = vpow2.f32 %v530_v32  ;;  %546 = vmatprep.subr.bf16.mxu0 %v635_v40  ;;  %p616_p4 = pnand %p615_p3, %p609_p0 }
 0x7ee   :  { %547 = vmatpush3.bf16.msra.mxu0 %v574_v42 }
 0x7ef   :  { %548 = vmatprep.subr.bf16.mxu0 %v635_v40 }
 0x7f2   :  { %549 = vmatpush3.bf16.msra.mxu0 %v575_v45 }
 0x7f5   :  { %v601_v33 = vpop.eup %600 }
 0x7f6   :  { %v389_v34 = vadd.f32 1.0, %v601_v33 }
 0x7f8   :  { %602 = vrcp.f32 %v389_v34 }
 0x802   :  { %v603_v37 = vpop.eup %602 }
 0x803   :  { %v398_v43 = vmul.f32 %v603_v37, %v317_v18  ;;  %v407_v48 = vrot.slane %v603_v37, 2 }
 0x85b   :  { %v394_v35 = vpop.permute.xlu1 %393 }
 0x85c   :  { %v395_v36 = vrot.slane %v394_v35, 2 }
 0x85e   :  { %604 = vtanh.f32 %v395_v36 }
 0x868   :  { %v605_v38 = vpop.eup %604 }
 0x869   :  { %v399_v39 = vmul.f32 %v605_v38, %v603_v37 }
 0x86b   :  { %401 = vrot.lane.b32.xlu0 %v399_v39, %s634_s6 }
 0x8dd   :  { %v402_v44 = vpop.permute.xlu0 %401 }
 0x8de   :  { %v404_v46 = vadd.f32 %v402_v44, %v398_v43 }
 0x8e0   :  { %606 = vtanh.f32 %v404_v46 }
 0x8ea   :  { %v607_v47 = vpop.eup %606 }
 0x8eb   :  { %410 = vrot.lane.b32.xlu1 %v607_v47, %s634_s6 }
 0x95d   :  { %v411_v49 = vpop.permute.xlu1 %410 }
 0x95e   :  { %v413_v50 = vmul.f32 %v411_v49, %v407_v48 }
 0x960   :  { %v414_v51 = vpack.c.bf16 %v413_v50, %v413_v50 }
 0x962   :  { %551 = vmatmul.mubr.msk.bf16.vlgmr.msra.gmra.mrb[8].mxu0 %vm68_vm0, %v414_v51 }
 0xa35   :  { %v491_v53 = vpop.f32.mrb[8].mxu0 }
 0xa36   :  { %v492_v54 = vadd.f32 %v531_v52, %v491_v53  ;;  %v552_v55 = vpop.f32.mrb[9].mxu0 }
 0xa37   :  { %v494_v56 = vpop.f32.mrb[10].mxu0 }
 0xa38   :  { %v553_v57 = vpop.f32.mrb[11].mxu0  ;;  %498 = vst.msk [vmem:[#allocation2] sm:$0x3] %vm497_vm2, %v492_v54 }
 0xa39   :  { %619 = shalt.err (!%p616_p4)
}
 0xa3a   :  { %s620_s3 = scalar_lea.hbm %s799_s4, 32 }
 0xa3b   :  { %p621_p5 = scmp.ne.s32.totalorder %s799_s4, %s620_s3  ;;  %p624_p6 = scmp.lt.u32.totalorder %s620_s3, %s799_s4 }
 0xa3d   :  { %p626_p7 = pnand %p624_p6, %p621_p5 }
 0xa3f   :  { %629 = shalt.err (!%p626_p7)
}
 0xa40   :  { %508 = dma.vmem_to_hbm [thread:$0]  %s506_s2, 32, %s799_s4, [#allocation3]  }
 0xa41   :  { %630 = dma.done.wait [#allocation3], 32  }
 0xa42   :  { %631 = vsyncadd [#allocation3], 4294967264 }
 0xa43   :  { %512 = vsyncpa [#allocation3], 1 }

</bundles_post_ra>
